<compile_context>
chip_gen: v7x
topology: tpu7x:2x2x1
jax: 0.10.0
libtpu: 0.0.40
codegen_flags: <defaults>
</compile_context>

<pallas_src>
from functools import partial

import jax
import jax.numpy as jnp
from jax.experimental import pallas as pl
from jax.experimental.pallas import tpu as pltpu

IN_DIM = 28 * 28            # 784
H1, H2, H3, OUT = 1000, 500, 250, 16


def _round_up(v, m):
    return ((v + m - 1) // m) * m


# Lane-aligned (multiple-of-128) padded output dimensions.
H1_P = _round_up(H1, 128)       # 1024
H2_P = _round_up(H2, 128)       # 512
H3_P = _round_up(H3, 128)       # 256
OUT_P = _round_up(OUT, 128)     # 128


def encoder_kernel(x_ref,
                   w1_ref, b1_ref,
                   w2_ref, b2_ref,
                   w3_ref, b3_ref,
                   w4_ref, b4_ref,
                   o_ref):
    # Fused MLP: bf16 matmuls on the MXU with fp32 accumulation; the
    # bias + ReLU epilogue of the hidden layers runs in bf16 on the VPU.
    h = x_ref[...].astype(jnp.bfloat16)

    a = jnp.dot(h, w1_ref[...], preferred_element_type=jnp.float32)
    h = jnp.maximum(a.astype(jnp.bfloat16) + b1_ref[...], 0.0)

    a = jnp.dot(h, w2_ref[...], preferred_element_type=jnp.float32)
    h = jnp.maximum(a.astype(jnp.bfloat16) + b2_ref[...], 0.0)

    a = jnp.dot(h, w3_ref[...], preferred_element_type=jnp.float32)
    h = jnp.maximum(a.astype(jnp.bfloat16) + b3_ref[...], 0.0)

    a = jnp.dot(h, w4_ref[...], preferred_element_type=jnp.float32) + b4_ref[...]
    o_ref[...] = a.astype(o_ref.dtype)


def _call_pallas(x2d, prepared, *, tb, grid):
    (w1, b1), (w2, b2), (w3, b3), (w4, b4) = prepared
    batch = x2d.shape[0]

    weight_bytes = (w1.size + w2.size + w3.size + w4.size) * 2 \
        + (b1.size + b2.size + b3.size) * 2 + b4.size * 4
    flops = 2 * batch * (IN_DIM * H1_P + H1_P * H2_P + H2_P * H3_P + H3_P * OUT_P)
    bytes_accessed = batch * IN_DIM * 4 + weight_bytes + batch * OUT_P * 4

    return pl.pallas_call(
        encoder_kernel,
        out_shape=jax.ShapeDtypeStruct((batch, OUT_P), jnp.float32),
        grid_spec=pltpu.PrefetchScalarGridSpec(
            num_scalar_prefetch=0,
            grid=grid,
            in_specs=[
                pl.BlockSpec((tb, IN_DIM), lambda i: (i, 0)),
                pl.BlockSpec((IN_DIM, H1_P), lambda i: (0, 0)),
                pl.BlockSpec((1, H1_P), lambda i: (0, 0)),
                pl.BlockSpec((H1_P, H2_P), lambda i: (0, 0)),
                pl.BlockSpec((1, H2_P), lambda i: (0, 0)),
                pl.BlockSpec((H2_P, H3_P), lambda i: (0, 0)),
                pl.BlockSpec((1, H3_P), lambda i: (0, 0)),
                pl.BlockSpec((H3_P, OUT_P), lambda i: (0, 0)),
                pl.BlockSpec((1, OUT_P), lambda i: (0, 0)),
            ],
            out_specs=pl.BlockSpec((tb, OUT_P), lambda i: (i, 0)),
        ),
        compiler_params=pltpu.CompilerParams(
            dimension_semantics=("parallel",),
            vmem_limit_bytes=48 << 20,     # safe on all gens incl. v7x (64 MiB/TC)
        ),
        cost_estimate=pl.CostEstimate(
            flops=flops, transcendentals=0, bytes_accessed=bytes_accessed),
    )(x2d, w1, b1, w2, b2, w3, b3, w4, b4)


@partial(jax.jit, static_argnames=("batch_tile",))
def encoder_forward(x, prepared, *, batch_tile=512):
    """x: (batch, 1, 28, 28) or (batch, 784). Returns (batch, 1, 16)."""
    batch = x.shape[0]
    x2d = x.reshape(batch, -1).astype(jnp.float32)
    assert x2d.shape[1] == IN_DIM

    # Batch tiling: for batch >= 16 always split into >= 2 grid steps so the
    # "parallel" batch axis can shard across v7x's 2 TensorCores (an extra
    # grid step costs only ~0.35 us on single-TC parts). Large batches use
    # batch_tile-sized tiles to fill the MXU M dimension.
    if batch < 16:
        tb = batch
    elif batch <= 2 * batch_tile:
        tb = _round_up(pl.cdiv(batch, 2), 8)
    else:
        tb = batch_tile
    grid = (pl.cdiv(batch, tb),)

    out = _call_pallas(x2d, prepared, tb=tb, grid=grid)

    # Slice away output padding and mirror PyTorch: (batch, 1, 16).
    return out[:, :OUT].reshape(batch, 1, OUT)


def init_params(key):
    """PyTorch-default-style init: U(-1/sqrt(fan_in), 1/sqrt(fan_in)), fp32."""
    dims = [(IN_DIM, H1), (H1, H2), (H2, H3), (H3, OUT)]
    params = []
    for (fan_in, fan_out) in dims:
        key, kw, kb = jax.random.split(key, 3)
        bound = 1.0 / jnp.sqrt(jnp.float32(fan_in))
        w = jax.random.uniform(kw, (fan_in, fan_out), jnp.float32, -bound, bound)
        b = jax.random.uniform(kb, (1, fan_out), jnp.float32, -bound, bound)
        params.append((w, b))
    return params


def prepare_params(raw_params):
    """Zero-pad to lane-aligned output dims; weights -> bf16.

    W1 keeps K=784 (input is not padded). Hidden-layer biases are bf16 (bf16
    epilogue); the final bias stays fp32 for the fp32 output add.
    """
    specs = [
        (IN_DIM, H1, IN_DIM, H1_P, jnp.bfloat16),
        (H1, H2, H1_P, H2_P, jnp.bfloat16),
        (H2, H3, H2_P, H3_P, jnp.bfloat16),
        (H3, OUT, H3_P, OUT_P, jnp.float32),
    ]
    prepared = []
    for (w, b), (di, do, dip, dop, bias_dtype) in zip(raw_params, specs):
        wp = jnp.zeros((dip, dop), jnp.float32).at[:di, :do].set(w)
        bp = jnp.zeros((1, dop), jnp.float32).at[:, :do].set(b)
        prepared.append((wp.astype(jnp.bfloat16), bp.astype(bias_dtype)))
    return prepared


def reference_forward(x, prepared):
    """Pure-jnp reference mirroring the kernel's bf16/fp32 arithmetic."""
    batch = x.shape[0]
    (w1, b1), (w2, b2), (w3, b3), (w4, b4) = prepared
    h = x.reshape(batch, -1).astype(jnp.bfloat16)
    a = jnp.dot(h, w1, preferred_element_type=jnp.float32)
    h = jnp.maximum(a.astype(jnp.bfloat16) + b1, 0.0)
    a = jnp.dot(h, w2, preferred_element_type=jnp.float32)
    h = jnp.maximum(a.astype(jnp.bfloat16) + b2, 0.0)
    a = jnp.dot(h, w3, preferred_element_type=jnp.float32)
    h = jnp.maximum(a.astype(jnp.bfloat16) + b3, 0.0)
    a = jnp.dot(h, w4, preferred_element_type=jnp.float32) + b4
    return a[:, :OUT].reshape(batch, 1, OUT)


if __name__ == "__main__":
    key = jax.random.PRNGKey(0)
    key, kx = jax.random.split(key)

    batch = 8
    x = jax.random.normal(kx, (batch, 1, 28, 28), jnp.float32)

    raw_params = init_params(key)
    params = prepare_params(raw_params)

    y = encoder_forward(x, params)
    y = jax.block_until_ready(y)

    y_ref = reference_forward(x, params)
    assert y.shape == (batch, 1, OUT), y.shape
    assert jnp.allclose(y, y_ref, atol=1e-2, rtol=1e-2), \
        float(jnp.max(jnp.abs(y - y_ref)))

    print("KERNEL_OK")
</pallas_src>

<mosaic_0001>
module attributes {stable_mosaic.version = 11 : i64} {
  func.func @encoder_kernel(%arg0: i32, %arg1: memref<8x784xf32, #tpu.memory_space<vmem>>, %arg2: memref<784x1024xbf16, #tpu.memory_space<vmem>>, %arg3: memref<1x1024xbf16, #tpu.memory_space<vmem>>, %arg4: memref<1024x512xbf16, #tpu.memory_space<vmem>>, %arg5: memref<1x512xbf16, #tpu.memory_space<vmem>>, %arg6: memref<512x256xbf16, #tpu.memory_space<vmem>>, %arg7: memref<1x256xbf16, #tpu.memory_space<vmem>>, %arg8: memref<256x128xbf16, #tpu.memory_space<vmem>>, %arg9: memref<1x128xf32, #tpu.memory_space<vmem>>, %arg10: memref<8x128xf32, #tpu.memory_space<vmem>>) attributes {dimension_semantics = [#tpu.dimension_semantics<parallel>], iteration_bounds = array<i64: 1>, scalar_prefetch = 0 : i64, scratch_operands = 0 : i64, tpu.core_type = #tpu.core_type<tc>, window_params = [{transform_indices = @transform_0, window_bounds = array<i64: 8, 784>}, {pipeline_mode = #tpu.pipeline_mode<synchronous>, transform_indices = @transform_1, window_bounds = array<i64: 784, 1024>}, {pipeline_mode = #tpu.pipeline_mode<synchronous>, transform_indices = @transform_2, window_bounds = array<i64: 1, 1024>}, {pipeline_mode = #tpu.pipeline_mode<synchronous>, transform_indices = @transform_3, window_bounds = array<i64: 1024, 512>}, {pipeline_mode = #tpu.pipeline_mode<synchronous>, transform_indices = @transform_4, window_bounds = array<i64: 1, 512>}, {pipeline_mode = #tpu.pipeline_mode<synchronous>, transform_indices = @transform_5, window_bounds = array<i64: 512, 256>}, {pipeline_mode = #tpu.pipeline_mode<synchronous>, transform_indices = @transform_6, window_bounds = array<i64: 1, 256>}, {pipeline_mode = #tpu.pipeline_mode<synchronous>, transform_indices = @transform_7, window_bounds = array<i64: 256, 128>}, {pipeline_mode = #tpu.pipeline_mode<synchronous>, transform_indices = @transform_8, window_bounds = array<i64: 1, 128>}, {transform_indices = @transform_9, window_bounds = array<i64: 8, 128>}]} {
    %c0 = arith.constant 0 : index
    %c0_0 = arith.constant 0 : index
    %0 = vector.load %arg1[%c0, %c0_0] : memref<8x784xf32, #tpu.memory_space<vmem>>, vector<8x784xf32>
    %1 = arith.truncf %0 : vector<8x784xf32> to vector<8x784xbf16>
    %c0_1 = arith.constant 0 : index
    %c0_2 = arith.constant 0 : index
    %2 = vector.load %arg2[%c0_1, %c0_2] : memref<784x1024xbf16, #tpu.memory_space<vmem>>, vector<784x1024xbf16>
    %cst = arith.constant dense<0.000000e+00> : vector<8x1024xf32>
    %3 = tpu.matmul %1, %2, %cst {dimension_numbers = #tpu.dot_dimension_numbers<[1], [0], [0], [1], [0, 0, 1, 1], [], []>} : vector<8x784xbf16>, vector<784x1024xbf16>, vector<8x1024xf32> -> vector<8x1024xf32>
    %4 = arith.truncf %3 : vector<8x1024xf32> to vector<8x1024xbf16>
    %c0_3 = arith.constant 0 : index
    %c0_4 = arith.constant 0 : index
    %5 = vector.load %arg3[%c0_3, %c0_4] : memref<1x1024xbf16, #tpu.memory_space<vmem>>, vector<1x1024xbf16>
    %6 = vector.broadcast %5 : vector<1x1024xbf16> to vector<8x1024xbf16>
    %7 = arith.addf %4, %6 : vector<8x1024xbf16>
    %cst_5 = arith.constant 0.000000e+00 : bf16
    %8 = vector.broadcast %cst_5 : bf16 to vector<8x1024xbf16>
    %9 = arith.maximumf %7, %8 : vector<8x1024xbf16>
    %c0_6 = arith.constant 0 : index
    %c0_7 = arith.constant 0 : index
    %10 = vector.load %arg4[%c0_6, %c0_7] : memref<1024x512xbf16, #tpu.memory_space<vmem>>, vector<1024x512xbf16>
    %cst_8 = arith.constant dense<0.000000e+00> : vector<8x512xf32>
    %11 = tpu.matmul %9, %10, %cst_8 {dimension_numbers = #tpu.dot_dimension_numbers<[1], [0], [0], [1], [0, 0, 1, 1], [], []>} : vector<8x1024xbf16>, vector<1024x512xbf16>, vector<8x512xf32> -> vector<8x512xf32>
    %12 = arith.truncf %11 : vector<8x512xf32> to vector<8x512xbf16>
    %c0_9 = arith.constant 0 : index
    %c0_10 = arith.constant 0 : index
    %13 = vector.load %arg5[%c0_9, %c0_10] : memref<1x512xbf16, #tpu.memory_space<vmem>>, vector<1x512xbf16>
    %14 = vector.broadcast %13 : vector<1x512xbf16> to vector<8x512xbf16>
    %15 = arith.addf %12, %14 : vector<8x512xbf16>
    %cst_11 = arith.constant 0.000000e+00 : bf16
    %16 = vector.broadcast %cst_11 : bf16 to vector<8x512xbf16>
    %17 = arith.maximumf %15, %16 : vector<8x512xbf16>
    %c0_12 = arith.constant 0 : index
    %c0_13 = arith.constant 0 : index
    %18 = vector.load %arg6[%c0_12, %c0_13] : memref<512x256xbf16, #tpu.memory_space<vmem>>, vector<512x256xbf16>
    %cst_14 = arith.constant dense<0.000000e+00> : vector<8x256xf32>
    %19 = tpu.matmul %17, %18, %cst_14 {dimension_numbers = #tpu.dot_dimension_numbers<[1], [0], [0], [1], [0, 0, 1, 1], [], []>} : vector<8x512xbf16>, vector<512x256xbf16>, vector<8x256xf32> -> vector<8x256xf32>
    %20 = arith.truncf %19 : vector<8x256xf32> to vector<8x256xbf16>
    %c0_15 = arith.constant 0 : index
    %c0_16 = arith.constant 0 : index
    %21 = vector.load %arg7[%c0_15, %c0_16] : memref<1x256xbf16, #tpu.memory_space<vmem>>, vector<1x256xbf16>
    %22 = vector.broadcast %21 : vector<1x256xbf16> to vector<8x256xbf16>
    %23 = arith.addf %20, %22 : vector<8x256xbf16>
    %cst_17 = arith.constant 0.000000e+00 : bf16
    %24 = vector.broadcast %cst_17 : bf16 to vector<8x256xbf16>
    %25 = arith.maximumf %23, %24 : vector<8x256xbf16>
    %c0_18 = arith.constant 0 : index
    %c0_19 = arith.constant 0 : index
    %26 = vector.load %arg8[%c0_18, %c0_19] : memref<256x128xbf16, #tpu.memory_space<vmem>>, vector<256x128xbf16>
    %cst_20 = arith.constant dense<0.000000e+00> : vector<8x128xf32>
    %27 = tpu.matmul %25, %26, %cst_20 {dimension_numbers = #tpu.dot_dimension_numbers<[1], [0], [0], [1], [0, 0, 1, 1], [], []>} : vector<8x256xbf16>, vector<256x128xbf16>, vector<8x128xf32> -> vector<8x128xf32>
    %c0_21 = arith.constant 0 : index
    %c0_22 = arith.constant 0 : index
    %28 = vector.load %arg9[%c0_21, %c0_22] : memref<1x128xf32, #tpu.memory_space<vmem>>, vector<1x128xf32>
    %29 = vector.broadcast %28 : vector<1x128xf32> to vector<8x128xf32>
    %30 = arith.addf %27, %29 : vector<8x128xf32>
    %c0_23 = arith.constant 0 : index
    %c0_24 = arith.constant 0 : index
    %31 = vector.load %arg10[%c0_23, %c0_24] : memref<8x128xf32, #tpu.memory_space<vmem>>, vector<8x128xf32>
    tpu.vector_store %arg10[%c0_23, %c0_24], %30 {strides = array<i32>} : memref<8x128xf32, #tpu.memory_space<vmem>>, vector<8x128xf32>,
    return
  }
  func.func @transform_0(%arg0: i32) -> (i32, i32) {
    %c0_i32 = arith.constant 0 : i32
    %c0_i32_0 = arith.constant 0 : i32
    return %arg0, %c0_i32 : i32, i32
  }
  func.func @transform_1(%arg0: i32) -> (i32, i32) {
    %c0_i32 = arith.constant 0 : i32
    %c0_i32_0 = arith.constant 0 : i32
    %c0_i32_1 = arith.constant 0 : i32
    return %c0_i32, %c0_i32_0 : i32, i32
  }
  func.func @transform_2(%arg0: i32) -> (i32, i32) {
    %c0_i32 = arith.constant 0 : i32
    %c0_i32_0 = arith.constant 0 : i32
    %c0_i32_1 = arith.constant 0 : i32
    return %c0_i32, %c0_i32_0 : i32, i32
  }
  func.func @transform_3(%arg0: i32) -> (i32, i32) {
    %c0_i32 = arith.constant 0 : i32
    %c0_i32_0 = arith.constant 0 : i32
    %c0_i32_1 = arith.constant 0 : i32
    return %c0_i32, %c0_i32_0 : i32, i32
  }
  func.func @transform_4(%arg0: i32) -> (i32, i32) {
    %c0_i32 = arith.constant 0 : i32
    %c0_i32_0 = arith.constant 0 : i32
    %c0_i32_1 = arith.constant 0 : i32
    return %c0_i32, %c0_i32_0 : i32, i32
  }
  func.func @transform_5(%arg0: i32) -> (i32, i32) {
    %c0_i32 = arith.constant 0 : i32
    %c0_i32_0 = arith.constant 0 : i32
    %c0_i32_1 = arith.constant 0 : i32
    return %c0_i32, %c0_i32_0 : i32, i32
  }
  func.func @transform_6(%arg0: i32) -> (i32, i32) {
    %c0_i32 = arith.constant 0 : i32
    %c0_i32_0 = arith.constant 0 : i32
    %c0_i32_1 = arith.constant 0 : i32
    return %c0_i32, %c0_i32_0 : i32, i32
  }
  func.func @transform_7(%arg0: i32) -> (i32, i32) {
    %c0_i32 = arith.constant 0 : i32
    %c0_i32_0 = arith.constant 0 : i32
    %c0_i32_1 = arith.constant 0 : i32
    return %c0_i32, %c0_i32_0 : i32, i32
  }
  func.func @transform_8(%arg0: i32) -> (i32, i32) {
    %c0_i32 = arith.constant 0 : i32
    %c0_i32_0 = arith.constant 0 : i32
    %c0_i32_1 = arith.constant 0 : i32
    return %c0_i32, %c0_i32_0 : i32, i32
  }
  func.func @transform_9(%arg0: i32) -> (i32, i32) {
    %c0_i32 = arith.constant 0 : i32
    %c0_i32_0 = arith.constant 0 : i32
    return %arg0, %c0_i32 : i32, i32
  }
}

</mosaic_0001>

<bundles_post_ra>
// kernel: encoder_forward.1
= control target key start
LH: loop header
LB: loop body
LE: loop exit
PB: predicated region body
PF: predicated region fallthrough
CT: control target
= control target key end

     0   :  { %14 = vsyncpa [#allocation3], 0  ;;  %s7853_s0 = inlined_call_operand.vmem [shape: f32[8,784], index: 0, kind: input, shape index: {}]   ;;  %s7854_s1 = inlined_call_operand.hbm [shape: bf16[784,1024], index: 1, kind: input, shape index: {}]   ;;  %s7855_s2 = inlined_call_operand.hbm [shape: bf16[1,1024], index: 2, kind: input, shape index: {}]   ;;  %s7856_s3 = inlined_call_operand.hbm [shape: bf16[1024,512], index: 3, kind: input, shape index: {}]   ;;  %s7857_s4 = inlined_call_operand.hbm [shape: bf16[1,512], index: 4, kind: input, shape index: {}]   ;;  %s7858_s5 = inlined_call_operand.hbm [shape: bf16[512,256], index: 5, kind: input, shape index: {}]   ;;  %s7859_s6 = inlined_call_operand.hbm [shape: bf16[1,256], index: 6, kind: input, shape index: {}]   ;;  %s7860_s7 = inlined_call_operand.hbm [shape: bf16[256,128], index: 7, kind: input, shape index: {}]   ;;  %s7861_s8 = inlined_call_operand.hbm [shape: f32[1,128], index: 8, kind: input, shape index: {}]   ;;  %s7862_s9 = inlined_call_operand.hbm [shape: f32[8,128], index: 9, kind: output, shape index: {}]  }
   0x1   :  { %15 = vsyncpa [#allocation6], 0 }
   0x2   :  { %16 = vsyncpa [#allocation9], 0 }
   0x3   :  { %17 = vsyncpa [#allocation12], 0 }
   0x4   :  { %18 = vsyncpa [#allocation15], 0 }
   0x5   :  { %19 = vsyncpa [#allocation4], 0  ;;  %s7482_s30 = smov [#allocation5]   ;;  %s7483_s11 = smov [#allocation8]  }
   0x6   :  { %s40_s10 = sshll.u32 %s7482_s30, 4  ;;  %s62_s12 = sshll.u32 %s7483_s11, 4  ;;  %s41_s10 = int_to_ptr.vmem [resolvable:$true] %s40_s10  ;;  %s63_s12 = int_to_ptr.vmem [resolvable:$true] %s62_s12 }
   0x7   :  { %s7272_s15 = scalar_lea.hbm %s7855_s2, 128 }
   0x8   :  { %p7273_p0 = scmp.ne.s32.totalorder %s7855_s2, %s7272_s15  ;;  %p7276_p1 = scmp.lt.u32.totalorder %s7272_s15, %s7855_s2 }
   0xa   :  { %p7278_p2 = pnand %p7276_p1, %p7273_p0 }
   0xc   :  { %7281 = shalt.err (!%p7278_p2)
}
   0xd   :  { %s7282_s20 = scalar_lea.vmem %s41_s10, 128  ;;  %p7287_p4 = scmp.lt.s32.totalorder %s41_s10, %s41_s10 }
   0xe   :  { %p7283_p3 = scmp.ne.s32.totalorder %s41_s10, %s7282_s20  ;;  %p7288_p5 = scmp.lt.s32.totalorder %s7282_s20, %s7282_s20 }
  0x10   :  { %p7289_p6 = por %p7288_p5, %p7287_p4 }
  0x12   :  { %p7290_p7 = pnand %p7289_p6, %p7283_p3 }
  0x14   :  { %7293 = shalt.err (!%p7290_p7)
}
  0x15   :  { %43 = dma.hbm_to_vmem [thread:$0]  %s7855_s2, 128, %s41_s10, [#allocation6]  }
  0x16   :  { %s7294_s25 = scalar_lea.hbm %s7857_s4, 64 }
  0x17   :  { %p7295_p8 = scmp.ne.s32.totalorder %s7857_s4, %s7294_s25  ;;  %p7298_p9 = scmp.lt.u32.totalorder %s7294_s25, %s7857_s4 }
  0x19   :  { %p7300_p10 = pnand %p7298_p9, %p7295_p8 }
  0x1b   :  { %7303 = shalt.err (!%p7300_p10)
}
  0x1c   :  { %s7304_s30 = scalar_lea.vmem %s63_s12, 64  ;;  %p7309_p12 = scmp.lt.s32.totalorder %s63_s12, %s63_s12 }
  0x1d   :  { %p7305_p11 = scmp.ne.s32.totalorder %s63_s12, %s7304_s30  ;;  %p7310_p13 = scmp.lt.s32.totalorder %s7304_s30, %s7304_s30 }
  0x1f   :  { %p7311_p0 = por %p7310_p13, %p7309_p12 }
  0x21   :  { %p7312_p1 = pnand %p7311_p0, %p7305_p11 }
  0x23   :  { %7315 = shalt.err (!%p7312_p1)
}
  0x24   :  { %65 = dma.hbm_to_vmem [thread:$0]  %s7857_s4, 64, %s63_s12, [#allocation9]  }
  0x25   :  { %s7484_s11 = smov [#allocation11]   ;;  %s7485_s14 = smov [#allocation2]  }
  0x26   :  { %s84_s13 = sshll.u32 %s7484_s11, 4  ;;  %s27_s15 = sshll.u32 %s7485_s14, 4  ;;  %s85_s13 = int_to_ptr.vmem [resolvable:$true] %s84_s13  ;;  %s7575_s15 = int_to_ptr.vmem [resolvable:$true] %s27_s15 }
  0x27   :  { %s7316_s18 = scalar_lea.hbm %s7859_s6, 32 }
  0x28   :  { %p7317_p2 = scmp.ne.s32.totalorder %s7859_s6, %s7316_s18  ;;  %p7320_p3 = scmp.lt.u32.totalorder %s7316_s18, %s7859_s6 }
  0x2a   :  { %p7322_p4 = pnand %p7320_p3, %p7317_p2 }
  0x2c   :  { %7325 = shalt.err (!%p7322_p4)
}
  0x2d   :  { %s7326_s4 = scalar_lea.vmem %s85_s13, 32  ;;  %p7331_p6 = scmp.lt.s32.totalorder %s85_s13, %s85_s13 }
  0x2e   :  { %p7327_p5 = scmp.ne.s32.totalorder %s85_s13, %s7326_s4  ;;  %p7332_p7 = scmp.lt.s32.totalorder %s7326_s4, %s7326_s4 }
  0x30   :  { %p7333_p8 = por %p7332_p7, %p7331_p6 }
  0x32   :  { %p7334_p9 = pnand %p7333_p8, %p7327_p5 }
  0x34   :  { %7337 = shalt.err (!%p7334_p9)
}
  0x35   :  { %87 = dma.hbm_to_vmem [thread:$0]  %s7859_s6, 32, %s85_s13, [#allocation12]  }
  0x36   :  { %s7338_s26 = scalar_lea.hbm %s7854_s1, 50176 }
  0x37   :  { %p7339_p10 = scmp.ne.s32.totalorder %s7854_s1, %s7338_s26  ;;  %p7342_p11 = scmp.lt.u32.totalorder %s7338_s26, %s7854_s1 }
  0x39   :  { %p7344_p12 = pnand %p7342_p11, %p7339_p10 }
  0x3b   :  { %7347 = shalt.err (!%p7344_p12)
}
  0x3c   :  { %s7348_s2 = scalar_lea.vmem %s7575_s15, 50176  ;;  %p7353_p0 = scmp.lt.s32.totalorder %s7575_s15, %s7575_s15 }
  0x3d   :  { %p7349_p13 = scmp.ne.s32.totalorder %s7575_s15, %s7348_s2  ;;  %p7354_p1 = scmp.lt.s32.totalorder %s7348_s2, %s7348_s2 }
  0x3f   :  { %p7355_p2 = por %p7354_p1, %p7353_p0 }
  0x41   :  { %p7356_p3 = pnand %p7355_p2, %p7349_p13 }
  0x43   :  { %7359 = shalt.err (!%p7356_p3)
}
  0x44   :  { %s7486_s6 = smov 512   ;;  %s7487_s10 = smov 32  }
  0x45   :  { %33 = dma.hbm_to_vmem [thread:$0]  %s7854_s1, 50176, %s7575_s15, [#allocation3], %s7486_s6, %s7486_s6, %s7487_s10  }
  0x46   :  { %s7488_s14 = smov [#allocation7]   ;;  %s7360_s19 = scalar_lea.hbm %s7856_s3, 32768 }
  0x47   :  { %s49_s16 = sshll.u32 %s7488_s14, 4  ;;  %p7361_p4 = scmp.ne.s32.totalorder %s7856_s3, %s7360_s19  ;;  %s50_s16 = int_to_ptr.vmem [resolvable:$true] %s49_s16 }
  0x48   :  { %p7364_p5 = scmp.lt.u32.totalorder %s7360_s19, %s7856_s3 }
  0x4a   :  { %p7366_p6 = pnand %p7364_p5, %p7361_p4 }
  0x4c   :  { %7369 = shalt.err (!%p7366_p6)
}
  0x4d   :  { %s7370_s12 = scalar_lea.vmem %s50_s16, 32768  ;;  %p7375_p8 = scmp.lt.s32.totalorder %s50_s16, %s50_s16 }
  0x4e   :  { %p7371_p7 = scmp.ne.s32.totalorder %s50_s16, %s7370_s12  ;;  %p7376_p9 = scmp.lt.s32.totalorder %s7370_s12, %s7370_s12 }
  0x50   :  { %p7377_p10 = por %p7376_p9, %p7375_p8 }
  0x52   :  { %p7378_p11 = pnand %p7377_p10, %p7371_p7 }
  0x54   :  { %7381 = shalt.err (!%p7378_p11)
}
  0x55   :  { %s7489_s1 = smov 256   ;;  %s7490_s15 = smov 16  }
  0x56   :  { %55 = dma.hbm_to_vmem [thread:$0]  %s7856_s3, 32768, %s50_s16, [#allocation6], %s7489_s1, %s7489_s1, %s7490_s15  }
  0x57   :  { %s7491_s25 = smov [#allocation10]   ;;  %s7382_s29 = scalar_lea.hbm %s7858_s5, 8192 }
  0x58   :  { %s71_s26 = sshll.u32 %s7491_s25, 4  ;;  %p7383_p12 = scmp.ne.s32.totalorder %s7858_s5, %s7382_s29  ;;  %s72_s26 = int_to_ptr.vmem [resolvable:$true] %s71_s26 }
  0x59   :  { %p7386_p13 = scmp.lt.u32.totalorder %s7382_s29, %s7858_s5 }
  0x5b   :  { %p7388_p0 = pnand %p7386_p13, %p7383_p12 }
  0x5d   :  { %7391 = shalt.err (!%p7388_p0)
}
  0x5e   :  { %s7392_s11 = scalar_lea.vmem %s72_s26, 8192  ;;  %p7397_p2 = scmp.lt.s32.totalorder %s72_s26, %s72_s26 }
  0x5f   :  { %p7393_p1 = scmp.ne.s32.totalorder %s72_s26, %s7392_s11  ;;  %p7398_p3 = scmp.lt.s32.totalorder %s7392_s11, %s7392_s11 }
  0x61   :  { %p7399_p4 = por %p7398_p3, %p7397_p2 }
  0x63   :  { %p7400_p5 = pnand %p7399_p4, %p7393_p1 }
  0x65   :  { %7403 = shalt.err (!%p7400_p5)
}
  0x66   :  { %s7492_s3 = smov 128   ;;  %s7493_s13 = smov 8  }
  0x67   :  { %77 = dma.hbm_to_vmem [thread:$0]  %s7858_s5, 8192, %s72_s26, [#allocation9], %s7492_s3, %s7492_s3, %s7493_s13  }
  0x68   :  { %s7494_s17 = smov [#allocation13]   ;;  %s7404_s21 = scalar_lea.hbm %s7860_s7, 2048 }
  0x69   :  { %s93_s18 = sshll.u32 %s7494_s17, 4  ;;  %p7405_p6 = scmp.ne.s32.totalorder %s7860_s7, %s7404_s21  ;;  %s94_s18 = int_to_ptr.vmem [resolvable:$true] %s93_s18 }
  0x6a   :  { %p7408_p7 = scmp.lt.u32.totalorder %s7404_s21, %s7860_s7 }
  0x6c   :  { %p7410_p8 = pnand %p7408_p7, %p7405_p6 }
  0x6e   :  { %7413 = shalt.err (!%p7410_p8)
}
  0x6f   :  { %s7414_s15 = scalar_lea.vmem %s94_s18, 2048  ;;  %p7419_p10 = scmp.lt.s32.totalorder %s94_s18, %s94_s18 }
  0x70   :  { %p7415_p9 = scmp.ne.s32.totalorder %s94_s18, %s7414_s15  ;;  %p7420_p11 = scmp.lt.s32.totalorder %s7414_s15, %s7414_s15 }
  0x72   :  { %p7421_p12 = por %p7420_p11, %p7419_p10 }
  0x74   :  { %p7422_p13 = pnand %p7421_p12, %p7415_p9 }
  0x76   :  { %7425 = shalt.err (!%p7422_p13)
}
  0x77   :  { %s7495_s5 = smov 64   ;;  %s7496_s23 = smov 4  }
  0x78   :  { %99 = dma.hbm_to_vmem [thread:$0]  %s7860_s7, 2048, %s94_s18, [#allocation12], %s7495_s5, %s7495_s5, %s7496_s23  }
  0x79   :  { %s7497_s26 = smov [#allocation14]   ;;  %s7426_s30 = scalar_lea.hbm %s7861_s8, 16 }
  0x7a   :  { %s106_s27 = sshll.u32 %s7497_s26, 4  ;;  %p7427_p0 = scmp.ne.s32.totalorder %s7861_s8, %s7426_s30  ;;  %s107_s27 = int_to_ptr.vmem [resolvable:$true] %s106_s27 }
  0x7b   :  { %p7430_p1 = scmp.lt.u32.totalorder %s7426_s30, %s7861_s8 }
  0x7d   :  { %p7432_p2 = pnand %p7430_p1, %p7427_p0 }
  0x7f   :  { %7435 = shalt.err (!%p7432_p2)
}
  0x80   :  { %s7436_s3 = scalar_lea.vmem %s107_s27, 16  ;;  %s7440_s7 = scalar_lea.vmem %s107_s27, 32 }
  0x81   :  { %p7437_p3 = scmp.ne.s32.totalorder %s107_s27, %s7436_s3  ;;  %p7441_p4 = scmp.lt.s32.totalorder %s107_s27, %s107_s27 }
  0x82   :  { %p7442_p5 = scmp.lt.s32.totalorder %s7440_s7, %s7436_s3 }
  0x84   :  { %p7443_p6 = por %p7442_p5, %p7441_p4 }
  0x86   :  { %p7444_p7 = pnand %p7443_p6, %p7437_p3 }
  0x88   :  { %7447 = shalt.err (!%p7444_p7)
}
  0x89   :  { %109 = dma.hbm_to_vmem [thread:$0]  %s7861_s8, 16, %s107_s27, [#allocation15]  }
  0x8a   :  { %7470 = dma.done.wait [#allocation3], 50176  }
  0x8b   :  { %7471 = vsyncadd [#allocation3], 4294917120 }
  0x8c   :  { %7472 = dma.done.wait [#allocation6], 32896  }
  0x8d   :  { %7473 = vsyncadd [#allocation6], 4294934400 }
  0x8e   :  { %7474 = dma.done.wait [#allocation9], 8256  }
  0x8f   :  { %7475 = vsyncadd [#allocation9], 4294959040 }
  0x90   :  { %7476 = dma.done.wait [#allocation12], 2080  }
  0x91   :  { %7477 = vsyncadd [#allocation12], 4294965216 }
  0x92   :  { %7478 = dma.done.wait [#allocation15], 16  }
  0x93   :  { %7479 = vsyncadd [#allocation15], 4294967280  ;;  %v149_v0 = vld [vmem:[#allocation2] sm:$0xff]  ;;  %v136_v53 = vld [vmem:[%s7853_s0 + $0x8] sm:$0xff]  ;;  %vm2501_vm0 = vcmask 130048  }
  0x94   :  { %v153_v1 = vld [vmem:[#allocation2 + $0x20] sm:$0xff]  ;;  %v7657_v57 = vpack.c.bf16 %v136_v53, %v136_v53  ;;  %v138_v58 = vld [vmem:[%s7853_s0 + $0x18] sm:$0xff] }
  0x95   :  { %v277_v2 = vld [vmem:[#allocation2 + $0x400] sm:$0xff]  ;;  %v5928_v3 = vcombine.high %v149_v0, %v153_v1  ;;  %v5927_v5 = vcombine.low %v149_v0, %v153_v1  ;;  %v7662_v61 = vpack.c.bf16 %v138_v58, %v138_v58 }
  0x96   :  { %v281_v4 = vld [vmem:[#allocation2 + $0x420] sm:$0xff]  ;;  %2537 = vmatprep.mubr.bf16.mxu1 %v7657_v57 }
  0x97   :  { %v157_v6 = vld [vmem:[#allocation2 + $0x40] sm:$0xff]  ;;  %v6056_v8 = vcombine.high %v277_v2, %v281_v4  ;;  %v6055_v9 = vcombine.low %v277_v2, %v281_v4  ;;  %2505 = vmatprep.subr.bf16.mxu1 %v5928_v3  ;;  %2578 = vmatprep.mubr.bf16.mxu0 %v7662_v61 }
  0x98   :  { %v161_v7 = vld [vmem:[#allocation2 + $0x60] sm:$0xff]  ;;  %2506 = vmatpush1.bf16.msra.mxu1 %v5927_v5 }
  0x99   :  { %v5936_v10 = vcombine.high %v157_v6, %v161_v7  ;;  %v285_v11 = vld [vmem:[#allocation2 + $0x440] sm:$0xff]  ;;  %2546 = vmatprep.subr.bf16.mxu0 %v6056_v8  ;;  %v5935_v18 = vcombine.low %v157_v6, %v161_v7 }
  0x9a   :  { %v289_v12 = vld [vmem:[#allocation2 + $0x460] sm:$0xff]  ;;  %2547 = vmatpush1.bf16.msra.mxu0 %v6055_v9 }
  0x9b   :  { %v165_v13 = vld [vmem:[#allocation2 + $0x80] sm:$0xff]  ;;  %v6064_v14 = vcombine.high %v285_v11, %v289_v12  ;;  %2507 = vmatprep.subr.bf16.mxu1 %v5936_v10  ;;  %v6063_v19 = vcombine.low %v285_v11, %v289_v12 }
  0x9c   :  { %v169_v15 = vld [vmem:[#allocation2 + $0xa0] sm:$0xff]  ;;  %2508 = vmatpush1.bf16.msra.mxu1 %v5935_v18 }
  0x9d   :  { %v293_v16 = vld [vmem:[#allocation2 + $0x480] sm:$0xff]  ;;  %v5944_v20 = vcombine.high %v165_v13, %v169_v15  ;;  %2548 = vmatprep.subr.bf16.mxu0 %v6064_v14  ;;  %v5943_v26 = vcombine.low %v165_v13, %v169_v15 }
  0x9e   :  { %v297_v17 = vld [vmem:[#allocation2 + $0x4a0] sm:$0xff]  ;;  %2549 = vmatpush1.bf16.msra.mxu0 %v6063_v19 }
  0x9f   :  { %v6072_v21 = vcombine.high %v293_v16, %v297_v17  ;;  %v173_v22 = vld [vmem:[#allocation2 + $0xc0] sm:$0xff]  ;;  %2509 = vmatprep.subr.bf16.mxu1 %v5944_v20  ;;  %v6071_v27 = vcombine.low %v293_v16, %v297_v17 }
  0xa0   :  { %v177_v23 = vld [vmem:[#allocation2 + $0xe0] sm:$0xff]  ;;  %2510 = vmatpush1.bf16.msra.mxu1 %v5943_v26 }
  0xa1   :  { %v301_v24 = vld [vmem:[#allocation2 + $0x4c0] sm:$0xff]  ;;  %v5952_v28 = vcombine.high %v173_v22, %v177_v23  ;;  %2550 = vmatprep.subr.bf16.mxu0 %v6072_v21  ;;  %v5951_v34 = vcombine.low %v173_v22, %v177_v23 }
  0xa2   :  { %v305_v25 = vld [vmem:[#allocation2 + $0x4e0] sm:$0xff]  ;;  %2551 = vmatpush1.bf16.msra.mxu0 %v6071_v27 }
  0xa3   :  { %v6080_v29 = vcombine.high %v301_v24, %v305_v25  ;;  %v181_v30 = vld [vmem:[#allocation2 + $0x100] sm:$0xff]  ;;  %2511 = vmatprep.subr.bf16.mxu1 %v5952_v28  ;;  %v6079_v35 = vcombine.low %v301_v24, %v305_v25 }
  0xa4   :  { %v185_v31 = vld [vmem:[#allocation2 + $0x120] sm:$0xff]  ;;  %2512 = vmatpush1.bf16.msra.mxu1 %v5951_v34 }
  0xa5   :  { %v309_v32 = vld [vmem:[#allocation2 + $0x500] sm:$0xff]  ;;  %v5960_v36 = vcombine.high %v181_v30, %v185_v31  ;;  %2552 = vmatprep.subr.bf16.mxu0 %v6080_v29  ;;  %v5959_v42 = vcombine.low %v181_v30, %v185_v31 }
  0xa6   :  { %v313_v33 = vld [vmem:[#allocation2 + $0x520] sm:$0xff]  ;;  %2553 = vmatpush1.bf16.msra.mxu0 %v6079_v35 }
  0xa7   :  { %v6088_v37 = vcombine.high %v309_v32, %v313_v33  ;;  %v189_v38 = vld [vmem:[#allocation2 + $0x140] sm:$0xff]  ;;  %2513 = vmatprep.subr.bf16.mxu1 %v5960_v36  ;;  %v6087_v43 = vcombine.low %v309_v32, %v313_v33 }
  0xa8   :  { %v193_v39 = vld [vmem:[#allocation2 + $0x160] sm:$0xff]  ;;  %2514 = vmatpush1.bf16.msra.mxu1 %v5959_v42 }
  0xa9   :  { %v317_v40 = vld [vmem:[#allocation2 + $0x540] sm:$0xff]  ;;  %v5968_v44 = vcombine.high %v189_v38, %v193_v39  ;;  %2554 = vmatprep.subr.bf16.mxu0 %v6088_v37  ;;  %v5967_v50 = vcombine.low %v189_v38, %v193_v39 }
  0xaa   :  { %v321_v41 = vld [vmem:[#allocation2 + $0x560] sm:$0xff]  ;;  %2555 = vmatpush1.bf16.msra.mxu0 %v6087_v43 }
  0xab   :  { %v6096_v45 = vcombine.high %v317_v40, %v321_v41  ;;  %v197_v46 = vld [vmem:[#allocation2 + $0x180] sm:$0xff]  ;;  %2515 = vmatprep.subr.bf16.mxu1 %v5968_v44  ;;  %v6095_v51 = vcombine.low %v317_v40, %v321_v41 }
  0xac   :  { %v201_v47 = vld [vmem:[#allocation2 + $0x1a0] sm:$0xff]  ;;  %2516 = vmatpush1.bf16.msra.mxu1 %v5967_v50 }
  0xad   :  { %v325_v48 = vld [vmem:[#allocation2 + $0x580] sm:$0xff]  ;;  %v5976_v52 = vcombine.high %v197_v46, %v201_v47  ;;  %2556 = vmatprep.subr.bf16.mxu0 %v6096_v45  ;;  %v5975_v62 = vcombine.low %v197_v46, %v201_v47 }
  0xae   :  { %v329_v49 = vld [vmem:[#allocation2 + $0x5a0] sm:$0xff]  ;;  %2557 = vmatpush1.bf16.msra.mxu0 %v6095_v51 }
  0xaf   :  { %v6104_v54 = vcombine.high %v325_v48, %v329_v49  ;;  %v205_v55 = vld [vmem:[#allocation2 + $0x1c0] sm:$0xff]  ;;  %2517 = vmatprep.subr.bf16.mxu1 %v5976_v52  ;;  %v6103_v63 = vcombine.low %v325_v48, %v329_v49 }
  0xb0   :  { %v209_v56 = vld [vmem:[#allocation2 + $0x1e0] sm:$0xff]  ;;  %2518 = vmatpush1.bf16.msra.mxu1 %v5975_v62 }
  0xb1   :  { %v333_v59 = vld [vmem:[#allocation2 + $0x5c0] sm:$0xff]  ;;  %v5984_v0 = vcombine.high %v205_v55, %v209_v56  ;;  %2558 = vmatprep.subr.bf16.mxu0 %v6104_v54  ;;  %v5983_v6 = vcombine.low %v205_v55, %v209_v56 }
  0xb2   :  { %v337_v60 = vld [vmem:[#allocation2 + $0x5e0] sm:$0xff]  ;;  %2559 = vmatpush1.bf16.msra.mxu0 %v6103_v63 }
  0xb3   :  { %v6112_v1 = vcombine.high %v333_v59, %v337_v60  ;;  %v213_v2 = vld [vmem:[#allocation2 + $0x200] sm:$0xff]  ;;  %2519 = vmatprep.subr.bf16.mxu1 %v5984_v0  ;;  %v6111_v7 = vcombine.low %v333_v59, %v337_v60 }
  0xb4   :  { %v217_v3 = vld [vmem:[#allocation2 + $0x220] sm:$0xff]  ;;  %2520 = vmatpush1.bf16.msra.mxu1 %v5983_v6 }
  0xb5   :  { %v341_v4 = vld [vmem:[#allocation2 + $0x600] sm:$0xff]  ;;  %v5992_v8 = vcombine.high %v213_v2, %v217_v3  ;;  %2560 = vmatprep.subr.bf16.mxu0 %v6112_v1  ;;  %v5991_v14 = vcombine.low %v213_v2, %v217_v3 }
  0xb6   :  { %v345_v5 = vld [vmem:[#allocation2 + $0x620] sm:$0xff]  ;;  %2561 = vmatpush1.bf16.msra.mxu0 %v6111_v7 }
  0xb7   :  { %v6120_v9 = vcombine.high %v341_v4, %v345_v5  ;;  %v221_v10 = vld [vmem:[#allocation2 + $0x240] sm:$0xff]  ;;  %2521 = vmatprep.subr.bf16.mxu1 %v5992_v8  ;;  %v6119_v15 = vcombine.low %v341_v4, %v345_v5  ;;  %v150_v4 = vld [vmem:[#allocation2 + $0x8] sm:$0xff] }
  0xb8   :  { %v225_v11 = vld [vmem:[#allocation2 + $0x260] sm:$0xff]  ;;  %2522 = vmatpush1.bf16.msra.mxu1 %v5991_v14  ;;  %v154_v5 = vld [vmem:[#allocation2 + $0x28] sm:$0xff] }
  0xb9   :  { %v349_v12 = vld [vmem:[#allocation2 + $0x640] sm:$0xff]  ;;  %v6000_v16 = vcombine.high %v221_v10, %v225_v11  ;;  %2562 = vmatprep.subr.bf16.mxu0 %v6120_v9  ;;  %v5999_v22 = vcombine.low %v221_v10, %v225_v11  ;;  %v5930_v11 = vcombine.high %v150_v4, %v154_v5  ;;  %v158_v14 = vld [vmem:[#allocation2 + $0x48] sm:$0xff] }
  0xba   :  { %v353_v13 = vld [vmem:[#allocation2 + $0x660] sm:$0xff]  ;;  %2563 = vmatpush1.bf16.msra.mxu0 %v6119_v15  ;;  %v162_v15 = vld [vmem:[#allocation2 + $0x68] sm:$0xff] }
  0xbb   :  { %v6128_v17 = vcombine.high %v349_v12, %v353_v13  ;;  %v229_v18 = vld [vmem:[#allocation2 + $0x280] sm:$0xff]  ;;  %2523 = vmatprep.subr.bf16.mxu1 %v6000_v16  ;;  %v6127_v23 = vcombine.low %v349_v12, %v353_v13  ;;  %v137_v12 = vld [vmem:[%s7853_s0 + $0x10] sm:$0xff] }
  0xbc   :  { %v233_v19 = vld [vmem:[#allocation2 + $0x2a0] sm:$0xff]  ;;  %2524 = vmatpush1.bf16.msra.mxu1 %v5999_v22 }
  0xbd   :  { %v357_v20 = vld [vmem:[#allocation2 + $0x680] sm:$0xff]  ;;  %v6008_v24 = vcombine.high %v229_v18, %v233_v19  ;;  %2564 = vmatprep.subr.bf16.mxu0 %v6128_v17  ;;  %v6007_v30 = vcombine.low %v229_v18, %v233_v19  ;;  %v140_v19 = vld [vmem:[%s7853_s0 + $0x28] sm:$0xff] }
  0xbe   :  { %v361_v21 = vld [vmem:[#allocation2 + $0x6a0] sm:$0xff]  ;;  %2565 = vmatpush1.bf16.msra.mxu0 %v6127_v23  ;;  %v5938_v23 = vcombine.high %v158_v14, %v162_v15 }
  0xbf   :  { %v6136_v25 = vcombine.high %v357_v20, %v361_v21  ;;  %v237_v26 = vld [vmem:[#allocation2 + $0x2c0] sm:$0xff]  ;;  %2525 = vmatprep.subr.bf16.mxu1 %v6008_v24  ;;  %v6135_v31 = vcombine.low %v357_v20, %v361_v21  ;;  %v5929_v20 = vcombine.low %v150_v4, %v154_v5  ;;  %v7677_v21 = vpack.c.bf16 %v137_v12, %v137_v12 }
  0xc0   :  { %v241_v27 = vld [vmem:[#allocation2 + $0x2e0] sm:$0xff]  ;;  %2526 = vmatpush1.bf16.msra.mxu1 %v6007_v30  ;;  %v5937_v30 = vcombine.low %v158_v14, %v162_v15  ;;  %v214_v14 = vld [vmem:[#allocation2 + $0x208] sm:$0xff] }
  0xc1   :  { %v365_v28 = vld [vmem:[#allocation2 + $0x6c0] sm:$0xff]  ;;  %v6016_v32 = vcombine.high %v237_v26, %v241_v27  ;;  %2566 = vmatprep.subr.bf16.mxu0 %v6136_v25  ;;  %v6015_v38 = vcombine.low %v237_v26, %v241_v27  ;;  %v166_v27 = vld [vmem:[#allocation2 + $0x88] sm:$0xff] }
  0xc2   :  { %v369_v29 = vld [vmem:[#allocation2 + $0x6e0] sm:$0xff]  ;;  %2567 = vmatpush1.bf16.msra.mxu0 %v6135_v31  ;;  %v218_v15 = vld [vmem:[#allocation2 + $0x228] sm:$0xff] }
  0xc3   :  { %v6144_v33 = vcombine.high %v365_v28, %v369_v29  ;;  %v245_v34 = vld [vmem:[#allocation2 + $0x300] sm:$0xff]  ;;  %2527 = vmatprep.subr.bf16.mxu1 %v6016_v32  ;;  %v6143_v39 = vcombine.low %v365_v28, %v369_v29  ;;  %v170_v28 = vld [vmem:[#allocation2 + $0xa8] sm:$0xff]  ;;  %v7679_v29 = vpack.c.bf16 %v140_v19, %v140_v19  ;;  %v5994_v19 = vcombine.high %v214_v14, %v218_v15 }
  0xc4   :  { %v249_v35 = vld [vmem:[#allocation2 + $0x320] sm:$0xff]  ;;  %2528 = vmatpush1.bf16.msra.mxu1 %v6015_v38  ;;  %v5946_v32 = vcombine.high %v166_v27, %v170_v28  ;;  %v5945_v38 = vcombine.low %v166_v27, %v170_v28 }
  0xc5   :  { %v373_v36 = vld [vmem:[#allocation2 + $0x700] sm:$0xff]  ;;  %v6024_v40 = vcombine.high %v245_v34, %v249_v35  ;;  %2568 = vmatprep.subr.bf16.mxu0 %v6144_v33  ;;  %v6023_v46 = vcombine.low %v245_v34, %v249_v35 }
  0xc6   :  { %v377_v37 = vld [vmem:[#allocation2 + $0x720] sm:$0xff]  ;;  %2569 = vmatpush1.bf16.msra.mxu0 %v6143_v39 }
  0xc7   :  { %v6152_v41 = vcombine.high %v373_v36, %v377_v37  ;;  %v253_v42 = vld [vmem:[#allocation2 + $0x340] sm:$0xff]  ;;  %2529 = vmatprep.subr.bf16.mxu1 %v6024_v40  ;;  %v6151_v47 = vcombine.low %v373_v36, %v377_v37  ;;  %v174_v36 = vld [vmem:[#allocation2 + $0xc8] sm:$0xff] }
  0xc8   :  { %v257_v43 = vld [vmem:[#allocation2 + $0x360] sm:$0xff]  ;;  %2530 = vmatpush1.bf16.msra.mxu1 %v6023_v46  ;;  %v178_v37 = vld [vmem:[#allocation2 + $0xe8] sm:$0xff] }
  0xc9   :  { %v381_v44 = vld [vmem:[#allocation2 + $0x740] sm:$0xff]  ;;  %v6032_v48 = vcombine.high %v253_v42, %v257_v43  ;;  %2570 = vmatprep.subr.bf16.mxu0 %v6152_v41  ;;  %v6031_v54 = vcombine.low %v253_v42, %v257_v43  ;;  %v5954_v40 = vcombine.high %v174_v36, %v178_v37  ;;  %v5953_v46 = vcombine.low %v174_v36, %v178_v37 }
  0xca   :  { %v385_v45 = vld [vmem:[#allocation2 + $0x760] sm:$0xff]  ;;  %2571 = vmatpush1.bf16.msra.mxu0 %v6151_v47 }
  0xcb   :  { %v6160_v49 = vcombine.high %v381_v44, %v385_v45  ;;  %v261_v50 = vld [vmem:[#allocation2 + $0x380] sm:$0xff]  ;;  %2531 = vmatprep.subr.bf16.mxu1 %v6032_v48  ;;  %v6159_v55 = vcombine.low %v381_v44, %v385_v45  ;;  %v182_v44 = vld [vmem:[#allocation2 + $0x108] sm:$0xff] }
  0xcc   :  { %v265_v51 = vld [vmem:[#allocation2 + $0x3a0] sm:$0xff]  ;;  %2532 = vmatpush1.bf16.msra.mxu1 %v6031_v54  ;;  %v186_v45 = vld [vmem:[#allocation2 + $0x128] sm:$0xff] }
  0xcd   :  { %v389_v52 = vld [vmem:[#allocation2 + $0x780] sm:$0xff]  ;;  %v6040_v56 = vcombine.high %v261_v50, %v265_v51  ;;  %2572 = vmatprep.subr.bf16.mxu0 %v6160_v49  ;;  %v6039_v0 = vcombine.low %v261_v50, %v265_v51  ;;  %v5962_v48 = vcombine.high %v182_v44, %v186_v45  ;;  %v5961_v54 = vcombine.low %v182_v44, %v186_v45 }
  0xce   :  { %v393_v53 = vld [vmem:[#allocation2 + $0x7a0] sm:$0xff]  ;;  %2573 = vmatpush1.bf16.msra.mxu0 %v6159_v55 }
  0xcf   :  { %v6168_v58 = vcombine.high %v389_v52, %v393_v53  ;;  %v269_v59 = vld [vmem:[#allocation2 + $0x3c0] sm:$0xff]  ;;  %2533 = vmatprep.subr.bf16.mxu1 %v6040_v56  ;;  %v6167_v1 = vcombine.low %v389_v52, %v393_v53  ;;  %v190_v52 = vld [vmem:[#allocation2 + $0x148] sm:$0xff] }
  0xd0   :  { %v273_v60 = vld [vmem:[#allocation2 + $0x3e0] sm:$0xff]  ;;  %2534 = vmatpush1.bf16.msra.mxu1 %v6039_v0  ;;  %v194_v53 = vld [vmem:[#allocation2 + $0x168] sm:$0xff] }
  0xd1   :  { %v397_v62 = vld [vmem:[#allocation2 + $0x7c0] sm:$0xff]  ;;  %v6048_v2 = vcombine.high %v269_v59, %v273_v60  ;;  %2574 = vmatprep.subr.bf16.mxu0 %v6168_v58  ;;  %v6047_v8 = vcombine.low %v269_v59, %v273_v60  ;;  %v5970_v56 = vcombine.high %v190_v52, %v194_v53  ;;  %v5969_v0 = vcombine.low %v190_v52, %v194_v53 }
  0xd2   :  { %v401_v63 = vld [vmem:[#allocation2 + $0x7e0] sm:$0xff]  ;;  %2575 = vmatpush1.bf16.msra.mxu0 %v6167_v1 }
  0xd3   :  { %v6176_v3 = vcombine.high %v397_v62, %v401_v63  ;;  %v405_v6 = vld [vmem:[#allocation2 + $0x800] sm:$0xff]  ;;  %2535 = vmatprep.subr.bf16.mxu1 %v6048_v2  ;;  %v6175_v10 = vcombine.low %v397_v62, %v401_v63  ;;  %v198_v62 = vld [vmem:[#allocation2 + $0x188] sm:$0xff] }
  0xd4   :  { %v409_v7 = vld [vmem:[#allocation2 + $0x820] sm:$0xff]  ;;  %2536 = vmatpush1.bf16.msra.mxu1 %v6047_v8  ;;  %v202_v63 = vld [vmem:[#allocation2 + $0x1a8] sm:$0xff] }
  0xd5   :  { %v135_v9 = vld [vmem:[%s7853_s0] sm:$0xff]  ;;  %2576 = vmatprep.subr.bf16.mxu0 %v6176_v3  ;;  %v6184_v13 = vcombine.high %v405_v6, %v409_v7  ;;  %v6183_v22 = vcombine.low %v405_v6, %v409_v7  ;;  %2669 = vmatprep.subr.bf16.mxu1 %v5930_v11  ;;  %v5978_v2 = vcombine.high %v198_v62, %v202_v63  ;;  %v206_v6 = vld [vmem:[#allocation2 + $0x1c8] sm:$0xff] }
  0xd6   :  { %v7672_v16 = vpack.c.bf16 %v135_v9, %v135_v9  ;;  %v413_v17 = vld [vmem:[#allocation2 + $0x840] sm:$0xff]  ;;  %2577 = vmatpush1.bf16.msra.mxu0 %v6175_v10  ;;  %v210_v7 = vld [vmem:[#allocation2 + $0x1e8] sm:$0xff]  ;;  %v5977_v8 = vcombine.low %v198_v62, %v202_v63 }
  0xd7   :  { %v417_v18 = vld [vmem:[#allocation2 + $0x860] sm:$0xff]  ;;  %2587 = vmatprep.subr.bf16.mxu0 %v6184_v13  ;;  %v5986_v10 = vcombine.high %v206_v6, %v210_v7 }
  0xd8   :  { %v421_v24 = vld [vmem:[#allocation2 + $0x880] sm:$0xff]  ;;  %v6192_v26 = vcombine.high %v413_v17, %v417_v18  ;;  %2538 = vmatmul.mubr.bf16.vlgmr.msra.gmra.mrb[0].mxu1 %v7672_v16  ;;  %v6191_v31 = vcombine.low %v413_v17, %v417_v18  ;;  %v5985_v17 = vcombine.low %v206_v6, %v210_v7 }
  0xd9   :  { %v425_v25 = vld [vmem:[#allocation2 + $0x8a0] sm:$0xff]  ;;  %2579 = vmatmul.mubr.bf16.vlgmr.msra.gmra.mrb[0].mxu0 %v7677_v21  ;;  %2670 = vmatpush1.bf16.msra.mxu1 %v5929_v20 }
  0xda   :  { %2588 = vmatpush1.bf16.msra.mxu0 %v6183_v22  ;;  %2671 = vmatprep.subr.bf16.mxu1 %v5938_v23  ;;  %v429_v33 = vld [vmem:[#allocation2 + $0x8c0] sm:$0xff]  ;;  %v6200_v35 = vcombine.high %v421_v24, %v425_v25  ;;  %v6199_v39 = vcombine.low %v421_v24, %v425_v25  ;;  %v222_v24 = vld [vmem:[#allocation2 + $0x248] sm:$0xff] }
  0xdb   :  { %v433_v34 = vld [vmem:[#allocation2 + $0x8e0] sm:$0xff]  ;;  %2589 = vmatprep.subr.bf16.mxu0 %v6192_v26  ;;  %2619 = vmatprep.mubr.bf16.mxu0 %v7679_v29  ;;  %v226_v25 = vld [vmem:[#allocation2 + $0x268] sm:$0xff]  ;;  %v5993_v26 = vcombine.low %v214_v14, %v218_v15 }
  0xdc   :  { %2701 = vmatprep.mubr.bf16.mxu1 %v7657_v57  ;;  %v437_v41 = vld [vmem:[#allocation2 + $0x900] sm:$0xff]  ;;  %v6208_v43 = vcombine.high %v429_v33, %v433_v34  ;;  %v6207_v47 = vcombine.low %v429_v33, %v433_v34  ;;  %v6002_v28 = vcombine.high %v222_v24, %v226_v25  ;;  %v230_v33 = vld [vmem:[#allocation2 + $0x288] sm:$0xff] }
  0xdd   :  { %2672 = vmatpush1.bf16.msra.mxu1 %v5937_v30  ;;  %v441_v42 = vld [vmem:[#allocation2 + $0x920] sm:$0xff]  ;;  %v234_v34 = vld [vmem:[#allocation2 + $0x2a8] sm:$0xff] }
  0xde   :  { %2590 = vmatpush1.bf16.msra.mxu0 %v6191_v31  ;;  %2673 = vmatprep.subr.bf16.mxu1 %v5946_v32  ;;  %v445_v49 = vld [vmem:[#allocation2 + $0x940] sm:$0xff]  ;;  %v6216_v51 = vcombine.high %v437_v41, %v441_v42  ;;  %v6215_v55 = vcombine.low %v437_v41, %v441_v42  ;;  %v6010_v37 = vcombine.high %v230_v33, %v234_v34  ;;  %v238_v41 = vld [vmem:[#allocation2 + $0x2c8] sm:$0xff] }
  0xdf   :  { %2591 = vmatprep.subr.bf16.mxu0 %v6200_v35  ;;  %v449_v50 = vld [vmem:[#allocation2 + $0x960] sm:$0xff]  ;;  %v6001_v35 = vcombine.low %v222_v24, %v226_v25  ;;  %v242_v42 = vld [vmem:[#allocation2 + $0x2e8] sm:$0xff] }
  0xe0   :  { %v453_v58 = vld [vmem:[#allocation2 + $0x980] sm:$0xff]  ;;  %v6224_v60 = vcombine.high %v445_v49, %v449_v50  ;;  %v6223_v1 = vcombine.low %v445_v49, %v449_v50  ;;  %v6018_v45 = vcombine.high %v238_v41, %v242_v42  ;;  %v246_v49 = vld [vmem:[#allocation2 + $0x308] sm:$0xff] }
  0xe1   :  { %2674 = vmatpush1.bf16.msra.mxu1 %v5945_v38  ;;  %v457_v59 = vld [vmem:[#allocation2 + $0x9a0] sm:$0xff]  ;;  %v250_v50 = vld [vmem:[#allocation2 + $0x328] sm:$0xff] }
  0xe2   :  { %2592 = vmatpush1.bf16.msra.mxu0 %v6199_v39  ;;  %2675 = vmatprep.subr.bf16.mxu1 %v5954_v40  ;;  %v461_v3 = vld [vmem:[#allocation2 + $0x9c0] sm:$0xff]  ;;  %v6232_v5 = vcombine.high %v453_v58, %v457_v59  ;;  %v6231_v9 = vcombine.low %v453_v58, %v457_v59  ;;  %v6026_v53 = vcombine.high %v246_v49, %v250_v50  ;;  %v254_v58 = vld [vmem:[#allocation2 + $0x348] sm:$0xff] }
  0xe3   :  { %2593 = vmatprep.subr.bf16.mxu0 %v6208_v43  ;;  %v465_v4 = vld [vmem:[#allocation2 + $0x9e0] sm:$0xff]  ;;  %v6009_v43 = vcombine.low %v230_v33, %v234_v34  ;;  %v258_v59 = vld [vmem:[#allocation2 + $0x368] sm:$0xff] }
  0xe4   :  { %v469_v11 = vld [vmem:[#allocation2 + $0xa00] sm:$0xff]  ;;  %v6240_v13 = vcombine.high %v461_v3, %v465_v4  ;;  %v6239_v18 = vcombine.low %v461_v3, %v465_v4  ;;  %v6034_v63 = vcombine.high %v254_v58, %v258_v59  ;;  %v262_v3 = vld [vmem:[#allocation2 + $0x388] sm:$0xff] }
  0xe5   :  { %2676 = vmatpush1.bf16.msra.mxu1 %v5953_v46  ;;  %v473_v12 = vld [vmem:[#allocation2 + $0xa20] sm:$0xff]  ;;  %v266_v4 = vld [vmem:[#allocation2 + $0x3a8] sm:$0xff] }
  0xe6   :  { %2594 = vmatpush1.bf16.msra.mxu0 %v6207_v47  ;;  %2677 = vmatprep.subr.bf16.mxu1 %v5962_v48  ;;  %v477_v20 = vld [vmem:[#allocation2 + $0xa40] sm:$0xff]  ;;  %v6248_v23 = vcombine.high %v469_v11, %v473_v12  ;;  %v6247_v27 = vcombine.low %v469_v11, %v473_v12  ;;  %v6042_v7 = vcombine.high %v262_v3, %v266_v4  ;;  %v270_v11 = vld [vmem:[#allocation2 + $0x3c8] sm:$0xff] }
  0xe7   :  { %2595 = vmatprep.subr.bf16.mxu0 %v6216_v51  ;;  %v481_v22 = vld [vmem:[#allocation2 + $0xa60] sm:$0xff]  ;;  %v6017_v51 = vcombine.low %v238_v41, %v242_v42  ;;  %v274_v12 = vld [vmem:[#allocation2 + $0x3e8] sm:$0xff]  ;;  %v7498_v42 = vmov 0  }
  0xe8   :  { %v485_v30 = vld [vmem:[#allocation2 + $0xa80] sm:$0xff]  ;;  %v6256_v32 = vcombine.high %v477_v20, %v481_v22  ;;  %v6255_v36 = vcombine.low %v477_v20, %v481_v22  ;;  %v6050_v15 = vcombine.high %v270_v11, %v274_v12  ;;  %v6049_v24 = vcombine.low %v270_v11, %v274_v12 }
  0xe9   :  { %2678 = vmatpush1.bf16.msra.mxu1 %v5961_v54  ;;  %v489_v31 = vld [vmem:[#allocation2 + $0xaa0] sm:$0xff] }
  0xea   :  { %2596 = vmatpush1.bf16.msra.mxu0 %v6215_v55  ;;  %2679 = vmatprep.subr.bf16.mxu1 %v5970_v56  ;;  %v493_v38 = vld [vmem:[#allocation2 + $0xac0] sm:$0xff]  ;;  %v6264_v40 = vcombine.high %v485_v30, %v489_v31  ;;  %v6263_v44 = vcombine.low %v485_v30, %v489_v31  ;;  %v534_v31 = vld [vmem:[#allocation2 + $0xc08] sm:$0xff] }
  0xeb   :  { %2597 = vmatprep.subr.bf16.mxu0 %v6224_v60  ;;  %v497_v39 = vld [vmem:[#allocation2 + $0xae0] sm:$0xff]  ;;  %v6025_v60 = vcombine.low %v246_v49, %v250_v50  ;;  %v314_v49 = vld [vmem:[#allocation2 + $0x528] sm:$0xff]  ;;  %v151_v50 = vld [vmem:[#allocation2 + $0x10] sm:$0xff] }
  0xec   :  { %v501_v46 = vld [vmem:[#allocation2 + $0xb00] sm:$0xff]  ;;  %v6272_v48 = vcombine.high %v493_v38, %v497_v39  ;;  %v6271_v52 = vcombine.low %v493_v38, %v497_v39  ;;  %v298_v38 = vld [vmem:[#allocation2 + $0x4a8] sm:$0xff] }
  0xed   :  { %2680 = vmatpush1.bf16.msra.mxu1 %v5969_v0  ;;  %v505_v47 = vld [vmem:[#allocation2 + $0xb20] sm:$0xff] }
  0xee   :  { %2598 = vmatpush1.bf16.msra.mxu0 %v6223_v1  ;;  %2681 = vmatprep.subr.bf16.mxu1 %v5978_v2  ;;  %v509_v54 = vld [vmem:[#allocation2 + $0xb40] sm:$0xff]  ;;  %v6280_v56 = vcombine.high %v501_v46, %v505_v47  ;;  %v6279_v62 = vcombine.low %v501_v46, %v505_v47 }
  0xef   :  { %2599 = vmatprep.subr.bf16.mxu0 %v6232_v5  ;;  %v513_v55 = vld [vmem:[#allocation2 + $0xb60] sm:$0xff]  ;;  %v6033_v5 = vcombine.low %v254_v58, %v258_v59  ;;  %v318_v58 = vld [vmem:[#allocation2 + $0x548] sm:$0xff] }
  0xf0   :  { %v517_v0 = vld [vmem:[#allocation2 + $0xb80] sm:$0xff]  ;;  %v6288_v2 = vcombine.high %v509_v54, %v513_v55  ;;  %v6287_v6 = vcombine.low %v509_v54, %v513_v55  ;;  %v322_v59 = vld [vmem:[#allocation2 + $0x568] sm:$0xff] }
  0xf1   :  { %2682 = vmatpush1.bf16.msra.mxu1 %v5977_v8  ;;  %v521_v1 = vld [vmem:[#allocation2 + $0xba0] sm:$0xff] }
  0xf2   :  { %2600 = vmatpush1.bf16.msra.mxu0 %v6231_v9  ;;  %2683 = vmatprep.subr.bf16.mxu1 %v5986_v10  ;;  %v525_v8 = vld [vmem:[#allocation2 + $0xbc0] sm:$0xff]  ;;  %v6296_v10 = vcombine.high %v517_v0, %v521_v1  ;;  %v6295_v14 = vcombine.low %v517_v0, %v521_v1  ;;  %v163_v0 = vld [vmem:[#allocation2 + $0x70] sm:$0xff]  ;;  %v326_v1 = vld [vmem:[#allocation2 + $0x588] sm:$0xff] }
  0xf3   :  { %2601 = vmatprep.subr.bf16.mxu0 %v6240_v13  ;;  %v529_v9 = vld [vmem:[#allocation2 + $0xbe0] sm:$0xff]  ;;  %v6041_v13 = vcombine.low %v262_v3, %v266_v4  ;;  %v6097_v3 = vcombine.low %v318_v58, %v322_v59 }
  0xf4   :  { %v533_v20 = vld [vmem:[#allocation2 + $0xc00] sm:$0xff]  ;;  %v6303_v25 = vcombine.low %v525_v8, %v529_v9 }
  0xf5   :  { %2684 = vmatpush1.bf16.msra.mxu1 %v5985_v17  ;;  %v278_v17 = vld [vmem:[#allocation2 + $0x408] sm:$0xff]  ;;  %v537_v22 = vld [vmem:[#allocation2 + $0xc20] sm:$0xff] }
  0xf6   :  { %2602 = vmatpush1.bf16.msra.mxu0 %v6239_v18  ;;  %2685 = vmatprep.subr.bf16.mxu1 %v5994_v19  ;;  %v282_v18 = vld [vmem:[#allocation2 + $0x428] sm:$0xff]  ;;  %v6304_v19 = vcombine.high %v525_v8, %v529_v9  ;;  %v6312_v30 = vcombine.high %v533_v20, %v537_v22 }
  0xf7   :  { %2603 = vmatprep.subr.bf16.mxu0 %v6248_v23  ;;  %v139_v23 = vld [vmem:[%s7853_s0 + $0x20] sm:$0xff]  ;;  %v6057_v34 = vcombine.low %v278_v17, %v282_v18  ;;  %v334_v9 = vld [vmem:[#allocation2 + $0x5c8] sm:$0xff] }
  0xf8   :  { %v7688_v33 = vpack.c.bf16 %v139_v23, %v139_v23 }
  0xf9   :  { %2686 = vmatpush1.bf16.msra.mxu1 %v5993_v26  ;;  %v6058_v26 = vcombine.high %v278_v17, %v282_v18  ;;  %v342_v18 = vld [vmem:[#allocation2 + $0x608] sm:$0xff] }
  0xfa   :  { %2604 = vmatpush1.bf16.msra.mxu0 %v6247_v27  ;;  %2687 = vmatprep.subr.bf16.mxu1 %v6002_v28  ;;  %v286_v27 = vld [vmem:[#allocation2 + $0x448] sm:$0xff] }
  0xfb   :  { %2605 = vmatprep.subr.bf16.mxu0 %v6256_v32  ;;  %v290_v28 = vld [vmem:[#allocation2 + $0x468] sm:$0xff] }
  0xfc   :  { %v538_v32 = vld [vmem:[#allocation2 + $0xc28] sm:$0xff] }
  0xfd   :  { %2688 = vmatpush1.bf16.msra.mxu1 %v6001_v35  ;;  %v6066_v35 = vcombine.high %v286_v27, %v290_v28  ;;  %v6314_v39 = vcombine.high %v534_v31, %v538_v32  ;;  %v6313_v54 = vcombine.low %v534_v31, %v538_v32 }
  0xfe   :  { %2606 = vmatpush1.bf16.msra.mxu0 %v6255_v36  ;;  %2689 = vmatprep.subr.bf16.mxu1 %v6010_v37  ;;  %v6311_v36 = vcombine.low %v533_v20, %v537_v22  ;;  %v294_v37 = vld [vmem:[#allocation2 + $0x488] sm:$0xff] }
  0xff   :  { %2607 = vmatprep.subr.bf16.mxu0 %v6264_v40  ;;  %v6065_v40 = vcombine.low %v286_v27, %v290_v28  ;;  %v6074_v41 = vcombine.high %v294_v37, %v298_v38  ;;  %v6073_v46 = vcombine.low %v294_v37, %v298_v38  ;;  %v350_v27 = vld [vmem:[#allocation2 + $0x648] sm:$0xff] }
 0x100   :  { %v354_v28 = vld [vmem:[#allocation2 + $0x668] sm:$0xff] }
 0x101   :  { %2690 = vmatpush1.bf16.msra.mxu1 %v6009_v43  ;;  %v302_v43 = vld [vmem:[#allocation2 + $0x4c8] sm:$0xff]  ;;  %v6130_v32 = vcombine.high %v350_v27, %v354_v28 }
 0x102   :  { %2608 = vmatpush1.bf16.msra.mxu0 %v6263_v44  ;;  %2691 = vmatprep.subr.bf16.mxu1 %v6018_v45  ;;  %v306_v44 = vld [vmem:[#allocation2 + $0x4e8] sm:$0xff]  ;;  %v141_v45 = vld [vmem:[%s7853_s0 + $0x30] sm:$0xff]  ;;  %s7500_s0 = smov [#allocation16]  }
 0x103   :  { %2609 = vmatprep.subr.bf16.mxu0 %v6272_v48  ;;  %v6082_v47 = vcombine.high %v302_v43, %v306_v44  ;;  %v310_v48 = vld [vmem:[#allocation2 + $0x508] sm:$0xff]  ;;  %s5914_s24 = sshll.u32 %s7500_s0, 4  ;;  %s5915_s24 = int_to_ptr.vmem [resolvable:$true] %s5914_s24 }
 0x104   :  { %v6090_v55 = vcombine.high %v310_v48, %v314_v49  ;;  %v358_v37 = vld [vmem:[#allocation2 + $0x688] sm:$0xff]  ;;  %s7448_s25 = scalar_lea.vmem %s5915_s24, 128  ;;  %p7453_p9 = scmp.lt.s32.totalorder %s5915_s24, %s5915_s24 }
 0x105   :  { %2692 = vmatpush1.bf16.msra.mxu1 %v6017_v51  ;;  %v155_v51 = vld [vmem:[#allocation2 + $0x30] sm:$0xff]  ;;  %v362_v38 = vld [vmem:[#allocation2 + $0x6a8] sm:$0xff]  ;;  %p7449_p8 = scmp.ne.s32.totalorder %s5915_s24, %s7448_s25  ;;  %p7454_p10 = scmp.lt.s32.totalorder %s7448_s25, %s7448_s25 }
 0x106   :  { %2610 = vmatpush1.bf16.msra.mxu0 %v6271_v52  ;;  %2693 = vmatprep.subr.bf16.mxu1 %v6026_v53  ;;  %v7697_v52 = vpack.c.bf16 %v141_v45, %v141_v45  ;;  %v6081_v53 = vcombine.low %v302_v43, %v306_v44  ;;  %v5931_v4 = vcombine.low %v151_v50, %v155_v51  ;;  %v199_v43 = vld [vmem:[#allocation2 + $0x190] sm:$0xff] }
 0x107   :  { %2611 = vmatprep.subr.bf16.mxu0 %v6280_v56  ;;  %v5932_v56 = vcombine.high %v151_v50, %v155_v51  ;;  %v203_v44 = vld [vmem:[#allocation2 + $0x1b0] sm:$0xff]  ;;  %p7455_p11 = por %p7454_p10, %p7453_p9 }
 0x108   :  { %v207_v51 = vld [vmem:[#allocation2 + $0x1d0] sm:$0xff] }
 0x109   :  { %2694 = vmatpush1.bf16.msra.mxu1 %v6025_v60  ;;  %v6089_v60 = vcombine.low %v310_v48, %v314_v49  ;;  %v6137_v48 = vcombine.low %v358_v37, %v362_v38  ;;  %p7456_p12 = pnand %p7455_p11, %p7449_p8 }
 0x10a   :  { %2612 = vmatpush1.bf16.msra.mxu0 %v6279_v62  ;;  %2695 = vmatprep.subr.bf16.mxu1 %v6034_v63  ;;  %v6098_v62 = vcombine.high %v318_v58, %v322_v59  ;;  %v159_v63 = vld [vmem:[#allocation2 + $0x50] sm:$0xff]  ;;  %v5979_v59 = vcombine.low %v199_v43, %v203_v44 }
 0x10b   :  { %2613 = vmatprep.subr.bf16.mxu0 %v6288_v2  ;;  %v330_v2 = vld [vmem:[#allocation2 + $0x5a8] sm:$0xff]  ;;  %v5940_v8 = vcombine.high %v159_v63, %v163_v0  ;;  %v5939_v12 = vcombine.low %v159_v63, %v163_v0  ;;  %v219_v63 = vld [vmem:[#allocation2 + $0x230] sm:$0xff] }
 0x10c   :  { %v6105_v11 = vcombine.low %v326_v1, %v330_v2 }
 0x10d   :  { %2696 = vmatpush1.bf16.msra.mxu1 %v6033_v5  ;;  %v6106_v5 = vcombine.high %v326_v1, %v330_v2  ;;  %v382_v1 = vld [vmem:[#allocation2 + $0x748] sm:$0xff] }
 0x10e   :  { %2614 = vmatpush1.bf16.msra.mxu0 %v6287_v6  ;;  %2697 = vmatprep.subr.bf16.mxu1 %v6042_v7  ;;  %v167_v6 = vld [vmem:[#allocation2 + $0x90] sm:$0xff]  ;;  %v386_v2 = vld [vmem:[#allocation2 + $0x768] sm:$0xff] }
 0x10f   :  { %2615 = vmatprep.subr.bf16.mxu0 %v6296_v10  ;;  %v171_v7 = vld [vmem:[#allocation2 + $0xb0] sm:$0xff]  ;;  %v338_v10 = vld [vmem:[#allocation2 + $0x5e8] sm:$0xff] }
 0x110   :  { %v5948_v17 = vcombine.high %v167_v6, %v171_v7  ;;  %v6113_v20 = vcombine.low %v334_v9, %v338_v10  ;;  %v5947_v22 = vcombine.low %v167_v6, %v171_v7  ;;  %v223_v6 = vld [vmem:[#allocation2 + $0x250] sm:$0xff] }
 0x111   :  { %2698 = vmatpush1.bf16.msra.mxu1 %v6041_v13  ;;  %v6114_v13 = vcombine.high %v334_v9, %v338_v10  ;;  %v227_v7 = vld [vmem:[#allocation2 + $0x270] sm:$0xff]  ;;  %v390_v9 = vld [vmem:[#allocation2 + $0x788] sm:$0xff] }
 0x112   :  { %2616 = vmatpush1.bf16.msra.mxu0 %v6295_v14  ;;  %2699 = vmatprep.subr.bf16.mxu1 %v6050_v15  ;;  %v175_v14 = vld [vmem:[#allocation2 + $0xd0] sm:$0xff]  ;;  %v394_v10 = vld [vmem:[#allocation2 + $0x7a8] sm:$0xff] }
 0x113   :  { %2617 = vmatprep.subr.bf16.mxu0 %v6304_v19  ;;  %v179_v15 = vld [vmem:[#allocation2 + $0xf0] sm:$0xff]  ;;  %v346_v19 = vld [vmem:[#allocation2 + $0x628] sm:$0xff] }
 0x114   :  { %v6122_v23 = vcombine.high %v342_v18, %v346_v19  ;;  %v5955_v31 = vcombine.low %v175_v14, %v179_v15 }
 0x115   :  { %2700 = vmatpush1.bf16.msra.mxu1 %v6049_v24  ;;  %v183_v24 = vld [vmem:[#allocation2 + $0x110] sm:$0xff] }
 0x116   :  { %2618 = vmatpush1.bf16.msra.mxu0 %v6303_v25  ;;  %2710 = vmatprep.subr.bf16.mxu1 %v6058_v26  ;;  %v187_v25 = vld [vmem:[#allocation2 + $0x130] sm:$0xff]  ;;  %v5956_v26 = vcombine.high %v175_v14, %v179_v15 }
 0x117   :  { %2628 = vmatprep.subr.bf16.mxu0 %v6312_v30  ;;  %v6121_v30 = vcombine.low %v342_v18, %v346_v19  ;;  %v231_v14 = vld [vmem:[#allocation2 + $0x290] sm:$0xff]  ;;  %v398_v18 = vld [vmem:[#allocation2 + $0x7c8] sm:$0xff] }
 0x118   :  { %2702 = vmatmul.mubr.bf16.vlgmr.msra.gmra.mrb[4].mxu1 %v7672_v16  ;;  %v235_v15 = vld [vmem:[#allocation2 + $0x2b0] sm:$0xff]  ;;  %v402_v19 = vld [vmem:[#allocation2 + $0x7e8] sm:$0xff] }
 0x119   :  { %2620 = vmatmul.mubr.bf16.vlgmr.msra.gmra.mrb[0].mxu0 %v7688_v33  ;;  %2711 = vmatpush1.bf16.msra.mxu1 %v6057_v34  ;;  %v191_v34 = vld [vmem:[#allocation2 + $0x150] sm:$0xff] }
 0x11a   :  { %2712 = vmatprep.subr.bf16.mxu1 %v6066_v35  ;;  %2629 = vmatpush1.bf16.msra.mxu0 %v6311_v36  ;;  %v195_v35 = vld [vmem:[#allocation2 + $0x170] sm:$0xff]  ;;  %v5964_v36 = vcombine.high %v183_v24, %v187_v25 }
 0x11b   :  { %2660 = vmatprep.mubr.bf16.mxu0 %v7498_v42  ;;  %2792 = vmatprep.subr.bf16.mxu0 %v6314_v39  ;;  %v6129_v39 = vcombine.low %v350_v27, %v354_v28  ;;  %v5972_v45 = vcombine.high %v191_v34, %v195_v35  ;;  %v5971_v49 = vcombine.low %v191_v34, %v195_v35  ;;  %v406_v27 = vld [vmem:[#allocation2 + $0x808] sm:$0xff]  ;;  %v247_v34 = vld [vmem:[#allocation2 + $0x310] sm:$0xff] }
 0x11c   :  { %2742 = vmatprep.mubr.bf16.mxu1 %v7662_v61  ;;  %v410_v28 = vld [vmem:[#allocation2 + $0x828] sm:$0xff]  ;;  %v251_v35 = vld [vmem:[#allocation2 + $0x330] sm:$0xff] }
 0x11d   :  { %2713 = vmatpush1.bf16.msra.mxu1 %v6065_v40  ;;  %v5963_v40 = vcombine.low %v183_v24, %v187_v25  ;;  %v239_v24 = vld [vmem:[#allocation2 + $0x2d0] sm:$0xff] }
 0x11e   :  { %2714 = vmatprep.subr.bf16.mxu1 %v6074_v41  ;;  %v6138_v41 = vcombine.high %v358_v37, %v362_v38  ;;  %v243_v25 = vld [vmem:[#allocation2 + $0x2f0] sm:$0xff]  ;;  %v414_v37 = vld [vmem:[#allocation2 + $0x848] sm:$0xff] }
 0x11f   :  { %v418_v38 = vld [vmem:[#allocation2 + $0x868] sm:$0xff] }
 0x121   :  { %2715 = vmatpush1.bf16.msra.mxu1 %v6073_v46  ;;  %v366_v46 = vld [vmem:[#allocation2 + $0x6c8] sm:$0xff] }
 0x122   :  { %2716 = vmatprep.subr.bf16.mxu1 %v6082_v47  ;;  %v370_v47 = vld [vmem:[#allocation2 + $0x6e8] sm:$0xff] }
 0x123   :  { %v6146_v50 = vcombine.high %v366_v46, %v370_v47  ;;  %v6145_v58 = vcombine.low %v366_v46, %v370_v47  ;;  %v422_v46 = vld [vmem:[#allocation2 + $0x888] sm:$0xff] }
 0x124   :  { %v426_v47 = vld [vmem:[#allocation2 + $0x8a8] sm:$0xff] }
 0x125   :  { %6319 = vmatmul.mubr.msk.bf16.vlgmr.msra.gmra.mrb[0].mxu0 %vm2501_vm0, %v7697_v52  ;;  %2717 = vmatpush1.bf16.msra.mxu1 %v6081_v53  ;;  %v211_v53 = vld [vmem:[#allocation2 + $0x1f0] sm:$0xff] }
 0x126   :  { %2718 = vmatprep.subr.bf16.mxu1 %v6090_v55  ;;  %2793 = vmatpush1.bf16.msra.mxu0 %v6313_v54  ;;  %v5980_v54 = vcombine.high %v199_v43, %v203_v44  ;;  %v374_v55 = vld [vmem:[#allocation2 + $0x708] sm:$0xff]  ;;  %v5988_v0 = vcombine.high %v207_v51, %v211_v53  ;;  %v255_v43 = vld [vmem:[#allocation2 + $0x350] sm:$0xff] }
 0x127   :  { %2824 = vmatprep.mubr.bf16.mxu0 %v7498_v42  ;;  %2833 = vmatprep.subr.bf16.mxu0 %v5932_v56  ;;  %v378_v56 = vld [vmem:[#allocation2 + $0x728] sm:$0xff]  ;;  %v259_v44 = vld [vmem:[#allocation2 + $0x370] sm:$0xff] }
 0x129   :  { %2719 = vmatpush1.bf16.msra.mxu1 %v6089_v60  ;;  %v6154_v60 = vcombine.high %v374_v55, %v378_v56 }
 0x12a   :  { %2720 = vmatprep.subr.bf16.mxu1 %v6098_v62  ;;  %v215_v62 = vld [vmem:[#allocation2 + $0x210] sm:$0xff] }
 0x12d   :  { %6320 = vmatmul.mubr.msk.bf16.vlgmr.msra.gmra.mrb[4].mxu0 %vm2501_vm0, %v7697_v52  ;;  %2721 = vmatpush1.bf16.msra.mxu1 %v6097_v3  ;;  %v6153_v3 = vcombine.low %v374_v55, %v378_v56  ;;  %v430_v55 = vld [vmem:[#allocation2 + $0x8c8] sm:$0xff] }
 0x12e   :  { %2834 = vmatpush1.bf16.msra.mxu0 %v5931_v4  ;;  %2722 = vmatprep.subr.bf16.mxu1 %v6106_v5  ;;  %v5987_v4 = vcombine.low %v207_v51, %v211_v53  ;;  %v6162_v5 = vcombine.high %v382_v1, %v386_v2  ;;  %v263_v51 = vld [vmem:[#allocation2 + $0x390] sm:$0xff]  ;;  %v434_v56 = vld [vmem:[#allocation2 + $0x8e8] sm:$0xff] }
 0x12f   :  { %2835 = vmatprep.subr.bf16.mxu0 %v5940_v8  ;;  %2865 = vmatprep.mubr.bf16.mxu0 %v7657_v57  ;;  %v5996_v8 = vcombine.high %v215_v62, %v219_v63  ;;  %v267_v53 = vld [vmem:[#allocation2 + $0x3b0] sm:$0xff] }
 0x131   :  { %2723 = vmatpush1.bf16.msra.mxu1 %v6105_v11  ;;  %v6161_v11 = vcombine.low %v382_v1, %v386_v2  ;;  %v438_v1 = vld [vmem:[#allocation2 + $0x908] sm:$0xff] }
 0x132   :  { %2836 = vmatpush1.bf16.msra.mxu0 %v5939_v12  ;;  %2724 = vmatprep.subr.bf16.mxu1 %v6114_v13  ;;  %v5995_v12 = vcombine.low %v215_v62, %v219_v63  ;;  %v6170_v13 = vcombine.high %v390_v9, %v394_v10  ;;  %v271_v62 = vld [vmem:[#allocation2 + $0x3d0] sm:$0xff]  ;;  %v442_v2 = vld [vmem:[#allocation2 + $0x928] sm:$0xff] }
 0x133   :  { %2837 = vmatprep.subr.bf16.mxu0 %v5948_v17  ;;  %v6004_v17 = vcombine.high %v223_v6, %v227_v7  ;;  %v275_v63 = vld [vmem:[#allocation2 + $0x3f0] sm:$0xff] }
 0x135   :  { %2725 = vmatpush1.bf16.msra.mxu1 %v6113_v20  ;;  %v6169_v20 = vcombine.low %v390_v9, %v394_v10  ;;  %v446_v9 = vld [vmem:[#allocation2 + $0x948] sm:$0xff] }
 0x136   :  { %2838 = vmatpush1.bf16.msra.mxu0 %v5947_v22  ;;  %2726 = vmatprep.subr.bf16.mxu1 %v6122_v23  ;;  %v6003_v22 = vcombine.low %v223_v6, %v227_v7  ;;  %v6178_v23 = vcombine.high %v398_v18, %v402_v19  ;;  %v279_v6 = vld [vmem:[#allocation2 + $0x410] sm:$0xff]  ;;  %v450_v10 = vld [vmem:[#allocation2 + $0x968] sm:$0xff] }
 0x137   :  { %2839 = vmatprep.subr.bf16.mxu0 %v5956_v26  ;;  %v6012_v26 = vcombine.high %v231_v14, %v235_v15  ;;  %v283_v7 = vld [vmem:[#allocation2 + $0x430] sm:$0xff] }
 0x139   :  { %2727 = vmatpush1.bf16.msra.mxu1 %v6121_v30  ;;  %v6177_v30 = vcombine.low %v398_v18, %v402_v19  ;;  %v454_v18 = vld [vmem:[#allocation2 + $0x988] sm:$0xff] }
 0x13a   :  { %2840 = vmatpush1.bf16.msra.mxu0 %v5955_v31  ;;  %2728 = vmatprep.subr.bf16.mxu1 %v6130_v32  ;;  %v6011_v31 = vcombine.low %v231_v14, %v235_v15  ;;  %v6186_v32 = vcombine.high %v406_v27, %v410_v28  ;;  %v287_v14 = vld [vmem:[#allocation2 + $0x450] sm:$0xff]  ;;  %v458_v19 = vld [vmem:[#allocation2 + $0x9a8] sm:$0xff] }
 0x13b   :  { %2841 = vmatprep.subr.bf16.mxu0 %v5964_v36  ;;  %v6020_v36 = vcombine.high %v239_v24, %v243_v25  ;;  %v291_v15 = vld [vmem:[#allocation2 + $0x470] sm:$0xff] }
 0x13d   :  { %2729 = vmatpush1.bf16.msra.mxu1 %v6129_v39  ;;  %v6185_v39 = vcombine.low %v406_v27, %v410_v28  ;;  %v462_v27 = vld [vmem:[#allocation2 + $0x9c8] sm:$0xff] }
 0x13e   :  { %2842 = vmatpush1.bf16.msra.mxu0 %v5963_v40  ;;  %2730 = vmatprep.subr.bf16.mxu1 %v6138_v41  ;;  %v6019_v40 = vcombine.low %v239_v24, %v243_v25  ;;  %v6194_v41 = vcombine.high %v414_v37, %v418_v38  ;;  %v295_v24 = vld [vmem:[#allocation2 + $0x490] sm:$0xff]  ;;  %v466_v28 = vld [vmem:[#allocation2 + $0x9e8] sm:$0xff] }
 0x13f   :  { %2843 = vmatprep.subr.bf16.mxu0 %v5972_v45  ;;  %v6028_v45 = vcombine.high %v247_v34, %v251_v35  ;;  %v299_v25 = vld [vmem:[#allocation2 + $0x4b0] sm:$0xff] }
 0x141   :  { %2731 = vmatpush1.bf16.msra.mxu1 %v6137_v48  ;;  %v6193_v48 = vcombine.low %v414_v37, %v418_v38  ;;  %v307_v37 = vld [vmem:[#allocation2 + $0x4f0] sm:$0xff]  ;;  %v6076_v38 = vcombine.high %v295_v24, %v299_v25 }
 0x142   :  { %2844 = vmatpush1.bf16.msra.mxu0 %v5971_v49  ;;  %2732 = vmatprep.subr.bf16.mxu1 %v6146_v50  ;;  %v6027_v49 = vcombine.low %v247_v34, %v251_v35  ;;  %v6202_v50 = vcombine.high %v422_v46, %v426_v47  ;;  %v6067_v34 = vcombine.low %v287_v14, %v291_v15 }
 0x143   :  { %2845 = vmatprep.subr.bf16.mxu0 %v5980_v54  ;;  %v6036_v54 = vcombine.high %v255_v43, %v259_v44  ;;  %v6242_v35 = vcombine.high %v462_v27, %v466_v28 }
 0x145   :  { %2733 = vmatpush1.bf16.msra.mxu1 %v6145_v58  ;;  %v6201_v58 = vcombine.low %v422_v46, %v426_v47  ;;  %v315_v47 = vld [vmem:[#allocation2 + $0x530] sm:$0xff] }
 0x146   :  { %2846 = vmatpush1.bf16.msra.mxu0 %v5979_v59  ;;  %2734 = vmatprep.subr.bf16.mxu1 %v6154_v60  ;;  %v6035_v59 = vcombine.low %v255_v43, %v259_v44  ;;  %v6210_v60 = vcombine.high %v430_v55, %v434_v56  ;;  %v311_v44 = vld [vmem:[#allocation2 + $0x510] sm:$0xff] }
 0x147   :  { %2847 = vmatprep.subr.bf16.mxu0 %v5988_v0  ;;  %v6044_v0 = vcombine.high %v263_v51, %v267_v53 }
 0x149   :  { %2735 = vmatpush1.bf16.msra.mxu1 %v6153_v3  ;;  %v6209_v3 = vcombine.low %v430_v55, %v434_v56  ;;  %v486_v55 = vld [vmem:[#allocation2 + $0xa88] sm:$0xff] }
 0x14a   :  { %2848 = vmatpush1.bf16.msra.mxu0 %v5987_v4  ;;  %2736 = vmatprep.subr.bf16.mxu1 %v6162_v5  ;;  %v6043_v4 = vcombine.low %v263_v51, %v267_v53  ;;  %v6218_v5 = vcombine.high %v438_v1, %v442_v2  ;;  %v319_v51 = vld [vmem:[#allocation2 + $0x550] sm:$0xff]  ;;  %v490_v56 = vld [vmem:[#allocation2 + $0xaa8] sm:$0xff] }
 0x14b   :  { %2849 = vmatprep.subr.bf16.mxu0 %v5996_v8  ;;  %v6052_v8 = vcombine.high %v271_v62, %v275_v63  ;;  %v323_v53 = vld [vmem:[#allocation2 + $0x570] sm:$0xff] }
 0x14d   :  { %2737 = vmatpush1.bf16.msra.mxu1 %v6161_v11  ;;  %v6217_v11 = vcombine.low %v438_v1, %v442_v2  ;;  %v494_v1 = vld [vmem:[#allocation2 + $0xac8] sm:$0xff] }
 0x14e   :  { %2850 = vmatpush1.bf16.msra.mxu0 %v5995_v12  ;;  %2738 = vmatprep.subr.bf16.mxu1 %v6170_v13  ;;  %v6051_v12 = vcombine.low %v271_v62, %v275_v63  ;;  %v6226_v13 = vcombine.high %v446_v9, %v450_v10  ;;  %v327_v62 = vld [vmem:[#allocation2 + $0x590] sm:$0xff]  ;;  %v498_v2 = vld [vmem:[#allocation2 + $0xae8] sm:$0xff] }
 0x14f   :  { %2851 = vmatprep.subr.bf16.mxu0 %v6004_v17  ;;  %v6060_v17 = vcombine.high %v279_v6, %v283_v7  ;;  %v331_v63 = vld [vmem:[#allocation2 + $0x5b0] sm:$0xff] }
 0x151   :  { %2739 = vmatpush1.bf16.msra.mxu1 %v6169_v20  ;;  %v6225_v20 = vcombine.low %v446_v9, %v450_v10  ;;  %v335_v9 = vld [vmem:[#allocation2 + $0x5d0] sm:$0xff] }
 0x152   :  { %2852 = vmatpush1.bf16.msra.mxu0 %v6003_v22  ;;  %2740 = vmatprep.subr.bf16.mxu1 %v6178_v23  ;;  %v6059_v22 = vcombine.low %v279_v6, %v283_v7  ;;  %v6234_v23 = vcombine.high %v454_v18, %v458_v19  ;;  %v502_v6 = vld [vmem:[#allocation2 + $0xb08] sm:$0xff]  ;;  %v6108_v7 = vcombine.high %v327_v62, %v331_v63  ;;  %v339_v10 = vld [vmem:[#allocation2 + $0x5f0] sm:$0xff] }
 0x153   :  { %2853 = vmatprep.subr.bf16.mxu0 %v6012_v26  ;;  %v6068_v26 = vcombine.high %v287_v14, %v291_v15  ;;  %v6116_v14 = vcombine.high %v335_v9, %v339_v10  ;;  %v510_v15 = vld [vmem:[#allocation2 + $0xb48] sm:$0xff] }
 0x155   :  { %2741 = vmatpush1.bf16.msra.mxu1 %v6177_v30  ;;  %v6233_v30 = vcombine.low %v454_v18, %v458_v19  ;;  %v343_v18 = vld [vmem:[#allocation2 + $0x610] sm:$0xff] }
 0x156   :  { %2854 = vmatpush1.bf16.msra.mxu0 %v6011_v31  ;;  %2751 = vmatprep.subr.bf16.mxu1 %v6186_v32  ;;  %v470_v31 = vld [vmem:[#allocation2 + $0xa08] sm:$0xff]  ;;  %v347_v19 = vld [vmem:[#allocation2 + $0x630] sm:$0xff] }
 0x157   :  { %2855 = vmatprep.subr.bf16.mxu0 %v6020_v36  ;;  %v474_v32 = vld [vmem:[#allocation2 + $0xa28] sm:$0xff]  ;;  %v303_v36 = vld [vmem:[#allocation2 + $0x4d0] sm:$0xff] }
 0x158   :  { %2743 = vmatmul.mubr.bf16.vlgmr.msra.gmra.mrb[4].mxu1 %v7677_v21  ;;  %v6250_v43 = vcombine.high %v470_v31, %v474_v32  ;;  %v6084_v46 = vcombine.high %v303_v36, %v307_v37 }
 0x159   :  { %2752 = vmatpush1.bf16.msra.mxu1 %v6185_v39  ;;  %2783 = vmatprep.mubr.bf16.mxu1 %v7679_v29  ;;  %v6241_v39 = vcombine.low %v462_v27, %v466_v28  ;;  %v351_v27 = vld [vmem:[#allocation2 + $0x650] sm:$0xff] }
 0x15a   :  { %2856 = vmatpush1.bf16.msra.mxu0 %v6019_v40  ;;  %2753 = vmatprep.subr.bf16.mxu1 %v6194_v41  ;;  %v478_v40 = vld [vmem:[#allocation2 + $0xa48] sm:$0xff]  ;;  %v6075_v41 = vcombine.low %v295_v24, %v299_v25  ;;  %v6124_v24 = vcombine.high %v343_v18, %v347_v19  ;;  %v355_v28 = vld [vmem:[#allocation2 + $0x670] sm:$0xff] }
 0x15b   :  { %2857 = vmatprep.subr.bf16.mxu0 %v6028_v45  ;;  %v482_v45 = vld [vmem:[#allocation2 + $0xa68] sm:$0xff] }
 0x15c   :  { %v518_v25 = vld [vmem:[#allocation2 + $0xb88] sm:$0xff] }
 0x15d   :  { %2754 = vmatpush1.bf16.msra.mxu1 %v6193_v48  ;;  %v6249_v48 = vcombine.low %v470_v31, %v474_v32  ;;  %v6123_v31 = vcombine.low %v343_v18, %v347_v19  ;;  %v403_v18 = vld [vmem:[#allocation2 + $0x7f0] sm:$0xff] }
 0x15e   :  { %2858 = vmatpush1.bf16.msra.mxu0 %v6027_v49  ;;  %2755 = vmatprep.subr.bf16.mxu1 %v6202_v50  ;;  %v6083_v49 = vcombine.low %v303_v36, %v307_v37  ;;  %v6258_v50 = vcombine.high %v478_v40, %v482_v45  ;;  %v530_v36 = vld [vmem:[#allocation2 + $0xbe8] sm:$0xff]  ;;  %v359_v37 = vld [vmem:[#allocation2 + $0x690] sm:$0xff] }
 0x15f   :  { %2859 = vmatprep.subr.bf16.mxu0 %v6036_v54  ;;  %v6092_v54 = vcombine.high %v311_v44, %v315_v47 }
 0x161   :  { %2756 = vmatpush1.bf16.msra.mxu1 %v6201_v58  ;;  %v6257_v58 = vcombine.low %v478_v40, %v482_v45  ;;  %v6131_v40 = vcombine.low %v351_v27, %v355_v28  ;;  %v156_v45 = vld [vmem:[#allocation2 + $0x38] sm:$0xff] }
 0x162   :  { %2860 = vmatpush1.bf16.msra.mxu0 %v6035_v59  ;;  %2757 = vmatprep.subr.bf16.mxu1 %v6210_v60  ;;  %v6091_v59 = vcombine.low %v311_v44, %v315_v47  ;;  %v6266_v60 = vcombine.high %v486_v55, %v490_v56  ;;  %v152_v44 = vld [vmem:[#allocation2 + $0x18] sm:$0xff]  ;;  %v371_v47 = vld [vmem:[#allocation2 + $0x6f0] sm:$0xff] }
 0x163   :  { %2861 = vmatprep.subr.bf16.mxu0 %v6044_v0  ;;  %v6100_v0 = vcombine.high %v319_v51, %v323_v53 }
 0x165   :  { %2758 = vmatpush1.bf16.msra.mxu1 %v6209_v3  ;;  %v6265_v3 = vcombine.low %v486_v55, %v490_v56  ;;  %v375_v55 = vld [vmem:[#allocation2 + $0x710] sm:$0xff] }
 0x166   :  { %2862 = vmatpush1.bf16.msra.mxu0 %v6043_v4  ;;  %2759 = vmatprep.subr.bf16.mxu1 %v6218_v5  ;;  %v6099_v4 = vcombine.low %v319_v51, %v323_v53  ;;  %v6274_v5 = vcombine.high %v494_v1, %v498_v2  ;;  %v160_v53 = vld [vmem:[#allocation2 + $0x58] sm:$0xff]  ;;  %v379_v56 = vld [vmem:[#allocation2 + $0x730] sm:$0xff] }
 0x167   :  { %2863 = vmatprep.subr.bf16.mxu0 %v6052_v8  ;;  %v506_v8 = vld [vmem:[#allocation2 + $0xb28] sm:$0xff] }
 0x169   :  { %2760 = vmatpush1.bf16.msra.mxu1 %v6217_v11  ;;  %v6273_v11 = vcombine.low %v494_v1, %v498_v2  ;;  %v383_v1 = vld [vmem:[#allocation2 + $0x750] sm:$0xff] }
 0x16a   :  { %2864 = vmatpush1.bf16.msra.mxu0 %v6051_v12  ;;  %2761 = vmatprep.subr.bf16.mxu1 %v6226_v13  ;;  %v6107_v12 = vcombine.low %v327_v62, %v331_v63  ;;  %v6282_v13 = vcombine.high %v502_v6, %v506_v8  ;;  %v6156_v62 = vcombine.high %v375_v55, %v379_v56  ;;  %v168_v63 = vld [vmem:[#allocation2 + $0x98] sm:$0xff]  ;;  %v387_v2 = vld [vmem:[#allocation2 + $0x770] sm:$0xff] }
 0x16b   :  { %2874 = vmatprep.subr.bf16.mxu0 %v6060_v17  ;;  %v514_v17 = vld [vmem:[#allocation2 + $0xb68] sm:$0xff] }
 0x16d   :  { %2866 = vmatmul.mubr.bf16.vlgmr.msra.gmra.mrb[8].mxu0 %v7672_v16  ;;  %2762 = vmatpush1.bf16.msra.mxu1 %v6225_v20  ;;  %v6281_v20 = vcombine.low %v502_v6, %v506_v8  ;;  %v6164_v6 = vcombine.high %v383_v1, %v387_v2  ;;  %v180_v8 = vld [vmem:[#allocation2 + $0xf8] sm:$0xff] }
 0x16e   :  { %2875 = vmatpush1.bf16.msra.mxu0 %v6059_v22  ;;  %2763 = vmatprep.subr.bf16.mxu1 %v6234_v23  ;;  %v6115_v22 = vcombine.low %v335_v9, %v339_v10  ;;  %v6290_v23 = vcombine.high %v510_v15, %v514_v17  ;;  %v391_v9 = vld [vmem:[#allocation2 + $0x790] sm:$0xff] }
 0x16f   :  { %2876 = vmatprep.subr.bf16.mxu0 %v6068_v26  ;;  %2906 = vmatprep.mubr.bf16.mxu0 %v7662_v61  ;;  %v522_v26 = vld [vmem:[#allocation2 + $0xba8] sm:$0xff]  ;;  %v395_v10 = vld [vmem:[#allocation2 + $0x7b0] sm:$0xff] }
 0x170   :  { %v6298_v32 = vcombine.high %v518_v25, %v522_v26 }
 0x171   :  { %2764 = vmatpush1.bf16.msra.mxu1 %v6233_v30  ;;  %v6289_v30 = vcombine.low %v510_v15, %v514_v17  ;;  %v184_v15 = vld [vmem:[#allocation2 + $0x118] sm:$0xff]  ;;  %v399_v17 = vld [vmem:[#allocation2 + $0x7d0] sm:$0xff] }
 0x172   :  { %2877 = vmatpush1.bf16.msra.mxu0 %v6067_v34  ;;  %2765 = vmatprep.subr.bf16.mxu1 %v6242_v35  ;;  %v6132_v34 = vcombine.high %v351_v27, %v355_v28  ;;  %v526_v35 = vld [vmem:[#allocation2 + $0xbc8] sm:$0xff]  ;;  %v411_v27 = vld [vmem:[#allocation2 + $0x830] sm:$0xff] }
 0x173   :  { %2878 = vmatprep.subr.bf16.mxu0 %v6076_v38  ;;  %v363_v38 = vld [vmem:[#allocation2 + $0x6b0] sm:$0xff] }
 0x175   :  { %2766 = vmatpush1.bf16.msra.mxu1 %v6241_v39  ;;  %v6297_v39 = vcombine.low %v518_v25, %v522_v26  ;;  %v196_v25 = vld [vmem:[#allocation2 + $0x178] sm:$0xff]  ;;  %v407_v26 = vld [vmem:[#allocation2 + $0x810] sm:$0xff] }
 0x176   :  { %2879 = vmatpush1.bf16.msra.mxu0 %v6075_v41  ;;  %2767 = vmatprep.subr.bf16.mxu1 %v6250_v43  ;;  %v6306_v41 = vcombine.high %v526_v35, %v530_v36  ;;  %v6140_v43 = vcombine.high %v359_v37, %v363_v38 }
 0x177   :  { %2880 = vmatprep.subr.bf16.mxu0 %v6084_v46  ;;  %v367_v46 = vld [vmem:[#allocation2 + $0x6d0] sm:$0xff] }
 0x178   :  { %v6148_v51 = vcombine.high %v367_v46, %v371_v47 }
 0x179   :  { %2768 = vmatpush1.bf16.msra.mxu1 %v6249_v48  ;;  %v6305_v48 = vcombine.low %v526_v35, %v530_v36  ;;  %v204_v35 = vld [vmem:[#allocation2 + $0x1b8] sm:$0xff]  ;;  %v415_v36 = vld [vmem:[#allocation2 + $0x850] sm:$0xff] }
 0x17a   :  { %2881 = vmatpush1.bf16.msra.mxu0 %v6083_v49  ;;  %2769 = vmatprep.subr.bf16.mxu1 %v6258_v50  ;;  %v6139_v49 = vcombine.low %v359_v37, %v363_v38  ;;  %v5934_v50 = vcombine.high %v152_v44, %v156_v45  ;;  %v419_v37 = vld [vmem:[#allocation2 + $0x870] sm:$0xff] }
 0x17b   :  { %2882 = vmatprep.subr.bf16.mxu0 %v6092_v54  ;;  %v164_v54 = vld [vmem:[#allocation2 + $0x78] sm:$0xff] }
 0x17d   :  { %2770 = vmatpush1.bf16.msra.mxu1 %v6257_v58  ;;  %v5933_v58 = vcombine.low %v152_v44, %v156_v45  ;;  %v208_v44 = vld [vmem:[#allocation2 + $0x1d8] sm:$0xff] }
 0x17e   :  { %2883 = vmatpush1.bf16.msra.mxu0 %v6091_v59  ;;  %2771 = vmatprep.subr.bf16.mxu1 %v6266_v60  ;;  %v6147_v59 = vcombine.low %v367_v46, %v371_v47  ;;  %v5942_v60 = vcombine.high %v160_v53, %v164_v54  ;;  %v212_v45 = vld [vmem:[#allocation2 + $0x1f8] sm:$0xff]  ;;  %v423_v47 = vld [vmem:[#allocation2 + $0x890] sm:$0xff] }
 0x17f   :  { %2884 = vmatprep.subr.bf16.mxu0 %v6100_v0  ;;  %v172_v0 = vld [vmem:[#allocation2 + $0xb8] sm:$0xff] }
 0x181   :  { %2772 = vmatpush1.bf16.msra.mxu1 %v6265_v3  ;;  %v5941_v3 = vcombine.low %v160_v53, %v164_v54  ;;  %v6195_v53 = vcombine.low %v415_v36, %v419_v37  ;;  %v5990_v54 = vcombine.high %v208_v44, %v212_v45 }
 0x182   :  { %2885 = vmatpush1.bf16.msra.mxu0 %v6099_v4  ;;  %2773 = vmatprep.subr.bf16.mxu1 %v6274_v5  ;;  %v6155_v4 = vcombine.low %v375_v55, %v379_v56  ;;  %v5950_v5 = vcombine.high %v168_v63, %v172_v0  ;;  %v216_v56 = vld [vmem:[#allocation2 + $0x218] sm:$0xff] }
 0x183   :  { %2886 = vmatprep.subr.bf16.mxu0 %v6108_v7  ;;  %v176_v7 = vld [vmem:[#allocation2 + $0xd8] sm:$0xff] }
 0x184   :  { %v5957_v19 = vcombine.low %v176_v7, %v180_v8 }
 0x185   :  { %2774 = vmatpush1.bf16.msra.mxu1 %v6273_v11  ;;  %v5949_v11 = vcombine.low %v168_v63, %v172_v0 }
 0x186   :  { %2887 = vmatpush1.bf16.msra.mxu0 %v6107_v12  ;;  %2775 = vmatprep.subr.bf16.mxu1 %v6282_v13  ;;  %v6163_v12 = vcombine.low %v383_v1, %v387_v2  ;;  %v5958_v13 = vcombine.high %v176_v7, %v180_v8  ;;  %v224_v2 = vld [vmem:[#allocation2 + $0x258] sm:$0xff] }
 0x187   :  { %2888 = vmatprep.subr.bf16.mxu0 %v6116_v14  ;;  %v6172_v14 = vcombine.high %v391_v9, %v395_v10 }
 0x189   :  { %2776 = vmatpush1.bf16.msra.mxu1 %v6281_v20  ;;  %v6171_v20 = vcombine.low %v391_v9, %v395_v10  ;;  %v232_v10 = vld [vmem:[#allocation2 + $0x298] sm:$0xff] }
 0x18a   :  { %2889 = vmatpush1.bf16.msra.mxu0 %v6115_v22  ;;  %2777 = vmatprep.subr.bf16.mxu1 %v6290_v23  ;;  %v6180_v23 = vcombine.high %v399_v17, %v403_v18 }
 0x18b   :  { %2890 = vmatprep.subr.bf16.mxu0 %v6124_v24  ;;  %v192_v24 = vld [vmem:[#allocation2 + $0x158] sm:$0xff] }
 0x18c   :  { %v5973_v38 = vcombine.low %v192_v24, %v196_v25 }
 0x18d   :  { %2778 = vmatpush1.bf16.msra.mxu1 %v6289_v30  ;;  %v6179_v30 = vcombine.low %v399_v17, %v403_v18  ;;  %v240_v18 = vld [vmem:[#allocation2 + $0x2d8] sm:$0xff] }
 0x18e   :  { %2891 = vmatpush1.bf16.msra.mxu0 %v6123_v31  ;;  %2779 = vmatprep.subr.bf16.mxu1 %v6298_v32  ;;  %v5974_v31 = vcombine.high %v192_v24, %v196_v25  ;;  %v6188_v32 = vcombine.high %v407_v26, %v411_v27 }
 0x18f   :  { %2892 = vmatprep.subr.bf16.mxu0 %v6132_v34  ;;  %v200_v34 = vld [vmem:[#allocation2 + $0x198] sm:$0xff] }
 0x191   :  { %2780 = vmatpush1.bf16.msra.mxu1 %v6297_v39  ;;  %v6187_v39 = vcombine.low %v407_v26, %v411_v27  ;;  %v248_v27 = vld [vmem:[#allocation2 + $0x318] sm:$0xff] }
 0x192   :  { %2893 = vmatpush1.bf16.msra.mxu0 %v6131_v40  ;;  %2781 = vmatprep.subr.bf16.mxu1 %v6306_v41  ;;  %v5982_v40 = vcombine.high %v200_v34, %v204_v35 }
 0x193   :  { %2894 = vmatprep.subr.bf16.mxu0 %v6140_v43  ;;  %v6196_v43 = vcombine.high %v415_v36, %v419_v37  ;;  %v256_v37 = vld [vmem:[#allocation2 + $0x358] sm:$0xff] }
 0x195   :  { %2782 = vmatpush1.bf16.msra.mxu1 %v6305_v48  ;;  %v427_v48 = vld [vmem:[#allocation2 + $0x8b0] sm:$0xff] }
 0x196   :  { %2895 = vmatpush1.bf16.msra.mxu0 %v6139_v49  ;;  %2997 = vmatprep.subr.bf16.mxu1 %v5934_v50  ;;  %v5981_v50 = vcombine.low %v200_v34, %v204_v35  ;;  %v6204_v55 = vcombine.high %v423_v47, %v427_v48  ;;  %v6203_v63 = vcombine.low %v423_v47, %v427_v48  ;;  %v264_v48 = vld [vmem:[#allocation2 + $0x398] sm:$0xff] }
 0x197   :  { %2896 = vmatprep.subr.bf16.mxu0 %v6148_v51 }
 0x198   :  { %2784 = vmatmul.mubr.bf16.vlgmr.msra.gmra.mrb[4].mxu1 %v7688_v33 }
 0x199   :  { %2998 = vmatpush1.bf16.msra.mxu1 %v5933_v58  ;;  %3029 = vmatprep.mubr.bf16.mxu1 %v7657_v57  ;;  %v188_v57 = vld [vmem:[#allocation2 + $0x138] sm:$0xff] }
 0x19a   :  { %2897 = vmatpush1.bf16.msra.mxu0 %v6147_v59  ;;  %2999 = vmatprep.subr.bf16.mxu1 %v5942_v60  ;;  %v5966_v22 = vcombine.high %v184_v15, %v188_v57  ;;  %v5965_v28 = vcombine.low %v184_v15, %v188_v57  ;;  %v220_v58 = vld [vmem:[#allocation2 + $0x238] sm:$0xff]  ;;  %v431_v59 = vld [vmem:[#allocation2 + $0x8d0] sm:$0xff] }
 0x19b   :  { %2898 = vmatprep.subr.bf16.mxu0 %v6156_v62  ;;  %v435_v60 = vld [vmem:[#allocation2 + $0x8f0] sm:$0xff]  ;;  %v5989_v62 = vcombine.low %v208_v44, %v212_v45  ;;  %v5998_v0 = vcombine.high %v216_v56, %v220_v58 }
 0x19c   :  { %v6212_v1 = vcombine.high %v431_v59, %v435_v60  ;;  %v6211_v7 = vcombine.low %v431_v59, %v435_v60  ;;  %v276_v59 = vld [vmem:[#allocation2 + $0x3f8] sm:$0xff]  ;;  %v487_v60 = vld [vmem:[#allocation2 + $0xa90] sm:$0xff] }
 0x19d   :  { %3000 = vmatpush1.bf16.msra.mxu1 %v5941_v3  ;;  %v228_v3 = vld [vmem:[#allocation2 + $0x278] sm:$0xff] }
 0x19e   :  { %2899 = vmatpush1.bf16.msra.mxu0 %v6155_v4  ;;  %3001 = vmatprep.subr.bf16.mxu1 %v5950_v5  ;;  %v439_v4 = vld [vmem:[#allocation2 + $0x910] sm:$0xff]  ;;  %v6006_v8 = vcombine.high %v224_v2, %v228_v3 }
 0x19f   :  { %2900 = vmatprep.subr.bf16.mxu0 %v6164_v6  ;;  %v443_v5 = vld [vmem:[#allocation2 + $0x930] sm:$0xff]  ;;  %v5997_v6 = vcombine.low %v216_v56, %v220_v58  ;;  %v272_v58 = vld [vmem:[#allocation2 + $0x3d8] sm:$0xff] }
 0x1a0   :  { %v6220_v9 = vcombine.high %v439_v4, %v443_v5  ;;  %v6219_v15 = vcombine.low %v439_v4, %v443_v5  ;;  %v284_v4 = vld [vmem:[#allocation2 + $0x438] sm:$0xff]  ;;  %v495_v5 = vld [vmem:[#allocation2 + $0xad0] sm:$0xff] }
 0x1a1   :  { %3002 = vmatpush1.bf16.msra.mxu1 %v5949_v11  ;;  %v236_v11 = vld [vmem:[#allocation2 + $0x2b8] sm:$0xff] }
 0x1a2   :  { %2901 = vmatpush1.bf16.msra.mxu0 %v6163_v12  ;;  %3003 = vmatprep.subr.bf16.mxu1 %v5958_v13  ;;  %v447_v12 = vld [vmem:[#allocation2 + $0x950] sm:$0xff]  ;;  %v6014_v57 = vcombine.high %v232_v10, %v236_v11 }
 0x1a3   :  { %2902 = vmatprep.subr.bf16.mxu0 %v6172_v14  ;;  %v451_v13 = vld [vmem:[#allocation2 + $0x970] sm:$0xff]  ;;  %v6005_v14 = vcombine.low %v224_v2, %v228_v3  ;;  %v280_v3 = vld [vmem:[#allocation2 + $0x418] sm:$0xff] }
 0x1a4   :  { %v6228_v17 = vcombine.high %v447_v12, %v451_v13  ;;  %v6227_v24 = vcombine.low %v447_v12, %v451_v13  ;;  %v292_v12 = vld [vmem:[#allocation2 + $0x478] sm:$0xff]  ;;  %v503_v13 = vld [vmem:[#allocation2 + $0xb10] sm:$0xff] }
 0x1a5   :  { %3004 = vmatpush1.bf16.msra.mxu1 %v5957_v19  ;;  %v244_v19 = vld [vmem:[#allocation2 + $0x2f8] sm:$0xff] }
 0x1a6   :  { %2903 = vmatpush1.bf16.msra.mxu0 %v6171_v20  ;;  %3005 = vmatprep.subr.bf16.mxu1 %v5966_v22  ;;  %v455_v20 = vld [vmem:[#allocation2 + $0x990] sm:$0xff]  ;;  %v6022_v25 = vcombine.high %v240_v18, %v244_v19 }
 0x1a7   :  { %2904 = vmatprep.subr.bf16.mxu0 %v6180_v23  ;;  %v459_v22 = vld [vmem:[#allocation2 + $0x9b0] sm:$0xff]  ;;  %v6013_v23 = vcombine.low %v232_v10, %v236_v11  ;;  %v288_v11 = vld [vmem:[#allocation2 + $0x458] sm:$0xff] }
 0x1a8   :  { %v6236_v26 = vcombine.high %v455_v20, %v459_v22  ;;  %v6235_v34 = vcombine.low %v455_v20, %v459_v22  ;;  %v300_v20 = vld [vmem:[#allocation2 + $0x4b8] sm:$0xff]  ;;  %v511_v22 = vld [vmem:[#allocation2 + $0xb50] sm:$0xff] }
 0x1a9   :  { %3006 = vmatpush1.bf16.msra.mxu1 %v5965_v28  ;;  %v252_v28 = vld [vmem:[#allocation2 + $0x338] sm:$0xff] }
 0x1aa   :  { %2905 = vmatpush1.bf16.msra.mxu0 %v6179_v30  ;;  %3007 = vmatprep.subr.bf16.mxu1 %v5974_v31  ;;  %v463_v30 = vld [vmem:[#allocation2 + $0x9d0] sm:$0xff]  ;;  %v6030_v35 = vcombine.high %v248_v27, %v252_v28 }
 0x1ab   :  { %v7711_v41 = vpop.f32.mrb[0].mxu1  ;;  %2915 = vmatprep.subr.bf16.mxu0 %v6188_v32  ;;  %v467_v31 = vld [vmem:[#allocation2 + $0x9f0] sm:$0xff]  ;;  %v6021_v32 = vcombine.low %v240_v18, %v244_v19  ;;  %v296_v19 = vld [vmem:[#allocation2 + $0x498] sm:$0xff] }
 0x1ac   :  { %v7713_v46 = vpop.f32.mrb[1].mxu1  ;;  %v6244_v36 = vcombine.high %v463_v30, %v467_v31  ;;  %v6243_v44 = vcombine.low %v463_v30, %v467_v31  ;;  %v308_v30 = vld [vmem:[#allocation2 + $0x4f8] sm:$0xff]  ;;  %v519_v31 = vld [vmem:[#allocation2 + $0xb90] sm:$0xff] }
 0x1ad   :  { %2907 = vmatmul.mubr.bf16.vlgmr.msra.gmra.mrb[8].mxu0 %v7677_v21  ;;  %v2543_v49 = vpop.f32.mrb[2].mxu1  ;;  %3008 = vmatpush1.bf16.msra.mxu1 %v5973_v38  ;;  %v260_v38 = vld [vmem:[#allocation2 + $0x378] sm:$0xff] }
 0x1ae   :  { %2916 = vmatpush1.bf16.msra.mxu0 %v6187_v39  ;;  %v2544_v51 = vpop.f32.mrb[3].mxu1  ;;  %3009 = vmatprep.subr.bf16.mxu1 %v5982_v40  ;;  %v471_v39 = vld [vmem:[#allocation2 + $0xa10] sm:$0xff]  ;;  %v6038_v45 = vcombine.high %v256_v37, %v260_v38  ;;  %v268_v49 = vld [vmem:[#allocation2 + $0x3b8] sm:$0xff] }
 0x1af   :  { %2917 = vmatprep.subr.bf16.mxu0 %v6196_v43  ;;  %2947 = vmatprep.mubr.bf16.mxu0 %v7679_v29  ;;  %v475_v40 = vld [vmem:[#allocation2 + $0xa30] sm:$0xff]  ;;  %v6029_v43 = vcombine.low %v248_v27, %v252_v28  ;;  %v304_v28 = vld [vmem:[#allocation2 + $0x4d8] sm:$0xff] }
 0x1b0   :  { %v6252_v47 = vcombine.high %v471_v39, %v475_v40  ;;  %v483_v51 = vld [vmem:[#allocation2 + $0xa70] sm:$0xff] }
 0x1b1   :  { %3010 = vmatpush1.bf16.msra.mxu1 %v5981_v50  ;;  %v479_v50 = vld [vmem:[#allocation2 + $0xa50] sm:$0xff] }
 0x1b2   :  { %2918 = vmatpush1.bf16.msra.mxu0 %v6195_v53  ;;  %3011 = vmatprep.subr.bf16.mxu1 %v5990_v54  ;;  %v6037_v53 = vcombine.low %v256_v37, %v260_v38  ;;  %v6251_v54 = vcombine.low %v471_v39, %v475_v40  ;;  %v6260_v56 = vcombine.high %v479_v50, %v483_v51  ;;  %v3175_v38 = vlaneseq  ;;  %v312_v39 = vld [vmem:[#allocation2 + $0x518] sm:$0xff] }
 0x1b3   :  { %2919 = vmatprep.subr.bf16.mxu0 %v6204_v55  ;;  %v6046_v55 = vcombine.high %v264_v48, %v268_v49  ;;  %v316_v40 = vld [vmem:[#allocation2 + $0x538] sm:$0xff] }
 0x1b5   :  { %3012 = vmatpush1.bf16.msra.mxu1 %v5989_v62  ;;  %v491_v62 = vld [vmem:[#allocation2 + $0xab0] sm:$0xff] }
 0x1b6   :  { %2920 = vmatpush1.bf16.msra.mxu0 %v6203_v63  ;;  %3013 = vmatprep.subr.bf16.mxu1 %v5998_v0  ;;  %v6045_v63 = vcombine.low %v264_v48, %v268_v49  ;;  %v6259_v0 = vcombine.low %v479_v50, %v483_v51  ;;  %v6268_v2 = vcombine.high %v487_v60, %v491_v62  ;;  %v3176_v50 = vshrl.u32 %v3175_v38, 7 }
 0x1b7   :  { %2921 = vmatprep.subr.bf16.mxu0 %v6212_v1  ;;  %v6054_v1 = vcombine.high %v272_v58, %v276_v59  ;;  %v6094_v48 = vcombine.high %v312_v39, %v316_v40 }
 0x1b9   :  { %3014 = vmatpush1.bf16.msra.mxu1 %v5997_v6  ;;  %v499_v6 = vld [vmem:[#allocation2 + $0xaf0] sm:$0xff] }
 0x1ba   :  { %2922 = vmatpush1.bf16.msra.mxu0 %v6211_v7  ;;  %3015 = vmatprep.subr.bf16.mxu1 %v6006_v8  ;;  %v6053_v7 = vcombine.low %v272_v58, %v276_v59  ;;  %v6267_v8 = vcombine.low %v487_v60, %v491_v62  ;;  %v6276_v10 = vcombine.high %v495_v5, %v499_v6 }
 0x1bb   :  { %2923 = vmatprep.subr.bf16.mxu0 %v6220_v9  ;;  %v6062_v9 = vcombine.high %v280_v3, %v284_v4  ;;  %v6093_v58 = vcombine.low %v312_v39, %v316_v40 }
 0x1bd   :  { %3016 = vmatpush1.bf16.msra.mxu1 %v6005_v14  ;;  %v507_v14 = vld [vmem:[#allocation2 + $0xb30] sm:$0xff] }
 0x1be   :  { %2924 = vmatpush1.bf16.msra.mxu0 %v6219_v15  ;;  %3017 = vmatprep.subr.bf16.mxu1 %v6014_v57  ;;  %v6061_v15 = vcombine.low %v280_v3, %v284_v4  ;;  %v6275_v57 = vcombine.low %v495_v5, %v499_v6  ;;  %v6284_v18 = vcombine.high %v503_v13, %v507_v14  ;;  %v536_v3 = vld [vmem:[#allocation2 + $0xc18] sm:$0xff] }
 0x1bf   :  { %2925 = vmatprep.subr.bf16.mxu0 %v6228_v17  ;;  %v6070_v17 = vcombine.high %v288_v11, %v292_v12  ;;  %v540_v4 = vld [vmem:[#allocation2 + $0xc38] sm:$0xff] }
 0x1c1   :  { %3018 = vmatpush1.bf16.msra.mxu1 %v6013_v23  ;;  %v515_v23 = vld [vmem:[#allocation2 + $0xb70] sm:$0xff] }
 0x1c2   :  { %2926 = vmatpush1.bf16.msra.mxu0 %v6227_v24  ;;  %3019 = vmatprep.subr.bf16.mxu1 %v6022_v25  ;;  %v6069_v24 = vcombine.low %v288_v11, %v292_v12  ;;  %v6283_v25 = vcombine.low %v503_v13, %v507_v14  ;;  %v6292_v27 = vcombine.high %v511_v22, %v515_v23  ;;  %v344_v14 = vld [vmem:[#allocation2 + $0x618] sm:$0xff] }
 0x1c3   :  { %2927 = vmatprep.subr.bf16.mxu0 %v6236_v26  ;;  %v6078_v26 = vcombine.high %v296_v19, %v300_v20 }
 0x1c5   :  { %3020 = vmatpush1.bf16.msra.mxu1 %v6021_v32  ;;  %v523_v32 = vld [vmem:[#allocation2 + $0xbb0] sm:$0xff] }
 0x1c6   :  { %2928 = vmatpush1.bf16.msra.mxu0 %v6235_v34  ;;  %3021 = vmatprep.subr.bf16.mxu1 %v6030_v35  ;;  %v6077_v34 = vcombine.low %v296_v19, %v300_v20  ;;  %v6086_v35 = vcombine.high %v304_v28, %v308_v30  ;;  %v352_v20 = vld [vmem:[#allocation2 + $0x658] sm:$0xff] }
 0x1c7   :  { %2929 = vmatprep.subr.bf16.mxu0 %v6244_v36  ;;  %v7499_v36 = vmov 1966171168  }
 0x1c8   :  { %v3173_v37 = vunpack.c.l.s4 %v7499_v36 }
 0x1c9   :  { %3022 = vmatpush1.bf16.msra.mxu1 %v6029_v43  ;;  %v527_v43 = vld [vmem:[#allocation2 + $0xbd0] sm:$0xff] }
 0x1ca   :  { %2930 = vmatpush1.bf16.msra.mxu0 %v6243_v44  ;;  %3023 = vmatprep.subr.bf16.mxu1 %v6038_v45  ;;  %v531_v44 = vld [vmem:[#allocation2 + $0xbf0] sm:$0xff]  ;;  %v6085_v45 = vcombine.low %v304_v28, %v308_v30  ;;  %v3174_v49 = vunpack.c.0.s8 %v3173_v37  ;;  %v6775_v30 = vld [vmem:[#allocation7 + $0x4] ss:$16 sps:$4 sm:$0xff]  }
 0x1cb   :  { %2931 = vmatprep.subr.bf16.mxu0 %v6252_v47  ;;  %v6299_v47 = vcombine.low %v519_v31, %v523_v32  ;;  %v6308_v51 = vcombine.high %v527_v43, %v531_v44  ;;  %v6307_v59 = vcombine.low %v527_v43, %v531_v44 }
 0x1cc   :  { %v7719_v62 = vsub.s32 %v3174_v49, %v3176_v50 }
 0x1cd   :  { %3024 = vmatpush1.bf16.msra.mxu1 %v6037_v53  ;;  %v320_v53 = vld [vmem:[#allocation2 + $0x558] sm:$0xff] }
 0x1ce   :  { %2932 = vmatpush1.bf16.msra.mxu0 %v6251_v54  ;;  %3025 = vmatprep.subr.bf16.mxu1 %v6046_v55  ;;  %v324_v54 = vld [vmem:[#allocation2 + $0x578] sm:$0xff]  ;;  %v535_v55 = vld [vmem:[#allocation2 + $0xc10] sm:$0xff] }
 0x1cf   :  { %2933 = vmatprep.subr.bf16.mxu0 %v6260_v56  ;;  %v539_v56 = vld [vmem:[#allocation2 + $0xc30] sm:$0xff]  ;;  %v6102_v60 = vcombine.high %v320_v53, %v324_v54  ;;  %v6101_v5 = vcombine.low %v320_v53, %v324_v54  ;;  %v376_v54 = vld [vmem:[#allocation2 + $0x718] sm:$0xff] }
 0x1d1   :  { %3026 = vmatpush1.bf16.msra.mxu1 %v6045_v63  ;;  %v328_v63 = vld [vmem:[#allocation2 + $0x598] sm:$0xff] }
 0x1d2   :  { %2934 = vmatpush1.bf16.msra.mxu0 %v6259_v0  ;;  %3027 = vmatprep.subr.bf16.mxu1 %v6054_v1  ;;  %v332_v0 = vld [vmem:[#allocation2 + $0x5b8] sm:$0xff]  ;;  %v6316_v1 = vcombine.high %v535_v55, %v539_v56 }
 0x1d3   :  { %2935 = vmatprep.subr.bf16.mxu0 %v6268_v2  ;;  %v7271_v2 = vld.sshfl [vmem:[#allocation5] sm:$0xff pattern:$0x75316420]  ;;  %v6110_v6 = vcombine.high %v328_v63, %v332_v0  ;;  %v6109_v11 = vcombine.low %v328_v63, %v332_v0  ;;  %v6776_v63 = vld [vmem:[#allocation7 + $0x20] ss:$16 sps:$4 sm:$0xff]  }
 0x1d4   :  { %v3186_v13 = vcombine.high %v7271_v2, %v7271_v2 }
 0x1d5   :  { %3028 = vmatpush1.bf16.msra.mxu1 %v6053_v7  ;;  %v6315_v7 = vcombine.low %v535_v55, %v539_v56  ;;  %v380_v55 = vld [vmem:[#allocation2 + $0x738] sm:$0xff] }
 0x1d6   :  { %2936 = vmatpush1.bf16.msra.mxu0 %v6267_v8  ;;  %3038 = vmatprep.subr.bf16.mxu1 %v6062_v9  ;;  %v336_v8 = vld [vmem:[#allocation2 + $0x5d8] sm:$0xff]  ;;  %v6158_v0 = vcombine.high %v376_v54, %v380_v55 }
 0x1d7   :  { %2937 = vmatprep.subr.bf16.mxu0 %v6276_v10  ;;  %v340_v9 = vld [vmem:[#allocation2 + $0x5f8] sm:$0xff]  ;;  %v6318_v10 = vcombine.high %v536_v3, %v540_v4 }
 0x1d8   :  { %3030 = vmatmul.mubr.bf16.vlgmr.msra.gmra.mrb[8].mxu1 %v7672_v16  ;;  %v6291_v16 = vcombine.low %v511_v22, %v515_v23  ;;  %v6118_v12 = vcombine.high %v336_v8, %v340_v9  ;;  %v356_v22 = vld [vmem:[#allocation2 + $0x678] sm:$0xff] }
 0x1d9   :  { %3039 = vmatpush1.bf16.msra.mxu1 %v6061_v15  ;;  %3070 = vmatprep.mubr.bf16.mxu1 %v7662_v61  ;;  %v6300_v61 = vcombine.high %v519_v31, %v523_v32  ;;  %v348_v15 = vld [vmem:[#allocation2 + $0x638] sm:$0xff]  ;;  %v6134_v28 = vcombine.high %v352_v20, %v356_v22  ;;  %v6133_v37 = vcombine.low %v352_v20, %v356_v22 }
 0x1da   :  { %2938 = vmatpush1.bf16.msra.mxu0 %v6275_v57  ;;  %3040 = vmatprep.subr.bf16.mxu1 %v6070_v17  ;;  %v6117_v57 = vcombine.low %v336_v8, %v340_v9  ;;  %v7724_v17 = vrot.slane %v7271_v2, %v7719_v62  ;;  %v6126_v19 = vcombine.high %v344_v14, %v348_v15  ;;  %v360_v31 = vld [vmem:[#allocation2 + $0x698] sm:$0xff] }
 0x1db   :  { %2939 = vmatprep.subr.bf16.mxu0 %v6284_v18  ;;  %v7727_v18 = vrot.slane %v3186_v13, %v7719_v62  ;;  %v364_v32 = vld [vmem:[#allocation2 + $0x6b8] sm:$0xff] }
 0x1dc   :  { %v3221_v23 = vpack.i.b16 %v7724_v17, %v7724_v17  ;;  %v6142_v40 = vcombine.high %v360_v31, %v364_v32  ;;  %v6141_v49 = vcombine.low %v360_v31, %v364_v32  ;;  %v6781_v2 = vld [vmem:[#allocation7 + $0x44] ss:$16 sps:$4 sm:$0xff]   ;;  %v6785_v20 = vld [vmem:[#allocation7 + $0x80] ss:$16 sps:$4 sm:$0xff]  }
 0x1dd   :  { %3041 = vmatpush1.bf16.msra.mxu1 %v6069_v24  ;;  %v7731_v24 = vsub.s32 0, %v3176_v50  ;;  %v6784_v8 = vld [vmem:[#allocation7 + $0x64] ss:$16 sps:$4 sm:$0xff]  }
 0x1de   :  { %2940 = vmatpush1.bf16.msra.mxu0 %v6283_v25  ;;  %3042 = vmatprep.subr.bf16.mxu1 %v6078_v26  ;;  %v6125_v25 = vcombine.low %v344_v14, %v348_v15  ;;  %v3228_v26 = vpack.i.b16 %v7727_v18, %v7727_v18  ;;  %v392_v9 = vld [vmem:[#allocation2 + $0x798] sm:$0xff] }
 0x1df   :  { %2941 = vmatprep.subr.bf16.mxu0 %v6292_v27  ;;  %v6317_v27 = vcombine.low %v536_v3, %v540_v4  ;;  %v384_v3 = vld [vmem:[#allocation2 + $0x758] sm:$0xff] }
 0x1e0   :  { %v388_v4 = vld [vmem:[#allocation2 + $0x778] sm:$0xff] }
 0x1e1   :  { %3043 = vmatpush1.bf16.msra.mxu1 %v6077_v34  ;;  %v6787_v14 = vld [vmem:[#allocation7 + $0x84] ss:$16 sps:$4 sm:$0xff]  }
 0x1e2   :  { %2942 = vmatpush1.bf16.msra.mxu0 %v6291_v16  ;;  %3044 = vmatprep.subr.bf16.mxu1 %v6086_v35  ;;  %v3226_v35 = vrot.slane %v3221_v23, %v7731_v24  ;;  %v400_v15 = vld [vmem:[#allocation2 + $0x7d8] sm:$0xff] }
 0x1e3   :  { %2943 = vmatprep.subr.bf16.mxu0 %v6300_v61  ;;  %v3233_v61 = vrot.slane %v3228_v26, %v7731_v24  ;;  %v6790_v23 = vld [vmem:[#allocation7 + $0xa4] ss:$16 sps:$4 sm:$0xff]  }
 0x1e4   :  { %v412_v26 = vld [vmem:[#allocation2 + $0x838] sm:$0xff] }
 0x1e5   :  { %3045 = vmatpush1.bf16.msra.mxu1 %v6085_v45  ;;  %v368_v45 = vld [vmem:[#allocation2 + $0x6d8] sm:$0xff] }
 0x1e6   :  { %2944 = vmatpush1.bf16.msra.mxu0 %v6299_v47  ;;  %3046 = vmatprep.subr.bf16.mxu1 %v6094_v48  ;;  %v372_v47 = vld [vmem:[#allocation2 + $0x6f8] sm:$0xff] }
 0x1e7   :  { %2945 = vmatprep.subr.bf16.mxu0 %v6308_v51  ;;  %v6778_v51 = vld [vmem:[#allocation7 + $0x24] ss:$16 sps:$4 sm:$0xff]   ;;  %v6150_v53 = vcombine.high %v368_v45, %v372_v47 }
 0x1e8   :  { %v6793_v31 = vld [vmem:[#allocation7 + $0xc4] ss:$16 sps:$4 sm:$0xff]  }
 0x1e9   :  { %3047 = vmatpush1.bf16.msra.mxu1 %v6093_v58  ;;  %v416_v32 = vld [vmem:[#allocation2 + $0x858] sm:$0xff] }
 0x1ea   :  { %2946 = vmatpush1.bf16.msra.mxu0 %v6307_v59  ;;  %3048 = vmatprep.subr.bf16.mxu1 %v6102_v60  ;;  %v6149_v59 = vcombine.low %v368_v45, %v372_v47  ;;  %v436_v45 = vld [vmem:[#allocation2 + $0x8f8] sm:$0xff] }
 0x1eb   :  { %2956 = vmatprep.subr.bf16.mxu0 %v6316_v1 }
 0x1ed   :  { %2948 = vmatmul.mubr.bf16.vlgmr.msra.gmra.mrb[8].mxu0 %v7688_v33  ;;  %3049 = vmatpush1.bf16.msra.mxu1 %v6101_v5 }
 0x1ee   :  { %3050 = vmatprep.subr.bf16.mxu1 %v6110_v6  ;;  %2957 = vmatpush1.bf16.msra.mxu0 %v6315_v7  ;;  %v6157_v6 = vcombine.low %v376_v54, %v380_v55  ;;  %v6166_v7 = vcombine.high %v384_v3, %v388_v4  ;;  %v6805_v55 = vld [vmem:[#allocation7 + $0x144] ss:$16 sps:$4 sm:$0xff]  }
 0x1ef   :  { %2988 = vmatprep.mubr.bf16.mxu0 %v7498_v42  ;;  %3120 = vmatprep.subr.bf16.mxu0 %v6318_v10  ;;  %v396_v10 = vld [vmem:[#allocation2 + $0x7b8] sm:$0xff] }
 0x1f0   :  { %v6174_v13 = vcombine.high %v392_v9, %v396_v10 }
 0x1f1   :  { %3051 = vmatpush1.bf16.msra.mxu1 %v6109_v11  ;;  %v6165_v11 = vcombine.low %v384_v3, %v388_v4  ;;  %v6808_v3 = vld [vmem:[#allocation7 + $0x164] ss:$16 sps:$4 sm:$0xff]  }
 0x1f2   :  { %3052 = vmatprep.subr.bf16.mxu1 %v6118_v12  ;;  %v6782_v12 = vld [vmem:[#allocation7 + $0x60] ss:$16 sps:$4 sm:$0xff]  }
 0x1f3   :  { %v456_v4 = vld [vmem:[#allocation2 + $0x998] sm:$0xff] }
 0x1f5   :  { %3053 = vmatpush1.bf16.msra.mxu1 %v6117_v57  ;;  %v404_v57 = vld [vmem:[#allocation2 + $0x7f8] sm:$0xff] }
 0x1f6   :  { %3054 = vmatprep.subr.bf16.mxu1 %v6126_v19  ;;  %v6173_v19 = vcombine.low %v392_v9, %v396_v10  ;;  %v6182_v22 = vcombine.high %v400_v15, %v404_v57  ;;  %v464_v9 = vld [vmem:[#allocation2 + $0x9d8] sm:$0xff] }
 0x1f7   :  { %v468_v10 = vld [vmem:[#allocation2 + $0x9f8] sm:$0xff] }
 0x1f8   :  { %v2662_v34 = vpop.f32.mrb[0].mxu0 }
 0x1f9   :  { %v6684_v16 = vadd.f32 %v2662_v34, %v7711_v41  ;;  %6321 = vmatmul.mubr.msk.bf16.vlgmr.msra.gmra.mrb[8].mxu0 %vm2501_vm0, %v7697_v52  ;;  %v2664_v36 = vpop.f32.mrb[1].mxu0  ;;  %3055 = vmatpush1.bf16.msra.mxu1 %v6125_v25  ;;  %v408_v25 = vld [vmem:[#allocation2 + $0x818] sm:$0xff] }
 0x1fa   :  { %v6685_v38 = vadd.f32 %v2664_v36, %v7713_v46  ;;  %v2666_v39 = vpop.f32.mrb[2].mxu0  ;;  %3121 = vmatpush1.bf16.msra.mxu0 %v6317_v27  ;;  %3056 = vmatprep.subr.bf16.mxu1 %v6134_v28  ;;  %v6773_v46 = vld [vmem:[#allocation7] ss:$16 sps:$4 sm:$0xff]   ;;  %v6181_v27 = vcombine.low %v400_v15, %v404_v57 }
 0x1fb   :  { %v3161_v43 = vpack.c.bf16 %v6684_v16, %v6684_v16  ;;  %v2667_v44 = vpop.f32.mrb[3].mxu0  ;;  %3152 = vmatprep.mubr.bf16.mxu0 %v7498_v42  ;;  %4828 = vmatprep.subr.bf16.mxu0 %v6775_v30  ;;  %v6788_v28 = vld [vmem:[#allocation7 + $0xa0] ss:$16 sps:$4 sm:$0xff]   ;;  %v6190_v30 = vcombine.high %v408_v25, %v412_v26  ;;  %v6189_v16 = vcombine.low %v408_v25, %v412_v26 }
 0x1fc   :  { %v3162_v41 = vpack.c.bf16 %v6685_v38, %v6685_v38  ;;  %v420_v34 = vld [vmem:[#allocation2 + $0x878] sm:$0xff] }
 0x1fd   :  { %v7742_v48 = vadd.bf16 %v3226_v35, %v3161_v43  ;;  %3057 = vmatpush1.bf16.msra.mxu1 %v6133_v37  ;;  %v6791_v35 = vld [vmem:[#allocation7 + $0xc0] ss:$16 sps:$4 sm:$0xff]   ;;  %v6198_v36 = vcombine.high %v416_v32, %v420_v34  ;;  %v6796_v37 = vld [vmem:[#allocation7 + $0xe4] ss:$16 sps:$4 sm:$0xff]   ;;  %v6197_v39 = vcombine.low %v416_v32, %v420_v34 }
 0x1fe   :  { %v3277_v50 = vadd.bf16 %v3233_v61, %v3162_v41  ;;  %3058 = vmatprep.subr.bf16.mxu1 %v6142_v40  ;;  %v424_v38 = vld [vmem:[#allocation2 + $0x898] sm:$0xff] }
 0x1ff   :  { %v428_v61 = vld [vmem:[#allocation2 + $0x8b8] sm:$0xff] }
 0x200   :  { %v7745_v56 = vmax.bf16 %v7498_v42, %v3277_v50  ;;  %v7747_v58 = vpop.f32.mrb[4].mxu0  ;;  %v6794_v40 = vld [vmem:[#allocation7 + $0xe0] ss:$16 sps:$4 sm:$0xff]   ;;  %v6206_v43 = vcombine.high %v424_v38, %v428_v61  ;;  %v6799_v44 = vld [vmem:[#allocation7 + $0x104] ss:$16 sps:$4 sm:$0xff]   ;;  %v6205_v47 = vcombine.low %v424_v38, %v428_v61 }
 0x201   :  { %6322 = vmatmul.mubr.msk.bf16.vlgmr.msra.gmra.mrb[12].mxu0 %vm2501_vm0, %v7697_v52  ;;  %3059 = vmatpush1.bf16.msra.mxu1 %v6141_v49  ;;  %v7751_v60 = vpop.f32.mrb[5].mxu0  ;;  %v6779_v52 = vld [vmem:[#allocation7 + $0x40] ss:$16 sps:$4 sm:$0xff]  }
 0x202   :  { %4829 = vmatpush1.bf16.msra.mxu0 %v6773_v46  ;;  %4860 = vmatprep.mubr.bf16.mxu0 %v7745_v56  ;;  %v2830_v1 = vpop.f32.mrb[6].mxu0  ;;  %v432_v41 = vld [vmem:[#allocation2 + $0x8d8] sm:$0xff] }
 0x203   :  { %4830 = vmatprep.subr.bf16.mxu0 %v6778_v51  ;;  %3060 = vmatprep.subr.bf16.mxu1 %v6150_v53  ;;  %v2831_v5 = vpop.f32.mrb[7].mxu0  ;;  %v6797_v49 = vld [vmem:[#allocation7 + $0x100] ss:$16 sps:$4 sm:$0xff]   ;;  %v6214_v50 = vcombine.high %v432_v41, %v436_v45 }
 0x204   :  { %v440_v46 = vld [vmem:[#allocation2 + $0x918] sm:$0xff] }
 0x205   :  { %3061 = vmatpush1.bf16.msra.mxu1 %v6149_v59  ;;  %v444_v51 = vld [vmem:[#allocation2 + $0x938] sm:$0xff] }
 0x206   :  { %4831 = vmatpush1.bf16.msra.mxu0 %v6776_v63  ;;  %3062 = vmatprep.subr.bf16.mxu1 %v6158_v0  ;;  %v6800_v53 = vld [vmem:[#allocation7 + $0x120] ss:$16 sps:$4 sm:$0xff]   ;;  %v6222_v54 = vcombine.high %v440_v46, %v444_v51  ;;  %v6221_v0 = vcombine.low %v440_v46, %v444_v51  ;;  %v6829_v46 = vld [vmem:[#allocation7 + $0x244] ss:$16 sps:$4 sm:$0xff]  }
 0x207   :  { %4832 = vmatprep.subr.bf16.mxu0 %v6781_v2  ;;  %v448_v59 = vld [vmem:[#allocation2 + $0x958] sm:$0xff] }
 0x208   :  { %v452_v63 = vld [vmem:[#allocation2 + $0x978] sm:$0xff] }
 0x209   :  { %3063 = vmatpush1.bf16.msra.mxu1 %v6157_v6  ;;  %v6803_v1 = vld [vmem:[#allocation7 + $0x140] ss:$16 sps:$4 sm:$0xff]   ;;  %v6230_v2 = vcombine.high %v448_v59, %v452_v63  ;;  %v6229_v6 = vcombine.low %v448_v59, %v452_v63 }
 0x20a   :  { %4833 = vmatpush1.bf16.msra.mxu0 %v6779_v52  ;;  %3064 = vmatprep.subr.bf16.mxu1 %v6166_v7  ;;  %v460_v5 = vld [vmem:[#allocation2 + $0x9b8] sm:$0xff] }
 0x20b   :  { %4834 = vmatprep.subr.bf16.mxu0 %v6784_v8  ;;  %v6806_v52 = vld [vmem:[#allocation7 + $0x160] ss:$16 sps:$4 sm:$0xff]   ;;  %v6238_v7 = vcombine.high %v456_v4, %v460_v5  ;;  %v6811_v8 = vld [vmem:[#allocation7 + $0x184] ss:$16 sps:$4 sm:$0xff]  }
 0x20c   :  { %v472_v15 = vld [vmem:[#allocation2 + $0xa18] sm:$0xff] }
 0x20d   :  { %3065 = vmatpush1.bf16.msra.mxu1 %v6165_v11  ;;  %v6237_v11 = vcombine.low %v456_v4, %v460_v5  ;;  %v476_v57 = vld [vmem:[#allocation2 + $0xa38] sm:$0xff] }
 0x20e   :  { %4835 = vmatpush1.bf16.msra.mxu0 %v6782_v12  ;;  %3066 = vmatprep.subr.bf16.mxu1 %v6174_v13  ;;  %v6809_v12 = vld [vmem:[#allocation7 + $0x180] ss:$16 sps:$4 sm:$0xff]   ;;  %v6246_v13 = vcombine.high %v464_v9, %v468_v10 }
 0x20f   :  { %4836 = vmatprep.subr.bf16.mxu0 %v6787_v14  ;;  %v6814_v14 = vld [vmem:[#allocation7 + $0x1a4] ss:$16 sps:$4 sm:$0xff]  }
 0x210   :  { %v480_v25 = vld [vmem:[#allocation2 + $0xa58] sm:$0xff] }
 0x211   :  { %3067 = vmatpush1.bf16.msra.mxu1 %v6173_v19  ;;  %v6245_v19 = vcombine.low %v464_v9, %v468_v10  ;;  %v484_v26 = vld [vmem:[#allocation2 + $0xa78] sm:$0xff] }
 0x212   :  { %4837 = vmatpush1.bf16.msra.mxu0 %v6785_v20  ;;  %3068 = vmatprep.subr.bf16.mxu1 %v6182_v22  ;;  %v6812_v20 = vld [vmem:[#allocation7 + $0x1a0] ss:$16 sps:$4 sm:$0xff]   ;;  %v6254_v22 = vcombine.high %v472_v15, %v476_v57 }
 0x213   :  { %4838 = vmatprep.subr.bf16.mxu0 %v6790_v23  ;;  %v6817_v23 = vld [vmem:[#allocation7 + $0x1c4] ss:$16 sps:$4 sm:$0xff]   ;;  %v6836_v10 = vld [vmem:[#allocation7 + $0x2a0] ss:$16 sps:$4 sm:$0xff]  }
 0x214   :  { %v488_v32 = vld [vmem:[#allocation2 + $0xa98] sm:$0xff] }
 0x215   :  { %3069 = vmatpush1.bf16.msra.mxu1 %v6181_v27  ;;  %v6253_v27 = vcombine.low %v472_v15, %v476_v57  ;;  %v492_v34 = vld [vmem:[#allocation2 + $0xab8] sm:$0xff]  ;;  %v6850_v15 = vld [vmem:[#allocation7 + $0x2c] ss:$16 sps:$4 sm:$0xff]  }
 0x216   :  { %4839 = vmatpush1.bf16.msra.mxu0 %v6788_v28  ;;  %3079 = vmatprep.subr.bf16.mxu1 %v6190_v30  ;;  %v6815_v28 = vld [vmem:[#allocation7 + $0x1c0] ss:$16 sps:$4 sm:$0xff]   ;;  %v6262_v30 = vcombine.high %v480_v25, %v484_v26  ;;  %v6847_v57 = vld [vmem:[#allocation7 + $0x2e4] ss:$16 sps:$4 sm:$0xff]  }
 0x217   :  { %4840 = vmatprep.subr.bf16.mxu0 %v6793_v31  ;;  %v6820_v31 = vld [vmem:[#allocation7 + $0x1e4] ss:$16 sps:$4 sm:$0xff]  }
 0x218   :  { %3071 = vmatmul.mubr.bf16.vlgmr.msra.gmra.mrb[8].mxu1 %v7677_v21  ;;  %v6802_v21 = vld [vmem:[#allocation7 + $0x124] ss:$16 sps:$4 sm:$0xff]  }
 0x219   :  { %3080 = vmatpush1.bf16.msra.mxu1 %v6189_v16  ;;  %3111 = vmatprep.mubr.bf16.mxu1 %v7679_v29  ;;  %v6213_v29 = vcombine.low %v432_v41, %v436_v45  ;;  %v6261_v16 = vcombine.low %v480_v25, %v484_v26  ;;  %v496_v38 = vld [vmem:[#allocation2 + $0xad8] sm:$0xff]  ;;  %v6854_v25 = vld [vmem:[#allocation7 + $0x48] ss:$16 sps:$4 sm:$0xff]  }
 0x21a   :  { %4841 = vmatpush1.bf16.msra.mxu0 %v6791_v35  ;;  %3081 = vmatprep.subr.bf16.mxu1 %v6198_v36  ;;  %v6818_v35 = vld [vmem:[#allocation7 + $0x1e0] ss:$16 sps:$4 sm:$0xff]   ;;  %v6270_v36 = vcombine.high %v488_v32, %v492_v34  ;;  %v6826_v41 = vld [vmem:[#allocation7 + $0x224] ss:$16 sps:$4 sm:$0xff]  }
 0x21b   :  { %4842 = vmatprep.subr.bf16.mxu0 %v6796_v37  ;;  %v6823_v37 = vld [vmem:[#allocation7 + $0x204] ss:$16 sps:$4 sm:$0xff]   ;;  %v6851_v26 = vld [vmem:[#allocation7 + $0x300] ss:$16 sps:$4 sm:$0xff]  }
 0x21c   :  { %v500_v61 = vld [vmem:[#allocation2 + $0xaf8] sm:$0xff] }
 0x21d   :  { %3082 = vmatpush1.bf16.msra.mxu1 %v6197_v39  ;;  %v6269_v39 = vcombine.low %v488_v32, %v492_v34  ;;  %v504_v45 = vld [vmem:[#allocation2 + $0xb18] sm:$0xff]  ;;  %v3216_v32 = vcombine.high %v7724_v17, %v7724_v17  ;;  %v6866_v34 = vld [vmem:[#allocation7 + $0x88] ss:$16 sps:$4 sm:$0xff]  }
 0x21e   :  { %4843 = vmatpush1.bf16.msra.mxu0 %v6794_v40  ;;  %3083 = vmatprep.subr.bf16.mxu1 %v6206_v43  ;;  %v6821_v40 = vld [vmem:[#allocation7 + $0x200] ss:$16 sps:$4 sm:$0xff]   ;;  %v6278_v43 = vcombine.high %v496_v38, %v500_v61 }
 0x21f   :  { %4844 = vmatprep.subr.bf16.mxu0 %v6799_v44  ;;  %v7758_v44 = vmax.bf16 %v7498_v42, %v7742_v48  ;;  %v512_v51 = vld [vmem:[#allocation2 + $0xb58] sm:$0xff] }
 0x220   :  { %v6827_v48 = vld [vmem:[#allocation7 + $0x240] ss:$16 sps:$4 sm:$0xff]  }
 0x221   :  { %3084 = vmatpush1.bf16.msra.mxu1 %v6205_v47  ;;  %v508_v47 = vld [vmem:[#allocation2 + $0xb38] sm:$0xff] }
 0x222   :  { %4845 = vmatpush1.bf16.msra.mxu0 %v6797_v49  ;;  %3085 = vmatprep.subr.bf16.mxu1 %v6214_v50  ;;  %v6277_v49 = vcombine.low %v496_v38, %v500_v61  ;;  %v6824_v50 = vld [vmem:[#allocation7 + $0x220] ss:$16 sps:$4 sm:$0xff]   ;;  %v3235_v38 = vpack.i.b16 %v3216_v32, %v3216_v32 }
 0x223   :  { %4846 = vmatprep.subr.bf16.mxu0 %v6802_v21  ;;  %v6286_v21 = vcombine.high %v504_v45, %v508_v47  ;;  %v520_v59 = vld [vmem:[#allocation2 + $0xb98] sm:$0xff] }
 0x224   :  { %v524_v63 = vld [vmem:[#allocation2 + $0xbb8] sm:$0xff] }
 0x225   :  { %3086 = vmatpush1.bf16.msra.mxu1 %v6213_v29  ;;  %v516_v29 = vld [vmem:[#allocation2 + $0xb78] sm:$0xff] }
 0x226   :  { %4847 = vmatpush1.bf16.msra.mxu0 %v6800_v53  ;;  %3087 = vmatprep.subr.bf16.mxu1 %v6222_v54  ;;  %v6285_v53 = vcombine.low %v504_v45, %v508_v47  ;;  %v6294_v54 = vcombine.high %v512_v51, %v516_v29  ;;  %v528_v4 = vld [vmem:[#allocation2 + $0xbd8] sm:$0xff] }
 0x227   :  { %4848 = vmatprep.subr.bf16.mxu0 %v6805_v55  ;;  %v6832_v55 = vld [vmem:[#allocation7 + $0x264] ss:$16 sps:$4 sm:$0xff]   ;;  %v6938_v32 = vld [vmem:[#allocation7 + $0x480] ss:$16 sps:$4 sm:$0xff]  }
 0x228   :  { %v532_v5 = vld [vmem:[#allocation2 + $0xbf8] sm:$0xff] }
 0x229   :  { %3088 = vmatpush1.bf16.msra.mxu1 %v6221_v0  ;;  %v6293_v0 = vcombine.low %v512_v51, %v516_v29  ;;  %v6309_v9 = vcombine.low %v528_v4, %v532_v5 }
 0x22a   :  { %4849 = vmatpush1.bf16.msra.mxu0 %v6803_v1  ;;  %3089 = vmatprep.subr.bf16.mxu1 %v6230_v2  ;;  %v6830_v1 = vld [vmem:[#allocation7 + $0x260] ss:$16 sps:$4 sm:$0xff]   ;;  %v6302_v2 = vcombine.high %v520_v59, %v524_v63 }
 0x22b   :  { %4850 = vmatprep.subr.bf16.mxu0 %v6808_v3  ;;  %v6835_v3 = vld [vmem:[#allocation7 + $0x284] ss:$16 sps:$4 sm:$0xff]  }
 0x22d   :  { %3090 = vmatpush1.bf16.msra.mxu1 %v6229_v6  ;;  %v6301_v6 = vcombine.low %v520_v59, %v524_v63  ;;  %v6884_v63 = vld [vmem:[#allocation7 + $0xe8] ss:$16 sps:$4 sm:$0xff]  }
 0x22e   :  { %4851 = vmatpush1.bf16.msra.mxu0 %v6806_v52  ;;  %3091 = vmatprep.subr.bf16.mxu1 %v6238_v7  ;;  %v6833_v52 = vld [vmem:[#allocation7 + $0x280] ss:$16 sps:$4 sm:$0xff]   ;;  %v6310_v7 = vcombine.high %v528_v4, %v532_v5  ;;  %v6898_v5 = vld [vmem:[#allocation7 + $0x12c] ss:$16 sps:$4 sm:$0xff]  }
 0x22f   :  { %4852 = vmatprep.subr.bf16.mxu0 %v6811_v8  ;;  %v6838_v8 = vld [vmem:[#allocation7 + $0x2a4] ss:$16 sps:$4 sm:$0xff]   ;;  %v6887_v4 = vld [vmem:[#allocation7 + $0x3c0] ss:$16 sps:$4 sm:$0xff]  }
 0x231   :  { %3092 = vmatpush1.bf16.msra.mxu1 %v6237_v11  ;;  %v6844_v11 = vld [vmem:[#allocation7 + $0xc] ss:$16 sps:$4 sm:$0xff]  }
 0x232   :  { %4853 = vmatpush1.bf16.msra.mxu0 %v6809_v12  ;;  %3093 = vmatprep.subr.bf16.mxu1 %v6246_v13  ;;  %v6841_v12 = vld [vmem:[#allocation7 + $0x2c4] ss:$16 sps:$4 sm:$0xff]   ;;  %v6842_v13 = vld [vmem:[#allocation7 + $0x8] ss:$16 sps:$4 sm:$0xff]  }
 0x233   :  { %4854 = vmatprep.subr.bf16.mxu0 %v6814_v14  ;;  %v6839_v14 = vld [vmem:[#allocation7 + $0x2c0] ss:$16 sps:$4 sm:$0xff]  }
 0x235   :  { %3094 = vmatpush1.bf16.msra.mxu1 %v6245_v19  ;;  %v6848_v19 = vld [vmem:[#allocation7 + $0x28] ss:$16 sps:$4 sm:$0xff]  }
 0x236   :  { %4855 = vmatpush1.bf16.msra.mxu0 %v6812_v20  ;;  %3095 = vmatprep.subr.bf16.mxu1 %v6254_v22  ;;  %v6845_v20 = vld [vmem:[#allocation7 + $0x2e0] ss:$16 sps:$4 sm:$0xff]   ;;  %v6856_v22 = vld [vmem:[#allocation7 + $0x4c] ss:$16 sps:$4 sm:$0xff]  }
 0x237   :  { %4856 = vmatprep.subr.bf16.mxu0 %v6817_v23  ;;  %v6853_v23 = vld [vmem:[#allocation7 + $0x304] ss:$16 sps:$4 sm:$0xff]  }
 0x239   :  { %3096 = vmatpush1.bf16.msra.mxu1 %v6253_v27  ;;  %v6862_v27 = vld [vmem:[#allocation7 + $0x6c] ss:$16 sps:$4 sm:$0xff]  }
 0x23a   :  { %4857 = vmatpush1.bf16.msra.mxu0 %v6815_v28  ;;  %3097 = vmatprep.subr.bf16.mxu1 %v6262_v30  ;;  %v6859_v28 = vld [vmem:[#allocation7 + $0x324] ss:$16 sps:$4 sm:$0xff]   ;;  %v6857_v30 = vld [vmem:[#allocation7 + $0x320] ss:$16 sps:$4 sm:$0xff]  }
 0x23b   :  { %4858 = vmatprep.subr.bf16.mxu0 %v6820_v31  ;;  %v6865_v31 = vld [vmem:[#allocation7 + $0x344] ss:$16 sps:$4 sm:$0xff]  }
 0x23d   :  { %3098 = vmatpush1.bf16.msra.mxu1 %v6261_v16  ;;  %v3218_v16 = vcombine.high %v7727_v18, %v7727_v18  ;;  %v3240_v18 = vrot.slane %v3235_v38, %v7731_v24  ;;  %v6923_v38 = vld [vmem:[#allocation7 + $0x208] ss:$16 sps:$4 sm:$0xff]  }
 0x23e   :  { %4859 = vmatpush1.bf16.msra.mxu0 %v6818_v35  ;;  %3099 = vmatprep.subr.bf16.mxu1 %v6270_v36  ;;  %v6863_v35 = vld [vmem:[#allocation7 + $0x340] ss:$16 sps:$4 sm:$0xff]   ;;  %v6874_v36 = vld [vmem:[#allocation7 + $0xac] ss:$16 sps:$4 sm:$0xff]  }
 0x23f   :  { %4869 = vmatprep.subr.bf16.mxu0 %v6823_v37  ;;  %v6871_v37 = vld [vmem:[#allocation7 + $0x364] ss:$16 sps:$4 sm:$0xff]   ;;  %v3242_v61 = vpack.i.b16 %v3218_v16, %v3218_v16  ;;  %v6917_v16 = vld [vmem:[#allocation7 + $0x1e8] ss:$16 sps:$4 sm:$0xff]  }
 0x241   :  { %4861 = vmatmul.mubr.bf16.vlgmr.msra.gmra.mrb[16].mxu0 %v7758_v44  ;;  %3100 = vmatpush1.bf16.msra.mxu1 %v6269_v39  ;;  %v6872_v39 = vld [vmem:[#allocation7 + $0xa8] ss:$16 sps:$4 sm:$0xff]  }
 0x242   :  { %4870 = vmatpush1.bf16.msra.mxu0 %v6821_v40  ;;  %3101 = vmatprep.subr.bf16.mxu1 %v6278_v43  ;;  %v6869_v40 = vld [vmem:[#allocation7 + $0x360] ss:$16 sps:$4 sm:$0xff]   ;;  %v6880_v43 = vld [vmem:[#allocation7 + $0xcc] ss:$16 sps:$4 sm:$0xff]  }
 0x243   :  { %4871 = vmatprep.subr.bf16.mxu0 %v6826_v41  ;;  %v6877_v41 = vld [vmem:[#allocation7 + $0x384] ss:$16 sps:$4 sm:$0xff]  }
 0x245   :  { %3102 = vmatpush1.bf16.msra.mxu1 %v6277_v49 }
 0x246   :  { %4872 = vmatpush1.bf16.msra.mxu0 %v6824_v50  ;;  %3103 = vmatprep.subr.bf16.mxu1 %v6286_v21  ;;  %v3247_v50 = vrot.slane %v3242_v61, %v7731_v24  ;;  %v6931_v61 = vld [vmem:[#allocation7 + $0x22c] ss:$16 sps:$4 sm:$0xff]  }
 0x247   :  { %4873 = vmatprep.subr.bf16.mxu0 %v6829_v46  ;;  %v6878_v46 = vld [vmem:[#allocation7 + $0xc8] ss:$16 sps:$4 sm:$0xff]  }
 0x249   :  { %3104 = vmatpush1.bf16.msra.mxu1 %v6285_v53  ;;  %v6875_v53 = vld [vmem:[#allocation7 + $0x380] ss:$16 sps:$4 sm:$0xff]  }
 0x24a   :  { %4874 = vmatpush1.bf16.msra.mxu0 %v6827_v48  ;;  %3105 = vmatprep.subr.bf16.mxu1 %v6294_v54  ;;  %v6886_v48 = vld [vmem:[#allocation7 + $0xec] ss:$16 sps:$4 sm:$0xff]  }
 0x24b   :  { %4875 = vmatprep.subr.bf16.mxu0 %v6832_v55  ;;  %v6883_v55 = vld [vmem:[#allocation7 + $0x3a4] ss:$16 sps:$4 sm:$0xff]  }
 0x24d   :  { %3106 = vmatpush1.bf16.msra.mxu1 %v6293_v0  ;;  %v6892_v0 = vld [vmem:[#allocation7 + $0x10c] ss:$16 sps:$4 sm:$0xff]  }
 0x24e   :  { %4876 = vmatpush1.bf16.msra.mxu0 %v6830_v1  ;;  %3107 = vmatprep.subr.bf16.mxu1 %v6302_v2  ;;  %v6889_v2 = vld [vmem:[#allocation7 + $0x3c4] ss:$16 sps:$4 sm:$0xff]  }
 0x24f   :  { %4877 = vmatprep.subr.bf16.mxu0 %v6835_v3  ;;  %v6890_v3 = vld [vmem:[#allocation7 + $0x108] ss:$16 sps:$4 sm:$0xff]  }
 0x251   :  { %3108 = vmatpush1.bf16.msra.mxu1 %v6301_v6  ;;  %v6895_v6 = vld [vmem:[#allocation7 + $0x3e4] ss:$16 sps:$4 sm:$0xff]  }
 0x252   :  { %4878 = vmatpush1.bf16.msra.mxu0 %v6833_v52  ;;  %3109 = vmatprep.subr.bf16.mxu1 %v6310_v7  ;;  %v6896_v52 = vld [vmem:[#allocation7 + $0x128] ss:$16 sps:$4 sm:$0xff]   ;;  %v6893_v7 = vld [vmem:[#allocation7 + $0x3e0] ss:$16 sps:$4 sm:$0xff]  }
 0x253   :  { %4879 = vmatprep.subr.bf16.mxu0 %v6838_v8  ;;  %v6901_v8 = vld [vmem:[#allocation7 + $0x14c] ss:$16 sps:$4 sm:$0xff]  }
 0x255   :  { %3110 = vmatpush1.bf16.msra.mxu1 %v6309_v9  ;;  %v6916_v9 = vld [vmem:[#allocation7 + $0x404] ss:$16 sps:$4 sm:$0xff]  }
 0x256   :  { %4880 = vmatpush1.bf16.msra.mxu0 %v6836_v10  ;;  %4992 = vmatprep.subr.bf16.mxu1 %v6844_v11  ;;  %v6899_v10 = vld [vmem:[#allocation7 + $0x148] ss:$16 sps:$4 sm:$0xff]   ;;  %v6904_v11 = vld [vmem:[#allocation7 + $0x16c] ss:$16 sps:$4 sm:$0xff]  }
 0x257   :  { %4881 = vmatprep.subr.bf16.mxu0 %v6841_v12  ;;  %v6914_v12 = vld [vmem:[#allocation7 + $0x400] ss:$16 sps:$4 sm:$0xff]  }
 0x258   :  { %3112 = vmatmul.mubr.bf16.vlgmr.msra.gmra.mrb[8].mxu1 %v7688_v33  ;;  %v6860_v33 = vld [vmem:[#allocation7 + $0x68] ss:$16 sps:$4 sm:$0xff]  }
 0x259   :  { %4993 = vmatpush1.bf16.msra.mxu1 %v6842_v13  ;;  %5024 = vmatprep.mubr.bf16.mxu1 %v7745_v56  ;;  %v6868_v56 = vld [vmem:[#allocation7 + $0x8c] ss:$16 sps:$4 sm:$0xff]  }
 0x25a   :  { %4882 = vmatpush1.bf16.msra.mxu0 %v6839_v14  ;;  %4994 = vmatprep.subr.bf16.mxu1 %v6850_v15  ;;  %v6922_v14 = vld [vmem:[#allocation7 + $0x424] ss:$16 sps:$4 sm:$0xff]   ;;  %v6902_v15 = vld [vmem:[#allocation7 + $0x168] ss:$16 sps:$4 sm:$0xff]  }
 0x25b   :  { %4883 = vmatprep.subr.bf16.mxu0 %v6847_v57  ;;  %v6907_v57 = vld [vmem:[#allocation7 + $0x18c] ss:$16 sps:$4 sm:$0xff]  }
 0x25d   :  { %4995 = vmatpush1.bf16.msra.mxu1 %v6848_v19  ;;  %v6920_v19 = vld [vmem:[#allocation7 + $0x420] ss:$16 sps:$4 sm:$0xff]  }
 0x25e   :  { %4884 = vmatpush1.bf16.msra.mxu0 %v6845_v20  ;;  %4996 = vmatprep.subr.bf16.mxu1 %v6856_v22  ;;  %v6928_v20 = vld [vmem:[#allocation7 + $0x444] ss:$16 sps:$4 sm:$0xff]   ;;  %v6905_v22 = vld [vmem:[#allocation7 + $0x188] ss:$16 sps:$4 sm:$0xff]  }
 0x25f   :  { %4885 = vmatprep.subr.bf16.mxu0 %v6853_v23  ;;  %v6910_v23 = vld [vmem:[#allocation7 + $0x1ac] ss:$16 sps:$4 sm:$0xff]  }
 0x261   :  { %4997 = vmatpush1.bf16.msra.mxu1 %v6854_v25  ;;  %v6926_v25 = vld [vmem:[#allocation7 + $0x440] ss:$16 sps:$4 sm:$0xff]  }
 0x262   :  { %4886 = vmatpush1.bf16.msra.mxu0 %v6851_v26  ;;  %4998 = vmatprep.subr.bf16.mxu1 %v6862_v27  ;;  %v6934_v26 = vld [vmem:[#allocation7 + $0x464] ss:$16 sps:$4 sm:$0xff]   ;;  %v6908_v27 = vld [vmem:[#allocation7 + $0x1a8] ss:$16 sps:$4 sm:$0xff]  }
 0x263   :  { %4887 = vmatprep.subr.bf16.mxu0 %v6859_v28  ;;  %v6913_v28 = vld [vmem:[#allocation7 + $0x1cc] ss:$16 sps:$4 sm:$0xff]  }
 0x265   :  { %4999 = vmatpush1.bf16.msra.mxu1 %v6860_v33  ;;  %v6932_v33 = vld [vmem:[#allocation7 + $0x460] ss:$16 sps:$4 sm:$0xff]  }
 0x266   :  { %4888 = vmatpush1.bf16.msra.mxu0 %v6857_v30  ;;  %5000 = vmatprep.subr.bf16.mxu1 %v6868_v56  ;;  %v6940_v30 = vld [vmem:[#allocation7 + $0x484] ss:$16 sps:$4 sm:$0xff]   ;;  %v6911_v56 = vld [vmem:[#allocation7 + $0x1c8] ss:$16 sps:$4 sm:$0xff]  }
 0x267   :  { %4889 = vmatprep.subr.bf16.mxu0 %v6865_v31  ;;  %v6919_v31 = vld [vmem:[#allocation7 + $0x1ec] ss:$16 sps:$4 sm:$0xff]  }
 0x269   :  { %5001 = vmatpush1.bf16.msra.mxu1 %v6866_v34  ;;  %v6946_v34 = vld [vmem:[#allocation7 + $0x4a4] ss:$16 sps:$4 sm:$0xff]  }
 0x26a   :  { %4890 = vmatpush1.bf16.msra.mxu0 %v6863_v35  ;;  %5002 = vmatprep.subr.bf16.mxu1 %v6874_v36  ;;  %v6925_v35 = vld [vmem:[#allocation7 + $0x20c] ss:$16 sps:$4 sm:$0xff]   ;;  %v6944_v36 = vld [vmem:[#allocation7 + $0x4a0] ss:$16 sps:$4 sm:$0xff]  }
 0x26b   :  { %4891 = vmatprep.subr.bf16.mxu0 %v6871_v37  ;;  %v2785_v17 = vpop.f32.mrb[4].mxu1  ;;  %v6952_v37 = vld [vmem:[#allocation7 + $0x4c4] ss:$16 sps:$4 sm:$0xff]  }
 0x26c   :  { %v6686_v45 = vadd.f32 %v7747_v58, %v2785_v17  ;;  %v2787_v47 = vpop.f32.mrb[5].mxu1  ;;  %v6937_v17 = vld [vmem:[#allocation7 + $0x24c] ss:$16 sps:$4 sm:$0xff]  }
 0x26d   :  { %v6687_v49 = vadd.f32 %v7751_v60, %v2787_v47  ;;  %v2789_v21 = vpop.f32.mrb[6].mxu1  ;;  %5003 = vmatpush1.bf16.msra.mxu1 %v6872_v39  ;;  %v6881_v60 = vld [vmem:[#allocation7 + $0x3a0] ss:$16 sps:$4 sm:$0xff]   ;;  %v6943_v47 = vld [vmem:[#allocation7 + $0x26c] ss:$16 sps:$4 sm:$0xff]  }
 0x26e   :  { %v3163_v51 = vpack.c.bf16 %v6686_v45, %v6686_v45  ;;  %4892 = vmatpush1.bf16.msra.mxu0 %v6869_v40  ;;  %v2790_v29 = vpop.f32.mrb[7].mxu1  ;;  %5004 = vmatprep.subr.bf16.mxu1 %v6880_v43  ;;  %v6950_v39 = vld [vmem:[#allocation7 + $0x4c0] ss:$16 sps:$4 sm:$0xff]   ;;  %v6958_v40 = vld [vmem:[#allocation7 + $0x4e4] ss:$16 sps:$4 sm:$0xff]  }
 0x26f   :  { %v3164_v54 = vpack.c.bf16 %v6687_v49, %v6687_v49  ;;  %4893 = vmatprep.subr.bf16.mxu0 %v6877_v41  ;;  %v6929_v43 = vld [vmem:[#allocation7 + $0x228] ss:$16 sps:$4 sm:$0xff]   ;;  %v6956_v41 = vld [vmem:[#allocation7 + $0x4e0] ss:$16 sps:$4 sm:$0xff]   ;;  %v6964_v45 = vld [vmem:[#allocation7 + $0x504] ss:$16 sps:$4 sm:$0xff]  }
 0x270   :  { %v3278_v58 = vadd.bf16 %v3240_v18, %v3163_v51  ;;  %v6935_v18 = vld [vmem:[#allocation7 + $0x248] ss:$16 sps:$4 sm:$0xff]   ;;  %v6962_v49 = vld [vmem:[#allocation7 + $0x500] ss:$16 sps:$4 sm:$0xff]   ;;  %v6949_v21 = vld [vmem:[#allocation7 + $0x28c] ss:$16 sps:$4 sm:$0xff]  }
 0x271   :  { %v3279_v59 = vadd.bf16 %v3247_v50, %v3164_v54  ;;  %5005 = vmatpush1.bf16.msra.mxu1 %v6878_v46  ;;  %v6970_v50 = vld [vmem:[#allocation7 + $0x524] ss:$16 sps:$4 sm:$0xff]   ;;  %v6968_v46 = vld [vmem:[#allocation7 + $0x520] ss:$16 sps:$4 sm:$0xff]   ;;  %v6947_v29 = vld [vmem:[#allocation7 + $0x288] ss:$16 sps:$4 sm:$0xff]  }
 0x272   :  { %4894 = vmatpush1.bf16.msra.mxu0 %v6875_v53  ;;  %5006 = vmatprep.subr.bf16.mxu1 %v6886_v48  ;;  %v7776_v13 = vmax.bf16 %v7498_v42, %v3278_v58  ;;  %v6976_v51 = vld [vmem:[#allocation7 + $0x544] ss:$16 sps:$4 sm:$0xff]   ;;  %v6955_v53 = vld [vmem:[#allocation7 + $0x2ac] ss:$16 sps:$4 sm:$0xff]   ;;  %v6974_v48 = vld [vmem:[#allocation7 + $0x540] ss:$16 sps:$4 sm:$0xff]  }
 0x273   :  { %4895 = vmatprep.subr.bf16.mxu0 %v6883_v55  ;;  %v7772_v1 = vmax.bf16 %v7498_v42, %v3279_v59  ;;  %v6982_v54 = vld [vmem:[#allocation7 + $0x564] ss:$16 sps:$4 sm:$0xff]   ;;  %v6953_v55 = vld [vmem:[#allocation7 + $0x2a8] ss:$16 sps:$4 sm:$0xff]   ;;  %v6961_v58 = vld [vmem:[#allocation7 + $0x2cc] ss:$16 sps:$4 sm:$0xff]  }
 0x274   :  { %v6980_v59 = vld [vmem:[#allocation7 + $0x560] ss:$16 sps:$4 sm:$0xff]  }
 0x275   :  { %4901 = vmatprep.mubr.bf16.mxu0 %v7772_v1  ;;  %5007 = vmatpush1.bf16.msra.mxu1 %v6884_v63  ;;  %v6988_v63 = vld [vmem:[#allocation7 + $0x584] ss:$16 sps:$4 sm:$0xff]  }
 0x276   :  { %4896 = vmatpush1.bf16.msra.mxu0 %v6881_v60  ;;  %5008 = vmatprep.subr.bf16.mxu1 %v6892_v0  ;;  %v6959_v60 = vld [vmem:[#allocation7 + $0x2c8] ss:$16 sps:$4 sm:$0xff]   ;;  %v6967_v0 = vld [vmem:[#allocation7 + $0x2ec] ss:$16 sps:$4 sm:$0xff]  }
 0x277   :  { %4897 = vmatprep.subr.bf16.mxu0 %v6889_v2  ;;  %v6994_v2 = vld [vmem:[#allocation7 + $0x5a4] ss:$16 sps:$4 sm:$0xff]  }
 0x279   :  { %5009 = vmatpush1.bf16.msra.mxu1 %v6890_v3  ;;  %v6965_v3 = vld [vmem:[#allocation7 + $0x2e8] ss:$16 sps:$4 sm:$0xff]  }
 0x27a   :  { %4898 = vmatpush1.bf16.msra.mxu0 %v6887_v4  ;;  %5010 = vmatprep.subr.bf16.mxu1 %v6898_v5  ;;  %v6973_v4 = vld [vmem:[#allocation7 + $0x30c] ss:$16 sps:$4 sm:$0xff]   ;;  %v6992_v5 = vld [vmem:[#allocation7 + $0x5a0] ss:$16 sps:$4 sm:$0xff]  }
 0x27b   :  { %4899 = vmatprep.subr.bf16.mxu0 %v6895_v6  ;;  %v7001_v6 = vld [vmem:[#allocation7 + $0x5c4] ss:$16 sps:$4 sm:$0xff]  }
 0x27d   :  { %5011 = vmatpush1.bf16.msra.mxu1 %v6896_v52  ;;  %v6971_v52 = vld [vmem:[#allocation7 + $0x308] ss:$16 sps:$4 sm:$0xff]  }
 0x27e   :  { %4900 = vmatpush1.bf16.msra.mxu0 %v6893_v7  ;;  %5012 = vmatprep.subr.bf16.mxu1 %v6901_v8  ;;  %v6979_v7 = vld [vmem:[#allocation7 + $0x32c] ss:$16 sps:$4 sm:$0xff]   ;;  %v6999_v8 = vld [vmem:[#allocation7 + $0x5c0] ss:$16 sps:$4 sm:$0xff]  }
 0x27f   :  { %4910 = vmatprep.subr.bf16.mxu0 %v6916_v9  ;;  %v7007_v9 = vld [vmem:[#allocation7 + $0x5e4] ss:$16 sps:$4 sm:$0xff]  }
 0x281   :  { %4902 = vmatmul.mubr.bf16.vlgmr.msra.gmra.mrb[16].mxu0 %v7776_v13  ;;  %5013 = vmatpush1.bf16.msra.mxu1 %v6899_v10  ;;  %v7270_v10 = vld [vmem:[#allocation5] sm:$0xff] }
 0x282   :  { %5014 = vmatprep.subr.bf16.mxu1 %v6904_v11  ;;  %4911 = vmatpush1.bf16.msra.mxu0 %v6914_v12  ;;  %v3171_v11 = vcombine.high %v7270_v10, %v7270_v10  ;;  %v6977_v12 = vld [vmem:[#allocation7 + $0x328] ss:$16 sps:$4 sm:$0xff]   ;;  %v7076_v10 = vld [vmem:[#allocation7 + $0x6c4] ss:$16 sps:$4 sm:$0xff]  }
 0x283   :  { %4912 = vmatprep.subr.bf16.mxu0 %v6922_v14  ;;  %v6985_v14 = vld [vmem:[#allocation7 + $0x34c] ss:$16 sps:$4 sm:$0xff]  }
 0x285   :  { %5015 = vmatpush1.bf16.msra.mxu1 %v6902_v15  ;;  %v7005_v15 = vld [vmem:[#allocation7 + $0x5e0] ss:$16 sps:$4 sm:$0xff]  }
 0x286   :  { %5016 = vmatprep.subr.bf16.mxu1 %v6907_v57  ;;  %4913 = vmatpush1.bf16.msra.mxu0 %v6920_v19  ;;  %v7040_v57 = vld [vmem:[#allocation7 + $0x604] ss:$16 sps:$4 sm:$0xff]   ;;  %v3185_v19 = vrot.slane %v3171_v11, %v7719_v62  ;;  %v7029_v11 = vld [vmem:[#allocation7 + $0x4a8] ss:$16 sps:$4 sm:$0xff]  }
 0x287   :  { %4914 = vmatprep.subr.bf16.mxu0 %v6928_v20  ;;  %v6983_v20 = vld [vmem:[#allocation7 + $0x348] ss:$16 sps:$4 sm:$0xff]  }
 0x289   :  { %5017 = vmatpush1.bf16.msra.mxu1 %v6905_v22  ;;  %v6991_v22 = vld [vmem:[#allocation7 + $0x36c] ss:$16 sps:$4 sm:$0xff]  }
 0x28a   :  { %5018 = vmatprep.subr.bf16.mxu1 %v6910_v23  ;;  %4915 = vmatpush1.bf16.msra.mxu0 %v6926_v25  ;;  %v3187_v23 = vcombine.high %v3185_v19, %v3185_v19  ;;  %v6989_v25 = vld [vmem:[#allocation7 + $0x368] ss:$16 sps:$4 sm:$0xff]  }
 0x28b   :  { %4916 = vmatprep.subr.bf16.mxu0 %v6934_v26  ;;  %v6997_v26 = vld [vmem:[#allocation7 + $0x38c] ss:$16 sps:$4 sm:$0xff]  }
 0x28d   :  { %5019 = vmatpush1.bf16.msra.mxu1 %v6908_v27  ;;  %v7783_v27 = vrot.slane %v3185_v19, %v7719_v62  ;;  %v7037_v19 = vld [vmem:[#allocation7 + $0x4ec] ss:$16 sps:$4 sm:$0xff]  }
 0x28e   :  { %5020 = vmatprep.subr.bf16.mxu1 %v6913_v28  ;;  %4917 = vmatpush1.bf16.msra.mxu0 %v6932_v33  ;;  %v7786_v28 = vrot.slane %v3187_v23, %v7719_v62  ;;  %v6995_v33 = vld [vmem:[#allocation7 + $0x388] ss:$16 sps:$4 sm:$0xff]  }
 0x28f   :  { %4918 = vmatprep.subr.bf16.mxu0 %v6940_v30  ;;  %v7004_v30 = vld [vmem:[#allocation7 + $0x3ac] ss:$16 sps:$4 sm:$0xff]   ;;  %v7035_v23 = vld [vmem:[#allocation7 + $0x4e8] ss:$16 sps:$4 sm:$0xff]  }
 0x291   :  { %5021 = vmatpush1.bf16.msra.mxu1 %v6911_v56  ;;  %v3249_v56 = vpack.i.b16 %v7783_v27, %v7783_v27 }
 0x292   :  { %5022 = vmatprep.subr.bf16.mxu1 %v6919_v31  ;;  %4919 = vmatpush1.bf16.msra.mxu0 %v6938_v32  ;;  %v3256_v31 = vpack.i.b16 %v7786_v28, %v7786_v28  ;;  %v7002_v32 = vld [vmem:[#allocation7 + $0x3a8] ss:$16 sps:$4 sm:$0xff]  }
 0x293   :  { %4920 = vmatprep.subr.bf16.mxu0 %v6946_v34  ;;  %v7010_v34 = vld [vmem:[#allocation7 + $0x3cc] ss:$16 sps:$4 sm:$0xff]  }
 0x295   :  { %5023 = vmatpush1.bf16.msra.mxu1 %v6917_v16  ;;  %v3254_v16 = vrot.slane %v3249_v56, %v7731_v24  ;;  %v7049_v56 = vld [vmem:[#allocation7 + $0x52c] ss:$16 sps:$4 sm:$0xff]  }
 0x296   :  { %5033 = vmatprep.subr.bf16.mxu1 %v6925_v35  ;;  %4921 = vmatpush1.bf16.msra.mxu0 %v6944_v36  ;;  %v3261_v36 = vrot.slane %v3256_v31, %v7731_v24  ;;  %v7092_v31 = vld [vmem:[#allocation7 + $0x720] ss:$16 sps:$4 sm:$0xff]  }
 0x297   :  { %4922 = vmatprep.subr.bf16.mxu0 %v6952_v37 }
 0x298   :  { %5025 = vmatmul.mubr.bf16.vlgmr.msra.gmra.mrb[12].mxu1 %v7758_v44  ;;  %v6941_v44 = vld [vmem:[#allocation7 + $0x268] ss:$16 sps:$4 sm:$0xff]  }
 0x299   :  { %5034 = vmatpush1.bf16.msra.mxu1 %v6923_v38  ;;  %5065 = vmatprep.mubr.bf16.mxu1 %v7772_v1  ;;  %v6986_v1 = vld [vmem:[#allocation7 + $0x580] ss:$16 sps:$4 sm:$0xff]  }
 0x29a   :  { %5035 = vmatprep.subr.bf16.mxu1 %v6931_v61  ;;  %4923 = vmatpush1.bf16.msra.mxu0 %v6950_v39  ;;  %v7008_v61 = vld [vmem:[#allocation7 + $0x3c8] ss:$16 sps:$4 sm:$0xff]  }
 0x29b   :  { %4924 = vmatprep.subr.bf16.mxu0 %v6958_v40 }
 0x29d   :  { %5036 = vmatpush1.bf16.msra.mxu1 %v6929_v43  ;;  %v7013_v43 = vld [vmem:[#allocation7 + $0x3ec] ss:$16 sps:$4 sm:$0xff]  }
 0x29e   :  { %5037 = vmatprep.subr.bf16.mxu1 %v6937_v17  ;;  %4925 = vmatpush1.bf16.msra.mxu0 %v6956_v41 }
 0x29f   :  { %4926 = vmatprep.subr.bf16.mxu0 %v6964_v45 }
 0x2a1   :  { %5038 = vmatpush1.bf16.msra.mxu1 %v6935_v18  ;;  %v7011_v18 = vld [vmem:[#allocation7 + $0x3e8] ss:$16 sps:$4 sm:$0xff]  }
 0x2a2   :  { %5039 = vmatprep.subr.bf16.mxu1 %v6943_v47  ;;  %4927 = vmatpush1.bf16.msra.mxu0 %v6962_v49  ;;  %v7016_v49 = vld [vmem:[#allocation7 + $0x40c] ss:$16 sps:$4 sm:$0xff]  }
 0x2a3   :  { %4928 = vmatprep.subr.bf16.mxu0 %v6970_v50  ;;  %v7038_v50 = vld [vmem:[#allocation7 + $0x600] ss:$16 sps:$4 sm:$0xff]  }
 0x2a5   :  { %5040 = vmatpush1.bf16.msra.mxu1 %v6941_v44 }
 0x2a6   :  { %5041 = vmatprep.subr.bf16.mxu1 %v6949_v21  ;;  %4929 = vmatpush1.bf16.msra.mxu0 %v6968_v46  ;;  %v7046_v21 = vld [vmem:[#allocation7 + $0x624] ss:$16 sps:$4 sm:$0xff]  }
 0x2a7   :  { %4930 = vmatprep.subr.bf16.mxu0 %v6976_v51  ;;  %v7014_v51 = vld [vmem:[#allocation7 + $0x408] ss:$16 sps:$4 sm:$0xff]  }
 0x2a9   :  { %5042 = vmatpush1.bf16.msra.mxu1 %v6947_v29 }
 0x2aa   :  { %5043 = vmatprep.subr.bf16.mxu1 %v6955_v53  ;;  %4931 = vmatpush1.bf16.msra.mxu0 %v6974_v48  ;;  %v7019_v53 = vld [vmem:[#allocation7 + $0x42c] ss:$16 sps:$4 sm:$0xff]   ;;  %v7044_v48 = vld [vmem:[#allocation7 + $0x620] ss:$16 sps:$4 sm:$0xff]  }
 0x2ab   :  { %4932 = vmatprep.subr.bf16.mxu0 %v6982_v54 }
 0x2ad   :  { %5044 = vmatpush1.bf16.msra.mxu1 %v6953_v55  ;;  %v7052_v55 = vld [vmem:[#allocation7 + $0x644] ss:$16 sps:$4 sm:$0xff]  }
 0x2ae   :  { %5045 = vmatprep.subr.bf16.mxu1 %v6961_v58  ;;  %4933 = vmatpush1.bf16.msra.mxu0 %v6980_v59  ;;  %v7017_v59 = vld [vmem:[#allocation7 + $0x428] ss:$16 sps:$4 sm:$0xff]  }
 0x2af   :  { %4934 = vmatprep.subr.bf16.mxu0 %v6988_v63  ;;  %v7022_v63 = vld [vmem:[#allocation7 + $0x44c] ss:$16 sps:$4 sm:$0xff]  }
 0x2b1   :  { %5046 = vmatpush1.bf16.msra.mxu1 %v6959_v60  ;;  %v7050_v60 = vld [vmem:[#allocation7 + $0x640] ss:$16 sps:$4 sm:$0xff]  }
 0x2b2   :  { %5047 = vmatprep.subr.bf16.mxu1 %v6967_v0  ;;  %4935 = vmatpush1.bf16.msra.mxu0 %v6986_v1  ;;  %v7058_v0 = vld [vmem:[#allocation7 + $0x664] ss:$16 sps:$4 sm:$0xff]   ;;  %v7020_v1 = vld [vmem:[#allocation7 + $0x448] ss:$16 sps:$4 sm:$0xff]  }
 0x2b3   :  { %4936 = vmatprep.subr.bf16.mxu0 %v6994_v2  ;;  %v7025_v2 = vld [vmem:[#allocation7 + $0x46c] ss:$16 sps:$4 sm:$0xff]  }
 0x2b5   :  { %5048 = vmatpush1.bf16.msra.mxu1 %v6965_v3  ;;  %v7056_v3 = vld [vmem:[#allocation7 + $0x660] ss:$16 sps:$4 sm:$0xff]  }
 0x2b6   :  { %5049 = vmatprep.subr.bf16.mxu1 %v6973_v4  ;;  %4937 = vmatpush1.bf16.msra.mxu0 %v6992_v5  ;;  %v7064_v4 = vld [vmem:[#allocation7 + $0x684] ss:$16 sps:$4 sm:$0xff]   ;;  %v7023_v5 = vld [vmem:[#allocation7 + $0x468] ss:$16 sps:$4 sm:$0xff]  }
 0x2b7   :  { %4938 = vmatprep.subr.bf16.mxu0 %v7001_v6  ;;  %v7062_v6 = vld [vmem:[#allocation7 + $0x680] ss:$16 sps:$4 sm:$0xff]  }
 0x2b9   :  { %5050 = vmatpush1.bf16.msra.mxu1 %v6971_v52  ;;  %v7070_v52 = vld [vmem:[#allocation7 + $0x6a4] ss:$16 sps:$4 sm:$0xff]  }
 0x2ba   :  { %5051 = vmatprep.subr.bf16.mxu1 %v6979_v7  ;;  %4939 = vmatpush1.bf16.msra.mxu0 %v6999_v8  ;;  %v7026_v7 = vld [vmem:[#allocation7 + $0x488] ss:$16 sps:$4 sm:$0xff]   ;;  %v7031_v8 = vld [vmem:[#allocation7 + $0x4ac] ss:$16 sps:$4 sm:$0xff]  }
 0x2bb   :  { %4940 = vmatprep.subr.bf16.mxu0 %v7007_v9  ;;  %v7068_v9 = vld [vmem:[#allocation7 + $0x6a0] ss:$16 sps:$4 sm:$0xff]  }
 0x2bd   :  { %5052 = vmatpush1.bf16.msra.mxu1 %v6977_v12  ;;  %v7034_v12 = vld [vmem:[#allocation7 + $0x4cc] ss:$16 sps:$4 sm:$0xff]  }
 0x2be   :  { %5053 = vmatprep.subr.bf16.mxu1 %v6985_v14  ;;  %4941 = vmatpush1.bf16.msra.mxu0 %v7005_v15  ;;  %v7074_v14 = vld [vmem:[#allocation7 + $0x6c0] ss:$16 sps:$4 sm:$0xff]   ;;  %v7082_v15 = vld [vmem:[#allocation7 + $0x6e4] ss:$16 sps:$4 sm:$0xff]  }
 0x2bf   :  { %4951 = vmatprep.subr.bf16.mxu0 %v7040_v57  ;;  %v7032_v57 = vld [vmem:[#allocation7 + $0x4c8] ss:$16 sps:$4 sm:$0xff]  }
 0x2c1   :  { %5054 = vmatpush1.bf16.msra.mxu1 %v6983_v20  ;;  %v7080_v20 = vld [vmem:[#allocation7 + $0x6e0] ss:$16 sps:$4 sm:$0xff]  }
 0x2c2   :  { %5055 = vmatprep.subr.bf16.mxu1 %v6991_v22  ;;  %v7088_v22 = vld [vmem:[#allocation7 + $0x704] ss:$16 sps:$4 sm:$0xff]  }
 0x2c5   :  { %5056 = vmatpush1.bf16.msra.mxu1 %v6989_v25  ;;  %v7043_v25 = vld [vmem:[#allocation7 + $0x50c] ss:$16 sps:$4 sm:$0xff]  }
 0x2c6   :  { %5057 = vmatprep.subr.bf16.mxu1 %v6997_v26  ;;  %v7086_v26 = vld [vmem:[#allocation7 + $0x700] ss:$16 sps:$4 sm:$0xff]  }
 0x2c9   :  { %5058 = vmatpush1.bf16.msra.mxu1 %v6995_v33  ;;  %v7094_v33 = vld [vmem:[#allocation7 + $0x724] ss:$16 sps:$4 sm:$0xff]  }
 0x2ca   :  { %5059 = vmatprep.subr.bf16.mxu1 %v7004_v30  ;;  %v7041_v30 = vld [vmem:[#allocation7 + $0x508] ss:$16 sps:$4 sm:$0xff]  }
 0x2cc   :  { %v2990_v35 = vpop.f32.mrb[8].mxu0 }
 0x2cd   :  { %v3165_v37 = vpack.c.bf16 %v2990_v35, %v2990_v35  ;;  %v2992_v38 = vpop.f32.mrb[9].mxu0  ;;  %5060 = vmatpush1.bf16.msra.mxu1 %v7002_v32  ;;  %v7100_v32 = vld [vmem:[#allocation7 + $0x744] ss:$16 sps:$4 sm:$0xff]   ;;  %v7098_v35 = vld [vmem:[#allocation7 + $0x740] ss:$16 sps:$4 sm:$0xff]  }
 0x2ce   :  { %v3166_v39 = vpack.c.bf16 %v2992_v38, %v2992_v38  ;;  %v2994_v40 = vpop.f32.mrb[10].mxu0  ;;  %5061 = vmatprep.subr.bf16.mxu1 %v7010_v34  ;;  %v7047_v34 = vld [vmem:[#allocation7 + $0x528] ss:$16 sps:$4 sm:$0xff]   ;;  %v7061_v38 = vld [vmem:[#allocation7 + $0x56c] ss:$16 sps:$4 sm:$0xff]  }
 0x2cf   :  { %v3280_v17 = vadd.bf16 %v3254_v16, %v3165_v37  ;;  %v2995_v41 = vpop.f32.mrb[11].mxu0  ;;  %v7055_v16 = vld [vmem:[#allocation7 + $0x54c] ss:$16 sps:$4 sm:$0xff]   ;;  %v7053_v37 = vld [vmem:[#allocation7 + $0x548] ss:$16 sps:$4 sm:$0xff]  }
 0x2d0   :  { %v3281_v45 = vadd.bf16 %v3261_v36, %v3166_v39  ;;  %v7106_v36 = vld [vmem:[#allocation7 + $0x764] ss:$16 sps:$4 sm:$0xff]   ;;  %v7059_v40 = vld [vmem:[#allocation7 + $0x568] ss:$16 sps:$4 sm:$0xff]  }
 0x2d1   :  { %5062 = vmatpush1.bf16.msra.mxu1 %v7008_v61  ;;  %v7796_v44 = vmax.bf16 %v7498_v42, %v3280_v17  ;;  %v7104_v61 = vld [vmem:[#allocation7 + $0x760] ss:$16 sps:$4 sm:$0xff]   ;;  %v7112_v39 = vld [vmem:[#allocation7 + $0x784] ss:$16 sps:$4 sm:$0xff]  }
 0x2d2   :  { %v3289_v47 = vmax.bf16 %v7498_v42, %v3281_v45  ;;  %5063 = vmatprep.subr.bf16.mxu1 %v7013_v43  ;;  %v7067_v43 = vld [vmem:[#allocation7 + $0x58c] ss:$16 sps:$4 sm:$0xff]   ;;  %v7110_v17 = vld [vmem:[#allocation7 + $0x780] ss:$16 sps:$4 sm:$0xff]   ;;  %v7118_v41 = vld [vmem:[#allocation7 + $0x7a4] ss:$16 sps:$4 sm:$0xff]  }
 0x2d3   :  { %v7065_v45 = vld [vmem:[#allocation7 + $0x588] ss:$16 sps:$4 sm:$0xff]  }
 0x2d4   :  { %4942 = vmatprep.mubr.bf16.mxu0 %v3289_v47  ;;  %v7798_v46 = vpop.f32.mrb[12].mxu0 }
 0x2d5   :  { %4943 = vmatmul.mubr.bf16.vlgmr.msra.gmra.mrb[16].mxu0 %v7796_v44  ;;  %5064 = vmatpush1.bf16.msra.mxu1 %v7011_v18  ;;  %v7801_v29 = vpop.f32.mrb[13].mxu0  ;;  %v7073_v18 = vld [vmem:[#allocation7 + $0x5ac] ss:$16 sps:$4 sm:$0xff]  }
 0x2d6   :  { %5074 = vmatprep.subr.bf16.mxu1 %v7016_v49  ;;  %4952 = vmatpush1.bf16.msra.mxu0 %v7038_v50  ;;  %v3158_v54 = vpop.f32.mrb[14].mxu0  ;;  %v7124_v49 = vld [vmem:[#allocation7 + $0x7c4] ss:$16 sps:$4 sm:$0xff]   ;;  %v7071_v50 = vld [vmem:[#allocation7 + $0x5a8] ss:$16 sps:$4 sm:$0xff]  }
 0x2d7   :  { %4953 = vmatprep.subr.bf16.mxu0 %v7046_v21  ;;  %v3159_v58 = vpop.f32.mrb[15].mxu0  ;;  %v7079_v21 = vld [vmem:[#allocation7 + $0x5cc] ss:$16 sps:$4 sm:$0xff]  }
 0x2d8   :  { %5066 = vmatmul.mubr.bf16.vlgmr.msra.gmra.mrb[12].mxu1 %v7776_v13  ;;  %v7028_v13 = vld [vmem:[#allocation7 + $0x48c] ss:$16 sps:$4 sm:$0xff]   ;;  %v7160_v58 = vld [vmem:[#allocation10 + $0x4] ss:$8 sps:$4 sm:$0xff]  }
 0x2d9   :  { %5075 = vmatpush1.bf16.msra.mxu1 %v7014_v51  ;;  %5106 = vmatprep.mubr.bf16.mxu1 %v3289_v47  ;;  %v7116_v47 = vld [vmem:[#allocation7 + $0x7a0] ss:$16 sps:$4 sm:$0xff]   ;;  %v7085_v54 = vld [vmem:[#allocation7 + $0x5ec] ss:$16 sps:$4 sm:$0xff]  }
 0x2da   :  { %5076 = vmatprep.subr.bf16.mxu1 %v7019_v53  ;;  %4954 = vmatpush1.bf16.msra.mxu0 %v7044_v48  ;;  %v7122_v51 = vld [vmem:[#allocation7 + $0x7c0] ss:$16 sps:$4 sm:$0xff]   ;;  %v7130_v53 = vld [vmem:[#allocation7 + $0x7e4] ss:$16 sps:$4 sm:$0xff]   ;;  %v7077_v48 = vld [vmem:[#allocation7 + $0x5c8] ss:$16 sps:$4 sm:$0xff]  }
 0x2db   :  { %4955 = vmatprep.subr.bf16.mxu0 %v7052_v55  ;;  %v7128_v55 = vld [vmem:[#allocation7 + $0x7e0] ss:$16 sps:$4 sm:$0xff]  }
 0x2dd   :  { %5077 = vmatpush1.bf16.msra.mxu1 %v7017_v59  ;;  %v7083_v59 = vld [vmem:[#allocation7 + $0x5e8] ss:$16 sps:$4 sm:$0xff]  }
 0x2de   :  { %5078 = vmatprep.subr.bf16.mxu1 %v7022_v63  ;;  %4956 = vmatpush1.bf16.msra.mxu0 %v7050_v60  ;;  %v7091_v63 = vld [vmem:[#allocation7 + $0x60c] ss:$16 sps:$4 sm:$0xff]   ;;  %v7089_v60 = vld [vmem:[#allocation7 + $0x608] ss:$16 sps:$4 sm:$0xff]  }
 0x2df   :  { %4957 = vmatprep.subr.bf16.mxu0 %v7058_v0  ;;  %v7097_v0 = vld [vmem:[#allocation7 + $0x62c] ss:$16 sps:$4 sm:$0xff]  }
 0x2e1   :  { %5079 = vmatpush1.bf16.msra.mxu1 %v7020_v1  ;;  %v7095_v1 = vld [vmem:[#allocation7 + $0x628] ss:$16 sps:$4 sm:$0xff]  }
 0x2e2   :  { %5080 = vmatprep.subr.bf16.mxu1 %v7025_v2  ;;  %4958 = vmatpush1.bf16.msra.mxu0 %v7056_v3  ;;  %v7103_v2 = vld [vmem:[#allocation7 + $0x64c] ss:$16 sps:$4 sm:$0xff]   ;;  %v7101_v3 = vld [vmem:[#allocation7 + $0x648] ss:$16 sps:$4 sm:$0xff]  }
 0x2e3   :  { %4959 = vmatprep.subr.bf16.mxu0 %v7064_v4  ;;  %v7109_v4 = vld [vmem:[#allocation7 + $0x66c] ss:$16 sps:$4 sm:$0xff]  }
 0x2e5   :  { %5081 = vmatpush1.bf16.msra.mxu1 %v7023_v5  ;;  %v7107_v5 = vld [vmem:[#allocation7 + $0x668] ss:$16 sps:$4 sm:$0xff]  }
 0x2e6   :  { %5082 = vmatprep.subr.bf16.mxu1 %v7028_v13  ;;  %4960 = vmatpush1.bf16.msra.mxu0 %v7062_v6  ;;  %v7115_v13 = vld [vmem:[#allocation7 + $0x68c] ss:$16 sps:$4 sm:$0xff]   ;;  %v3217_v6 = vcombine.high %v7783_v27, %v7783_v27 }
 0x2e7   :  { %4961 = vmatprep.subr.bf16.mxu0 %v7070_v52  ;;  %v7113_v52 = vld [vmem:[#allocation7 + $0x688] ss:$16 sps:$4 sm:$0xff]  }
 0x2e9   :  { %5083 = vmatpush1.bf16.msra.mxu1 %v7026_v7  ;;  %v7121_v7 = vld [vmem:[#allocation7 + $0x6ac] ss:$16 sps:$4 sm:$0xff]  }
 0x2ea   :  { %5084 = vmatprep.subr.bf16.mxu1 %v7031_v8  ;;  %4962 = vmatpush1.bf16.msra.mxu0 %v7068_v9  ;;  %v3263_v8 = vpack.i.b16 %v3217_v6, %v3217_v6  ;;  %v7188_v6 = vld [vmem:[#allocation10 + $0xa0] ss:$8 sps:$4 sm:$0xff]  }
 0x2eb   :  { %4963 = vmatprep.subr.bf16.mxu0 %v7076_v10  ;;  %v7119_v10 = vld [vmem:[#allocation7 + $0x6a8] ss:$16 sps:$4 sm:$0xff]  }
 0x2ed   :  { %5085 = vmatpush1.bf16.msra.mxu1 %v7029_v11  ;;  %v7127_v11 = vld [vmem:[#allocation7 + $0x6cc] ss:$16 sps:$4 sm:$0xff]  }
 0x2ee   :  { %5086 = vmatprep.subr.bf16.mxu1 %v7034_v12  ;;  %4964 = vmatpush1.bf16.msra.mxu0 %v7074_v14 }
 0x2ef   :  { %4965 = vmatprep.subr.bf16.mxu0 %v7082_v15  ;;  %v3268_v15 = vrot.slane %v3263_v8, %v7731_v24  ;;  %v7194_v8 = vld [vmem:[#allocation10 + $0xc0] ss:$8 sps:$4 sm:$0xff]  }
 0x2f1   :  { %5087 = vmatpush1.bf16.msra.mxu1 %v7032_v57 }
 0x2f2   :  { %5088 = vmatprep.subr.bf16.mxu1 %v7037_v19  ;;  %4966 = vmatpush1.bf16.msra.mxu0 %v7080_v20 }
 0x2f3   :  { %4967 = vmatprep.subr.bf16.mxu0 %v7088_v22 }
 0x2f5   :  { %5089 = vmatpush1.bf16.msra.mxu1 %v7035_v23 }
 0x2f6   :  { %5090 = vmatprep.subr.bf16.mxu1 %v7043_v25  ;;  %4968 = vmatpush1.bf16.msra.mxu0 %v7086_v26  ;;  %v7133_v25 = vld [vmem:[#allocation7 + $0x6ec] ss:$16 sps:$4 sm:$0xff]  }
 0x2f7   :  { %4969 = vmatprep.subr.bf16.mxu0 %v7094_v33 }
 0x2f9   :  { %5091 = vmatpush1.bf16.msra.mxu1 %v7041_v30 }
 0x2fa   :  { %5092 = vmatprep.subr.bf16.mxu1 %v7049_v56  ;;  %4970 = vmatpush1.bf16.msra.mxu0 %v7092_v31  ;;  %v7131_v56 = vld [vmem:[#allocation7 + $0x6e8] ss:$16 sps:$4 sm:$0xff]   ;;  %v7136_v31 = vld [vmem:[#allocation7 + $0x70c] ss:$16 sps:$4 sm:$0xff]  }
 0x2fb   :  { %4971 = vmatprep.subr.bf16.mxu0 %v7100_v32  ;;  %v7158_v32 = vld [vmem:[#allocation10] ss:$8 sps:$4 sm:$0xff]  }
 0x2fd   :  { %5093 = vmatpush1.bf16.msra.mxu1 %v7047_v34  ;;  %v7163_v34 = vld [vmem:[#allocation10 + $0x14] ss:$8 sps:$4 sm:$0xff]  }
 0x2fe   :  { %5094 = vmatprep.subr.bf16.mxu1 %v7055_v16  ;;  %4972 = vmatpush1.bf16.msra.mxu0 %v7098_v35  ;;  %v7134_v16 = vld [vmem:[#allocation7 + $0x708] ss:$16 sps:$4 sm:$0xff]   ;;  %v7139_v35 = vld [vmem:[#allocation7 + $0x72c] ss:$16 sps:$4 sm:$0xff]  }
 0x2ff   :  { %4973 = vmatprep.subr.bf16.mxu0 %v7106_v36  ;;  %v7161_v36 = vld [vmem:[#allocation10 + $0x10] ss:$8 sps:$4 sm:$0xff]  }
 0x301   :  { %5095 = vmatpush1.bf16.msra.mxu1 %v7053_v37  ;;  %v7166_v37 = vld [vmem:[#allocation10 + $0x24] ss:$8 sps:$4 sm:$0xff]  }
 0x302   :  { %5096 = vmatprep.subr.bf16.mxu1 %v7061_v38  ;;  %4974 = vmatpush1.bf16.msra.mxu0 %v7104_v61  ;;  %v7137_v38 = vld [vmem:[#allocation7 + $0x728] ss:$16 sps:$4 sm:$0xff]   ;;  %v7142_v61 = vld [vmem:[#allocation7 + $0x74c] ss:$16 sps:$4 sm:$0xff]  }
 0x303   :  { %4975 = vmatprep.subr.bf16.mxu0 %v7112_v39  ;;  %v7164_v39 = vld [vmem:[#allocation10 + $0x20] ss:$8 sps:$4 sm:$0xff]  }
 0x305   :  { %5097 = vmatpush1.bf16.msra.mxu1 %v7059_v40  ;;  %v7169_v40 = vld [vmem:[#allocation10 + $0x34] ss:$8 sps:$4 sm:$0xff]  }
 0x306   :  { %5098 = vmatprep.subr.bf16.mxu1 %v7067_v43  ;;  %4976 = vmatpush1.bf16.msra.mxu0 %v7110_v17  ;;  %v7140_v43 = vld [vmem:[#allocation7 + $0x748] ss:$16 sps:$4 sm:$0xff]   ;;  %v7145_v17 = vld [vmem:[#allocation7 + $0x76c] ss:$16 sps:$4 sm:$0xff]  }
 0x307   :  { %4977 = vmatprep.subr.bf16.mxu0 %v7118_v41  ;;  %v7167_v41 = vld [vmem:[#allocation10 + $0x30] ss:$8 sps:$4 sm:$0xff]  }
 0x309   :  { %5099 = vmatpush1.bf16.msra.mxu1 %v7065_v45  ;;  %v7172_v45 = vld [vmem:[#allocation10 + $0x44] ss:$8 sps:$4 sm:$0xff]  }
 0x30a   :  { %5100 = vmatprep.subr.bf16.mxu1 %v7073_v18  ;;  %4978 = vmatpush1.bf16.msra.mxu0 %v7116_v47  ;;  %v7143_v18 = vld [vmem:[#allocation7 + $0x768] ss:$16 sps:$4 sm:$0xff]   ;;  %v7148_v47 = vld [vmem:[#allocation7 + $0x78c] ss:$16 sps:$4 sm:$0xff]  }
 0x30b   :  { %4979 = vmatprep.subr.bf16.mxu0 %v7124_v49  ;;  %v7170_v49 = vld [vmem:[#allocation10 + $0x40] ss:$8 sps:$4 sm:$0xff]  }
 0x30d   :  { %5101 = vmatpush1.bf16.msra.mxu1 %v7071_v50  ;;  %v7175_v50 = vld [vmem:[#allocation10 + $0x54] ss:$8 sps:$4 sm:$0xff]  }
 0x30e   :  { %5102 = vmatprep.subr.bf16.mxu1 %v7079_v21  ;;  %4980 = vmatpush1.bf16.msra.mxu0 %v7122_v51  ;;  %v7146_v21 = vld [vmem:[#allocation7 + $0x788] ss:$16 sps:$4 sm:$0xff]   ;;  %v7151_v51 = vld [vmem:[#allocation7 + $0x7ac] ss:$16 sps:$4 sm:$0xff]  }
 0x30f   :  { %4981 = vmatprep.subr.bf16.mxu0 %v7130_v53  ;;  %v7173_v53 = vld [vmem:[#allocation10 + $0x50] ss:$8 sps:$4 sm:$0xff]  }
 0x311   :  { %5103 = vmatpush1.bf16.msra.mxu1 %v7077_v48  ;;  %v7178_v48 = vld [vmem:[#allocation10 + $0x64] ss:$8 sps:$4 sm:$0xff]  }
 0x312   :  { %5104 = vmatprep.subr.bf16.mxu1 %v7085_v54  ;;  %4982 = vmatpush1.bf16.msra.mxu0 %v7128_v55  ;;  %v7149_v54 = vld [vmem:[#allocation7 + $0x7a8] ss:$16 sps:$4 sm:$0xff]   ;;  %v7154_v55 = vld [vmem:[#allocation7 + $0x7cc] ss:$16 sps:$4 sm:$0xff]  }
 0x313   :  { %5606 = vmatprep.subr.bf16.mxu0 %v7160_v58  ;;  %v7176_v58 = vld [vmem:[#allocation10 + $0x60] ss:$8 sps:$4 sm:$0xff]  }
 0x315   :  { %5105 = vmatpush1.bf16.msra.mxu1 %v7083_v59  ;;  %v7181_v59 = vld [vmem:[#allocation10 + $0x74] ss:$8 sps:$4 sm:$0xff]  }
 0x316   :  { %5115 = vmatprep.subr.bf16.mxu1 %v7091_v63  ;;  %v7152_v63 = vld [vmem:[#allocation7 + $0x7c8] ss:$16 sps:$4 sm:$0xff]  }
 0x318   :  { %5107 = vmatmul.mubr.bf16.vlgmr.msra.gmra.mrb[12].mxu1 %v7796_v44  ;;  %v3219_v44 = vcombine.high %v7786_v28, %v7786_v28  ;;  %v7125_v28 = vld [vmem:[#allocation7 + $0x6c8] ss:$16 sps:$4 sm:$0xff]  }
 0x319   :  { %5116 = vmatpush1.bf16.msra.mxu1 %v7089_v60  ;;  %v7157_v60 = vld [vmem:[#allocation7 + $0x7ec] ss:$16 sps:$4 sm:$0xff]  }
 0x31a   :  { %5117 = vmatprep.subr.bf16.mxu1 %v7097_v0  ;;  %v3270_v9 = vpack.i.b16 %v3219_v44, %v3219_v44  ;;  %v7179_v0 = vld [vmem:[#allocation10 + $0x70] ss:$8 sps:$4 sm:$0xff]  }
 0x31b   :  { %v7191_v44 = vld [vmem:[#allocation10 + $0xb0] ss:$8 sps:$4 sm:$0xff]  }
 0x31c   :  { %v3275_v19 = vrot.slane %v3270_v9, %v7731_v24  ;;  %v7199_v9 = vld [vmem:[#allocation10 + $0xd4] ss:$8 sps:$4 sm:$0xff]  }
 0x31d   :  { %5118 = vmatpush1.bf16.msra.mxu1 %v7095_v1  ;;  %v7184_v1 = vld [vmem:[#allocation10 + $0x84] ss:$8 sps:$4 sm:$0xff]  }
 0x31e   :  { %5119 = vmatprep.subr.bf16.mxu1 %v7103_v2  ;;  %v7155_v2 = vld [vmem:[#allocation7 + $0x7e8] ss:$16 sps:$4 sm:$0xff]  }
 0x321   :  { %5120 = vmatpush1.bf16.msra.mxu1 %v7101_v3  ;;  %v7182_v3 = vld [vmem:[#allocation10 + $0x80] ss:$8 sps:$4 sm:$0xff]  }
 0x322   :  { %5121 = vmatprep.subr.bf16.mxu1 %v7109_v4  ;;  %v7187_v4 = vld [vmem:[#allocation10 + $0x94] ss:$8 sps:$4 sm:$0xff]  }
 0x325   :  { %5122 = vmatpush1.bf16.msra.mxu1 %v7107_v5  ;;  %v7185_v5 = vld [vmem:[#allocation10 + $0x90] ss:$8 sps:$4 sm:$0xff]  }
 0x326   :  { %5123 = vmatprep.subr.bf16.mxu1 %v7115_v13  ;;  %v7190_v13 = vld [vmem:[#allocation10 + $0xa4] ss:$8 sps:$4 sm:$0xff]  }
 0x329   :  { %5124 = vmatpush1.bf16.msra.mxu1 %v7113_v52  ;;  %v7193_v52 = vld [vmem:[#allocation10 + $0xb4] ss:$8 sps:$4 sm:$0xff]  }
 0x32a   :  { %5125 = vmatprep.subr.bf16.mxu1 %v7121_v7  ;;  %v7196_v7 = vld [vmem:[#allocation10 + $0xc4] ss:$8 sps:$4 sm:$0xff]  }
 0x32b   :  { %v3113_v12 = vpop.f32.mrb[8].mxu1 }
 0x32c   :  { %v6688_v14 = vadd.f32 %v7798_v46, %v3113_v12  ;;  %v3115_v57 = vpop.f32.mrb[9].mxu1  ;;  %v7200_v12 = vld [vmem:[#allocation10 + $0xe0] ss:$8 sps:$4 sm:$0xff]  }
 0x32d   :  { %v6689_v27 = vadd.f32 %v7801_v29, %v3115_v57  ;;  %v3117_v20 = vpop.f32.mrb[10].mxu1  ;;  %5126 = vmatpush1.bf16.msra.mxu1 %v7119_v10  ;;  %v7197_v10 = vld [vmem:[#allocation10 + $0xd0] ss:$8 sps:$4 sm:$0xff]   ;;  %v7208_v57 = vld [vmem:[#allocation10 + $0x104] ss:$8 sps:$4 sm:$0xff]  }
 0x32e   :  { %v3167_v22 = vpack.c.bf16 %v6688_v14, %v6688_v14  ;;  %v3118_v23 = vpop.f32.mrb[11].mxu1  ;;  %5127 = vmatprep.subr.bf16.mxu1 %v7127_v11  ;;  %v7202_v11 = vld [vmem:[#allocation10 + $0xe4] ss:$8 sps:$4 sm:$0xff]   ;;  %v7203_v14 = vld [vmem:[#allocation10 + $0xf0] ss:$8 sps:$4 sm:$0xff]  }
 0x32f   :  { %v3168_v26 = vpack.c.bf16 %v6689_v27, %v6689_v27  ;;  %v7254_v27 = vld [vmem:[#allocation13 + $0x40] sm:$0xff]   ;;  %v7256_v20 = vld [vmem:[#allocation13 + $0x48] sm:$0xff]   ;;  %v7259_v23 = vld [vmem:[#allocation13 + $0x10] sm:$0xff]  }
 0x330   :  { %v3282_v33 = vadd.bf16 %v3268_v15, %v3167_v22  ;;  %v7205_v15 = vld [vmem:[#allocation10 + $0xf4] ss:$8 sps:$4 sm:$0xff]  }
 0x331   :  { %v3283_v30 = vadd.bf16 %v3275_v19, %v3168_v26  ;;  %5128 = vmatpush1.bf16.msra.mxu1 %v7125_v28  ;;  %v7255_v19 = vld [vmem:[#allocation13] sm:$0xff]   ;;  %v7257_v28 = vld [vmem:[#allocation13 + $0x8] sm:$0xff]   ;;  %v7258_v22 = vld [vmem:[#allocation13 + $0x50] sm:$0xff]  }
 0x332   :  { %5129 = vmatprep.subr.bf16.mxu1 %v7133_v25  ;;  %v7815_v29 = vmax.bf16 %v7498_v42, %v3282_v33  ;;  %v7260_v25 = vld [vmem:[#allocation13 + $0x58] sm:$0xff]   ;;  %v7262_v33 = vld [vmem:[#allocation13 + $0x60] sm:$0xff]  }
 0x333   :  { %v3291_v46 = vmax.bf16 %v7498_v42, %v3283_v30  ;;  %v7261_v26 = vld [vmem:[#allocation13 + $0x18] sm:$0xff]   ;;  %v7263_v30 = vld [vmem:[#allocation13 + $0x20] sm:$0xff]  }
 0x335   :  { %4983 = vmatprep.mubr.bf16.mxu0 %v3291_v46  ;;  %5130 = vmatpush1.bf16.msra.mxu1 %v7131_v56  ;;  %v7264_v56 = vld [vmem:[#allocation13 + $0x68] sm:$0xff]  }
 0x336   :  { %5147 = vmatprep.mubr.bf16.mxu1 %v3291_v46  ;;  %4984 = vmatmul.mubr.bf16.vlgmr.msra.gmra.mrb[16].mxu0 %v7815_v29  ;;  %v7265_v46 = vld [vmem:[#allocation13 + $0x28] sm:$0xff]  }
 0x337   :  { %5131 = vmatprep.subr.bf16.mxu1 %v7136_v31  ;;  %5607 = vmatpush1.bf16.msra.mxu0 %v7158_v32  ;;  %v6579_v31 = vld.sshfl [vmem:[#allocation8] sm:$0x33 pattern:$0x75316420] }
 0x338   :  { %5608 = vmatprep.subr.bf16.mxu0 %v7163_v34  ;;  %v5169_v32 = vcombine.high %v6579_v31, %v6579_v31 }
 0x339   :  { %5132 = vmatpush1.bf16.msra.mxu1 %v7134_v16 }
 0x33a   :  { %5133 = vmatprep.subr.bf16.mxu1 %v7139_v35  ;;  %v5183_v34 = vrot.slane %v5169_v32, %v7719_v62  ;;  %v7251_v32 = vld [vmem:[#allocation10 + $0x1f0] ss:$8 sps:$4 sm:$0xff]  }
 0x33b   :  { %5609 = vmatpush1.bf16.msra.mxu0 %v7161_v36 }
 0x33c   :  { %5610 = vmatprep.subr.bf16.mxu0 %v7166_v37  ;;  %v5194_v35 = vpack.i.b16 %v5183_v34, %v5183_v34 }
 0x33d   :  { %5134 = vmatpush1.bf16.msra.mxu1 %v7137_v38 }
 0x33e   :  { %5135 = vmatprep.subr.bf16.mxu1 %v7142_v61  ;;  %v5199_v38 = vrot.slane %v5194_v35, %v7731_v24  ;;  %v7267_v35 = vld [vmem:[#allocation13 + $0x30] sm:$0xff]  }
 0x33f   :  { %5611 = vmatpush1.bf16.msra.mxu0 %v7164_v39 }
 0x340   :  { %5612 = vmatprep.subr.bf16.mxu0 %v7169_v40 }
 0x341   :  { %5136 = vmatpush1.bf16.msra.mxu1 %v7140_v43 }
 0x342   :  { %5137 = vmatprep.subr.bf16.mxu1 %v7145_v17 }
 0x343   :  { %5613 = vmatpush1.bf16.msra.mxu0 %v7167_v41 }
 0x344   :  { %5614 = vmatprep.subr.bf16.mxu0 %v7172_v45 }
 0x345   :  { %5138 = vmatpush1.bf16.msra.mxu1 %v7143_v18 }
 0x346   :  { %5139 = vmatprep.subr.bf16.mxu1 %v7148_v47  ;;  %v7206_v47 = vld [vmem:[#allocation10 + $0x100] ss:$8 sps:$4 sm:$0xff]  }
 0x347   :  { %5615 = vmatpush1.bf16.msra.mxu0 %v7170_v49 }
 0x348   :  { %5616 = vmatprep.subr.bf16.mxu0 %v7175_v50  ;;  %v7211_v50 = vld [vmem:[#allocation10 + $0x114] ss:$8 sps:$4 sm:$0xff]  }
 0x349   :  { %5140 = vmatpush1.bf16.msra.mxu1 %v7146_v21  ;;  %v7209_v21 = vld [vmem:[#allocation10 + $0x110] ss:$8 sps:$4 sm:$0xff]  }
 0x34a   :  { %5141 = vmatprep.subr.bf16.mxu1 %v7151_v51  ;;  %v7214_v51 = vld [vmem:[#allocation10 + $0x124] ss:$8 sps:$4 sm:$0xff]  }
 0x34b   :  { %5617 = vmatpush1.bf16.msra.mxu0 %v7173_v53  ;;  %v7212_v53 = vld [vmem:[#allocation10 + $0x120] ss:$8 sps:$4 sm:$0xff]  }
 0x34c   :  { %5618 = vmatprep.subr.bf16.mxu0 %v7178_v48  ;;  %v7217_v48 = vld [vmem:[#allocation10 + $0x134] ss:$8 sps:$4 sm:$0xff]  }
 0x34d   :  { %5142 = vmatpush1.bf16.msra.mxu1 %v7149_v54  ;;  %v7215_v54 = vld [vmem:[#allocation10 + $0x130] ss:$8 sps:$4 sm:$0xff]  }
 0x34e   :  { %5143 = vmatprep.subr.bf16.mxu1 %v7154_v55  ;;  %v7220_v55 = vld [vmem:[#allocation10 + $0x144] ss:$8 sps:$4 sm:$0xff]  }
 0x34f   :  { %5619 = vmatpush1.bf16.msra.mxu0 %v7176_v58  ;;  %v7218_v58 = vld [vmem:[#allocation10 + $0x140] ss:$8 sps:$4 sm:$0xff]  }
 0x350   :  { %5620 = vmatprep.subr.bf16.mxu0 %v7181_v59  ;;  %v7223_v59 = vld [vmem:[#allocation10 + $0x154] ss:$8 sps:$4 sm:$0xff]  }
 0x351   :  { %5144 = vmatpush1.bf16.msra.mxu1 %v7152_v63  ;;  %v7221_v63 = vld [vmem:[#allocation10 + $0x150] ss:$8 sps:$4 sm:$0xff]  }
 0x352   :  { %5145 = vmatprep.subr.bf16.mxu1 %v7157_v60  ;;  %v5185_v60 = vcombine.high %v5183_v34, %v5183_v34 }
 0x353   :  { %5621 = vmatpush1.bf16.msra.mxu0 %v7179_v0  ;;  %v7226_v0 = vld [vmem:[#allocation10 + $0x164] ss:$8 sps:$4 sm:$0xff]  }
 0x354   :  { %5622 = vmatprep.subr.bf16.mxu0 %v7184_v1  ;;  %v7224_v1 = vld [vmem:[#allocation10 + $0x160] ss:$8 sps:$4 sm:$0xff]  }
 0x355   :  { %5146 = vmatpush1.bf16.msra.mxu1 %v7155_v2  ;;  %v5208_v2 = vpack.i.b16 %v5185_v60, %v5185_v60 }
 0x356   :  { %6662 = vmatprep.subr.bf16.mxu1 %v7254_v27  ;;  %v7241_v27 = vld [vmem:[#allocation10 + $0x1b4] ss:$8 sps:$4 sm:$0xff]  }
 0x357   :  { %5623 = vmatpush1.bf16.msra.mxu0 %v7182_v3  ;;  %v7229_v3 = vld [vmem:[#allocation10 + $0x174] ss:$8 sps:$4 sm:$0xff]  }
 0x358   :  { %5148 = vmatmul.mubr.bf16.vlgmr.msra.gmra.mrb[12].mxu1 %v7815_v29  ;;  %5624 = vmatprep.subr.bf16.mxu0 %v7187_v4  ;;  %v7820_v29 = vrot.slane %v6579_v31, %v7719_v62  ;;  %v7253_v31 = vld [vmem:[#allocation10 + $0x1f4] ss:$8 sps:$4 sm:$0xff]  }
 0x359   :  { %6663 = vmatpush3.bf16.msra.mxu1 %v7255_v19  ;;  %v7239_v19 = vld [vmem:[#allocation10 + $0x1b0] ss:$8 sps:$4 sm:$0xff]  }
 0x35a   :  { %6664 = vmatprep.subr.bf16.mxu1 %v7256_v20  ;;  %v5187_v16 = vpack.i.b16 %v7820_v29, %v7820_v29  ;;  %v7244_v20 = vld [vmem:[#allocation10 + $0x1c4] ss:$8 sps:$4 sm:$0xff]  }
 0x35b   :  { %5625 = vmatpush1.bf16.msra.mxu0 %v7185_v5  ;;  %v5213_v5 = vrot.slane %v5208_v2, %v7731_v24 }
 0x35c   :  { %5626 = vmatprep.subr.bf16.mxu0 %v7190_v13  ;;  %v5192_v36 = vrot.slane %v5187_v16, %v7731_v24  ;;  %v7227_v13 = vld [vmem:[#allocation10 + $0x170] ss:$8 sps:$4 sm:$0xff]  }
 0x35d   :  { %6665 = vmatpush3.bf16.msra.mxu1 %v7257_v28  ;;  %v7242_v28 = vld [vmem:[#allocation10 + $0x1c0] ss:$8 sps:$4 sm:$0xff]   ;;  %v7266_v16 = vld [vmem:[#allocation13 + $0x70] sm:$0xff]  }
 0x35e   :  { %6666 = vmatprep.subr.bf16.mxu1 %v7258_v22  ;;  %v5184_v22 = vcombine.high %v7820_v29, %v7820_v29 }
 0x35f   :  { %5627 = vmatpush1.bf16.msra.mxu0 %v7188_v6 }
 0x360   :  { %5628 = vmatprep.subr.bf16.mxu0 %v7193_v52  ;;  %v7232_v52 = vld [vmem:[#allocation10 + $0x184] ss:$8 sps:$4 sm:$0xff]  }
 0x361   :  { %6667 = vmatpush3.bf16.msra.mxu1 %v7259_v23  ;;  %v7247_v23 = vld [vmem:[#allocation10 + $0x1d4] ss:$8 sps:$4 sm:$0xff]  }
 0x362   :  { %6668 = vmatprep.subr.bf16.mxu1 %v7260_v25  ;;  %v7245_v25 = vld [vmem:[#allocation10 + $0x1d0] ss:$8 sps:$4 sm:$0xff]  }
 0x363   :  { %5629 = vmatpush1.bf16.msra.mxu0 %v7191_v44 }
 0x364   :  { %5630 = vmatprep.subr.bf16.mxu0 %v7196_v7 }
 0x365   :  { %6669 = vmatpush3.bf16.msra.mxu1 %v7261_v26  ;;  %v5201_v26 = vpack.i.b16 %v5184_v22, %v5184_v22 }
 0x366   :  { %6670 = vmatprep.subr.bf16.mxu1 %v7262_v33  ;;  %v7250_v33 = vld [vmem:[#allocation10 + $0x1e4] ss:$8 sps:$4 sm:$0xff]  }
 0x367   :  { %5631 = vmatpush1.bf16.msra.mxu0 %v7194_v8 }
 0x368   :  { %5632 = vmatprep.subr.bf16.mxu0 %v7199_v9 }
 0x369   :  { %6671 = vmatpush3.bf16.msra.mxu1 %v7263_v30  ;;  %v7248_v30 = vld [vmem:[#allocation10 + $0x1e0] ss:$8 sps:$4 sm:$0xff]  }
 0x36a   :  { %6672 = vmatprep.subr.bf16.mxu1 %v7264_v56 }
 0x36b   :  { %5633 = vmatpush1.bf16.msra.mxu0 %v7197_v10  ;;  %v7230_v10 = vld [vmem:[#allocation10 + $0x180] ss:$8 sps:$4 sm:$0xff]  }
 0x36c   :  { %5634 = vmatprep.subr.bf16.mxu0 %v7202_v11  ;;  %v7235_v11 = vld [vmem:[#allocation10 + $0x194] ss:$8 sps:$4 sm:$0xff]  }
 0x36d   :  { %6673 = vmatpush3.bf16.msra.mxu1 %v7265_v46  ;;  %v5206_v46 = vrot.slane %v5201_v26, %v7731_v24 }
 0x36e   :  { %6674 = vmatprep.subr.bf16.mxu1 %v7266_v16 }
 0x36f   :  { %5635 = vmatpush1.bf16.msra.mxu0 %v7200_v12 }
 0x370   :  { %5636 = vmatprep.subr.bf16.mxu0 %v7205_v15  ;;  %v7238_v15 = vld [vmem:[#allocation10 + $0x1a4] ss:$8 sps:$4 sm:$0xff]  }
 0x371   :  { %6675 = vmatpush3.bf16.msra.mxu1 %v7267_v35 }
 0x373   :  { %5637 = vmatpush1.bf16.msra.mxu0 %v7203_v14  ;;  %v7233_v14 = vld [vmem:[#allocation10 + $0x190] ss:$8 sps:$4 sm:$0xff]  }
 0x374   :  { %5647 = vmatprep.subr.bf16.mxu0 %v7208_v57  ;;  %v7236_v57 = vld [vmem:[#allocation10 + $0x1a0] ss:$8 sps:$4 sm:$0xff]  }
 0x409   :  { %v4985_v37 = vpop.f32.mrb[16].mxu0 }
 0x40a   :  { %v5156_v61 = vpack.c.bf16 %v4985_v37, %v4985_v37  ;;  %v4987_v39 = vpop.f32.mrb[17].mxu0  ;;  %v7269_v37 = vld [vmem:[#allocation13 + $0x38] sm:$0xff]  }
 0x40b   :  { %v5157_v40 = vpack.c.bf16 %v4987_v39, %v4987_v39  ;;  %v4989_v43 = vpop.f32.mrb[18].mxu0 }
 0x40c   :  { %v5214_v17 = vadd.bf16 %v5192_v36, %v5156_v61  ;;  %v4990_v41 = vpop.f32.mrb[19].mxu0  ;;  %v7268_v36 = vld [vmem:[#allocation13 + $0x78] sm:$0xff]  }
 0x40d   :  { %v5215_v45 = vadd.bf16 %v5199_v38, %v5157_v40  ;;  %6676 = vmatprep.subr.bf16.mxu1 %v7268_v36  ;;  %v6644_v38 = vld.sshfl [vmem:[#allocation11] sm:$0x11 pattern:$0x75316420] }
 0x40e   :  { %v5218_v49 = vmax.bf16 %v7498_v42, %v5214_v17  ;;  %6677 = vmatpush3.bf16.msra.mxu1 %v7269_v37  ;;  %v5699_v61 = vcombine.high %v6644_v38, %v6644_v38  ;;  %v5706_v39 = vrot.slane %v6644_v38, %v7719_v62 }
 0x40f   :  { %v5219_v18 = vmax.bf16 %v7498_v42, %v5215_v45 }
 0x410   :  { %v5713_v40 = vrot.slane %v5699_v61, %v7719_v62  ;;  %v5715_v43 = vpack.i.b16 %v5706_v39, %v5706_v39 }
 0x411   :  { %5638 = vmatprep.mubr.bf16.mxu0 %v5219_v18 }
 0x412   :  { %5639 = vmatmul.mubr.bf16.vlgmr.msra.gmra.mrb[20].mxu0 %v5218_v49  ;;  %v5722_v17 = vpack.i.b16 %v5713_v40, %v5713_v40  ;;  %v5720_v41 = vrot.slane %v5715_v43, %v7731_v24 }
 0x413   :  { %5648 = vmatpush1.bf16.msra.mxu0 %v7206_v47 }
 0x414   :  { %5649 = vmatprep.subr.bf16.mxu0 %v7211_v50  ;;  %v5727_v18 = vrot.slane %v5722_v17, %v7731_v24 }
 0x417   :  { %5650 = vmatpush1.bf16.msra.mxu0 %v7209_v21 }
 0x418   :  { %5651 = vmatprep.subr.bf16.mxu0 %v7214_v51 }
 0x41b   :  { %5652 = vmatpush1.bf16.msra.mxu0 %v7212_v53 }
 0x41c   :  { %5653 = vmatprep.subr.bf16.mxu0 %v7217_v48 }
 0x41f   :  { %5654 = vmatpush1.bf16.msra.mxu0 %v7215_v54 }
 0x420   :  { %5655 = vmatprep.subr.bf16.mxu0 %v7220_v55 }
 0x423   :  { %5656 = vmatpush1.bf16.msra.mxu0 %v7218_v58  ;;  %v6645_v58 = vld [vmem:[#allocation14] ss:$0 sm:$0xff] }
 0x424   :  { %5657 = vmatprep.subr.bf16.mxu0 %v7223_v59 }
 0x427   :  { %5658 = vmatpush1.bf16.msra.mxu0 %v7221_v63 }
 0x428   :  { %5659 = vmatprep.subr.bf16.mxu0 %v7226_v0 }
 0x42b   :  { %5660 = vmatpush1.bf16.msra.mxu0 %v7224_v1  ;;  %v5149_v4 = vpop.f32.mrb[12].mxu1 }
 0x42c   :  { %v5151_v6 = vpop.f32.mrb[13].mxu1  ;;  %5661 = vmatprep.subr.bf16.mxu0 %v7229_v3  ;;  %v5158_v56 = vpack.c.bf16 %v5149_v4, %v5149_v4 }
 0x42d   :  { %v5159_v44 = vpack.c.bf16 %v5151_v6, %v5151_v6  ;;  %v5153_v7 = vpop.f32.mrb[14].mxu1 }
 0x42e   :  { %v5154_v8 = vpop.f32.mrb[15].mxu1  ;;  %v5216_v34 = vadd.bf16 %v5206_v46, %v5158_v56 }
 0x42f   :  { %v5217_v9 = vadd.bf16 %v5213_v5, %v5159_v44  ;;  %5662 = vmatpush1.bf16.msra.mxu0 %v7227_v13 }
 0x430   :  { %5663 = vmatprep.subr.bf16.mxu0 %v7232_v52  ;;  %v5220_v29 = vmax.bf16 %v7498_v42, %v5216_v34 }
 0x431   :  { %v5221_v12 = vmax.bf16 %v7498_v42, %v5217_v9 }
 0x433   :  { %5664 = vmatpush1.bf16.msra.mxu0 %v7230_v10  ;;  %5679 = vmatprep.mubr.bf16.mxu0 %v5221_v12 }
 0x434   :  { %5665 = vmatprep.subr.bf16.mxu0 %v7235_v11 }
 0x437   :  { %5666 = vmatpush1.bf16.msra.mxu0 %v7233_v14 }
 0x438   :  { %5667 = vmatprep.subr.bf16.mxu0 %v7238_v15 }
 0x43b   :  { %5668 = vmatpush1.bf16.msra.mxu0 %v7236_v57 }
 0x43c   :  { %5669 = vmatprep.subr.bf16.mxu0 %v7241_v27 }
 0x43f   :  { %5670 = vmatpush1.bf16.msra.mxu0 %v7239_v19 }
 0x440   :  { %5671 = vmatprep.subr.bf16.mxu0 %v7244_v20 }
 0x443   :  { %5672 = vmatpush1.bf16.msra.mxu0 %v7242_v28 }
 0x444   :  { %5673 = vmatprep.subr.bf16.mxu0 %v7247_v23 }
 0x447   :  { %5674 = vmatpush1.bf16.msra.mxu0 %v7245_v25 }
 0x448   :  { %5675 = vmatprep.subr.bf16.mxu0 %v7250_v33 }
 0x44b   :  { %5676 = vmatpush1.bf16.msra.mxu0 %v7248_v30 }
 0x44c   :  { %5677 = vmatprep.subr.bf16.mxu0 %v7253_v31 }
 0x44f   :  { %5678 = vmatpush1.bf16.msra.mxu0 %v7251_v32 }
 0x452   :  { %5680 = vmatmul.mubr.bf16.vlgmr.msra.gmra.mrb[20].mxu0 %v5220_v29 }
 0x525   :  { %v5681_v45 = vpop.f32.mrb[20].mxu0 }
 0x526   :  { %v5688_v47 = vpack.c.bf16 %v5681_v45, %v5681_v45  ;;  %v5683_v49 = vpop.f32.mrb[21].mxu0 }
 0x527   :  { %v5689_v50 = vpack.c.bf16 %v5683_v49, %v5683_v49  ;;  %v5685_v21 = vpop.f32.mrb[22].mxu0 }
 0x528   :  { %v5728_v51 = vadd.bf16 %v5720_v41, %v5688_v47  ;;  %v5686_v53 = vpop.f32.mrb[23].mxu0 }
 0x529   :  { %v5729_v48 = vadd.bf16 %v5727_v18, %v5689_v50 }
 0x52a   :  { %v5730_v55 = vmax.bf16 %v7498_v42, %v5728_v51 }
 0x52b   :  { %v5731_v54 = vmax.bf16 %v7498_v42, %v5729_v48 }
 0x52d   :  { %5899 = vmatprep.mubr.bf16.mxu1 %v5731_v54 }
 0x52e   :  { %5900 = vmatmul.mubr.bf16.vlgmr.msra.gmra.mrb[16].mxu1 %v5730_v55 }
 0x601   :  { %v6678_v62 = vpop.f32.mrb[16].mxu1 }
 0x602   :  { %v6679_v59 = vpop.f32.mrb[17].mxu1 }
 0x603   :  { %v6680_v63 = vadd.f32 %v6679_v59, %v6678_v62  ;;  %v6681_v24 = vpop.f32.mrb[18].mxu1 }
 0x604   :  { %v6682_v60 = vpop.f32.mrb[19].mxu1 }
 0x605   :  { %v5902_v0 = vadd.f32 %v6680_v63, %v6645_v58 }
 0x607   :  { %5907 = vst [vmem:[#allocation16] sm:$0xff] %v5902_v0 }
 0x608   :  { %7459 = shalt.err (!%p7456_p12)
}
 0x609   :  { %s7460_s28 = scalar_lea.hbm %s7862_s9, 128 }
 0x60a   :  { %p7461_p13 = scmp.ne.s32.totalorder %s7862_s9, %s7460_s28  ;;  %p7464_p0 = scmp.lt.u32.totalorder %s7460_s28, %s7862_s9 }
 0x60c   :  { %p7466_p1 = pnand %p7464_p0, %p7461_p13 }
 0x60e   :  { %7469 = shalt.err (!%p7466_p1)
}
 0x60f   :  { %5917 = dma.vmem_to_hbm [thread:$0]  %s5915_s24, 128, %s7862_s9, [#allocation4]  }
 0x610   :  { %7480 = dma.done.wait [#allocation4], 128  }
 0x611   :  { %7481 = vsyncadd [#allocation4], 4294967168 }
 0x612   :  { %5921 = vsyncpa [#allocation3], 1 }
 0x613   :  { %5922 = vsyncpa [#allocation6], 1 }
 0x614   :  { %5923 = vsyncpa [#allocation9], 1 }
 0x615   :  { %5924 = vsyncpa [#allocation12], 1 }
 0x616   :  { %5925 = vsyncpa [#allocation15], 1 }
 0x617   :  { %5926 = vsyncpa [#allocation4], 1 }

</bundles_post_ra>
